<compile_context>
chip_gen: v7x
topology: tpu7x:2x2x1
jax: 0.10.0
libtpu: 0.0.40
codegen_flags: <defaults>
</compile_context>

<pallas_src>
import functools
import math

import jax
import jax.numpy as jnp
from jax import lax
from jax.experimental import pallas as pl
from jax.experimental.pallas import tpu as pltpu


# --------------------------------------------------------------------------
# Hoisted input projection: gi_all = x @ W_ih^T + b as one big GEMM.
# --------------------------------------------------------------------------
def _proj_kernel(x_ref, w_ref, b_ref, o_ref):
    o_ref[...] = jnp.dot(x_ref[...], w_ref[...],
                         preferred_element_type=jnp.float32) + b_ref[...]


def _input_proj(x_tm, w_ih_t, b_x):
    """x_tm: (T, B, F) bf16 time-major. Returns gi_all: (T, B, G) f32."""
    T, B, F = x_tm.shape
    G = w_ih_t.shape[1]
    x2 = x_tm.reshape(T * B, F)          # contiguous merge of leading dims
    # TODO(synk): at production T*B tile this GEMM over M blocks of 256.
    gi = pl.pallas_call(
        _proj_kernel,
        out_shape=jax.ShapeDtypeStruct((T * B, G), jnp.float32),
        in_specs=[pl.BlockSpec((T * B, F), lambda: (0, 0)),
                  pl.BlockSpec((F, G), lambda: (0, 0)),
                  pl.BlockSpec((1, G), lambda: (0, 0))],
        out_specs=pl.BlockSpec((T * B, G), lambda: (0, 0)),
    )(x2, w_ih_t, b_x)
    return gi.reshape(T, B, G)


# --------------------------------------------------------------------------
# Sequential (recurrent) kernel: one grid step == T_BLK timesteps.
# Refs (in order): gi, w_hh, [b_hh_n (gru)], [fc_w, fc_b (last layer)],
#                  output (h_seq OR fc out), h_carry scratch.
# --------------------------------------------------------------------------
def _seq_kernel(*refs, cell_type, t_blk, fuse_fc):
    it = iter(refs)
    gi_ref = next(it)                                   # (T_BLK, B, G) f32
    whh_ref = next(it)                                  # (H, G) bf16, resident
    bhn_ref = next(it) if cell_type == "gru" else None  # (1, H) f32
    fcw_ref = next(it) if fuse_fc else None             # (H, O) bf16
    fcb_ref = next(it) if fuse_fc else None             # (1, O) f32
    o_ref = next(it)                    # (T_BLK, B, H) bf16  or  (B, O) f32
    h_carry = next(it)                  # (B, H) f32 scratch, carried over grid

    tb = pl.program_id(0)
    H = h_carry.shape[-1]

    @pl.when(tb == 0)
    def _init():
        # torch: h0 = zeros(num_layers, B, H)
        h_carry[...] = jnp.zeros_like(h_carry)

    def step(i, carry):
        h = h_carry[...]                                # (B, H) f32
        gi = gi_ref[i]                                  # (B, G) f32
        gh = jnp.dot(h.astype(jnp.bfloat16), whh_ref[...],
                     preferred_element_type=jnp.float32)
        if cell_type == "gru":
            # torch.nn.GRU gate order (r, z, n); r applied inside candidate.
            r = jax.nn.sigmoid(gi[:, 0:H] + gh[:, 0:H])
            z = jax.nn.sigmoid(gi[:, H:2 * H] + gh[:, H:2 * H])
            n = jnp.tanh(gi[:, 2 * H:3 * H] + r * (gh[:, 2 * H:3 * H]
                                                   + bhn_ref[...]))
            h_new = (1.0 - z) * n + z * h
        else:  # 'rnn' (tanh nonlinearity, torch default); biases pre-summed.
            h_new = jnp.tanh(gi + gh)
        h_carry[...] = h_new
        if not fuse_fc:
            o_ref[i] = h_new.astype(o_ref.dtype)        # bf16 inter-layer seq
        return carry

    lax.fori_loop(0, t_blk, step, 0, unroll=True)

    if fuse_fc:
        # Fused final Linear on h_T, written once at the last grid step.
        @pl.when(tb == pl.num_programs(0) - 1)
        def _fc():
            h = h_carry[...]
            o_ref[...] = (jnp.dot(h.astype(jnp.bfloat16), fcw_ref[...],
                                  preferred_element_type=jnp.float32)
                          + fcb_ref[...])


def _pick_t_block(T, max_blk=16):
    """Largest divisor of T that is <= max_blk (keeps blocks exact)."""
    for cand in range(min(T, max_blk), 0, -1):
        if T % cand == 0:
            return cand
    return 1


def _run_recurrent(gi_all, layer_params, cell_type, fc_w_t=None, fc_b=None):
    """gi_all: (T, B, G) f32. Returns (T, B, H) bf16, or (B, O) f32 if fused."""
    T, B, G = gi_all.shape
    H = layer_params["w_hh_t"].shape[0]
    fuse_fc = fc_w_t is not None
    t_blk = _pick_t_block(T)
    n_blk = T // t_blk

    in_specs = [
        pl.BlockSpec((t_blk, B, G), lambda tb: (tb, 0, 0)),   # gi streamed
        pl.BlockSpec((H, G), lambda tb: (0, 0)),              # W_hh resident
    ]
    args = [gi_all, layer_params["w_hh_t"]]
    if cell_type == "gru":
        in_specs.append(pl.BlockSpec((1, H), lambda tb: (0, 0)))
        args.append(layer_params["b_hh_n"])
    if fuse_fc:
        O = fc_w_t.shape[1]
        in_specs += [pl.BlockSpec((H, O), lambda tb: (0, 0)),
                     pl.BlockSpec((1, O), lambda tb: (0, 0))]
        args += [fc_w_t, fc_b]
        out_specs = pl.BlockSpec((B, O), lambda tb: (0, 0))    # resident acc
        out_shape = jax.ShapeDtypeStruct((B, O), jnp.float32)
    else:
        out_specs = pl.BlockSpec((t_blk, B, H), lambda tb: (tb, 0, 0))
        out_shape = jax.ShapeDtypeStruct((T, B, H), jnp.bfloat16)

    kernel = functools.partial(_seq_kernel, cell_type=cell_type,
                               t_blk=t_blk, fuse_fc=fuse_fc)
    return pl.pallas_call(
        kernel,
        out_shape=out_shape,
        grid_spec=pltpu.PrefetchScalarGridSpec(
            num_scalar_prefetch=0,
            grid=(n_blk,),
            in_specs=in_specs,
            out_specs=out_specs,
            scratch_shapes=[pltpu.VMEM((B, H), jnp.float32)],  # carried hidden
        ),
        compiler_params=pltpu.CompilerParams(
            dimension_semantics=("arbitrary",)),               # recurrence
    )(*args)


# --------------------------------------------------------------------------
# Module forward: multi-layer RNN/GRU (h0 = 0) then fc(out[:, -1, :]).
# --------------------------------------------------------------------------
def rnn_forward(x, params, cell_type):
    """x: (B, T, num_features) f32 (batch_first, like the torch module)."""
    h_seq = jnp.transpose(x, (1, 0, 2)).astype(jnp.bfloat16)  # (T, B, F) bf16
    layers = params["layers"]
    out = None
    for li, lp in enumerate(layers):
        gi_all = _input_proj(h_seq, lp["w_ih_t"], lp["b_x"])   # hoisted GEMM
        if li == len(layers) - 1:
            out = _run_recurrent(gi_all, lp, cell_type,
                                 fc_w_t=params["fc_w_t"], fc_b=params["fc_b"])
        else:
            h_seq = _run_recurrent(gi_all, lp, cell_type)      # (T,B,H) bf16
    return out


# --------------------------------------------------------------------------
# Parameter init (torch-style U(-1/sqrt(H), 1/sqrt(H))) + one-time packing:
# transpose to (in, out), cast matmul weights to bf16, pre-sum biases.
# --------------------------------------------------------------------------
def init_params(key, num_features, hidden_size, num_layers, output_size,
                cell_type):
    gate_mult = 3 if cell_type == "gru" else 1
    H = hidden_size
    keys = jax.random.split(key, num_layers * 4 + 2)
    bound = 1.0 / math.sqrt(H)
    u = lambda k, shape: jax.random.uniform(k, shape, jnp.float32, -bound, bound)

    layers = []
    ki = 0
    for layer in range(num_layers):
        in_size = num_features if layer == 0 else H
        G = gate_mult * H
        w_ih = u(keys[ki], (G, in_size)); ki += 1      # torch layout (G, in)
        w_hh = u(keys[ki], (G, H)); ki += 1
        b_ih = u(keys[ki], (G,)); ki += 1
        b_hh = u(keys[ki], (G,)); ki += 1
        lp = {"w_ih_t": jnp.transpose(w_ih).astype(jnp.bfloat16),
              "w_hh_t": jnp.transpose(w_hh).astype(jnp.bfloat16)}
        if cell_type == "gru":
            # b_ih + b_hh for the r/z gates goes into the hoisted bias; b_hh_n
            # must stay inside the candidate term n = tanh(gi_n + r*(gh_n+b_hn)).
            b_x = jnp.concatenate([b_ih[:2 * H] + b_hh[:2 * H], b_ih[2 * H:]])
            lp["b_hh_n"] = b_hh[2 * H:].reshape(1, H)
        else:
            b_x = b_ih + b_hh
        lp["b_x"] = b_x.reshape(1, G)
        layers.append(lp)

    fc_w = u(keys[ki], (output_size, H)); ki += 1
    fc_b = u(keys[ki], (output_size,))
    return {"layers": layers,
            "fc_w_t": jnp.transpose(fc_w).astype(jnp.bfloat16),
            "fc_b": fc_b.reshape(1, output_size)}


# --------------------------------------------------------------------------
# Plain-JAX reference mirroring the kernel numerics (bf16 matmul operands,
# f32 accumulation & gate math, bf16 inter-layer activations) and exact
# torch.nn.GRU / torch.nn.RNN cell math.
# --------------------------------------------------------------------------
def rnn_forward_ref(x, params, cell_type):
    B, T, _ = x.shape
    h_seq = jnp.transpose(x, (1, 0, 2)).astype(jnp.bfloat16)
    h = None
    for lp in params["layers"]:
        H = lp["w_hh_t"].shape[0]
        T_, B_, F_ = h_seq.shape
        gi_all = (jnp.dot(h_seq.reshape(T_ * B_, F_), lp["w_ih_t"],
                          preferred_element_type=jnp.float32)
                  + lp["b_x"]).reshape(T_, B_, -1)
        h = jnp.zeros((B_, H), jnp.float32)
        outs = []
        for t in range(T_):
            gi = gi_all[t]
            gh = jnp.dot(h.astype(jnp.bfloat16), lp["w_hh_t"],
                         preferred_element_type=jnp.float32)
            if cell_type == "gru":
                r = jax.nn.sigmoid(gi[:, :H] + gh[:, :H])
                z = jax.nn.sigmoid(gi[:, H:2 * H] + gh[:, H:2 * H])
                n = jnp.tanh(gi[:, 2 * H:] + r * (gh[:, 2 * H:] + lp["b_hh_n"]))
                h = (1.0 - z) * n + z * h
            else:
                h = jnp.tanh(gi + gh)
            outs.append(h)
        h_seq = jnp.stack(outs, axis=0).astype(jnp.bfloat16)
    return jnp.dot(h.astype(jnp.bfloat16), params["fc_w_t"],
                   preferred_element_type=jnp.float32) + params["fc_b"]


if __name__ == "__main__":
    B, T = 8, 10
    num_features, hidden_size, num_layers, output_size = 16, 32, 2, 4

    key = jax.random.PRNGKey(0)
    k_x, k_gru, k_rnn = jax.random.split(key, 3)
    x = jax.random.normal(k_x, (B, T, num_features), jnp.float32)

    fwd = jax.jit(rnn_forward, static_argnames=("cell_type",))

    for cell_type, k_p in (("gru", k_gru), ("rnn", k_rnn)):
        params = init_params(k_p, num_features, hidden_size, num_layers,
                             output_size, cell_type)
        out = fwd(x, params, cell_type=cell_type)
        jax.block_until_ready(out)

        out_ref = rnn_forward_ref(x, params, cell_type)
        assert out.shape == (B, output_size)
        err = float(jnp.max(jnp.abs(out - out_ref)))
        assert jnp.allclose(out, out_ref, atol=2e-3, rtol=2e-3), (cell_type, err)

    print("KERNEL_OK")
</pallas_src>

<mosaic_0001>
module attributes {stable_mosaic.version = 11 : i64} {
  func.func @_proj_kernel(%arg0: memref<80x32xbf16, #tpu.memory_space<vmem>>, %arg1: memref<32x96xbf16, #tpu.memory_space<vmem>>, %arg2: memref<1x96xf32, #tpu.memory_space<vmem>>, %arg3: memref<80x96xf32, #tpu.memory_space<vmem>>) attributes {dimension_semantics = [], scalar_prefetch = 0 : i64, scratch_operands = 0 : i64, tpu.core_type = #tpu.core_type<tc>} {
    %c0 = arith.constant 0 : index
    %c0_0 = arith.constant 0 : index
    %0 = vector.load %arg0[%c0, %c0_0] : memref<80x32xbf16, #tpu.memory_space<vmem>>, vector<80x32xbf16>
    %c0_1 = arith.constant 0 : index
    %c0_2 = arith.constant 0 : index
    %1 = vector.load %arg1[%c0_1, %c0_2] : memref<32x96xbf16, #tpu.memory_space<vmem>>, vector<32x96xbf16>
    %cst = arith.constant dense<0.000000e+00> : vector<80x96xf32>
    %2 = tpu.matmul %0, %1, %cst {dimension_numbers = #tpu.dot_dimension_numbers<[1], [0], [0], [1], [0, 0, 1, 1], [], []>} : vector<80x32xbf16>, vector<32x96xbf16>, vector<80x96xf32> -> vector<80x96xf32>
    %c0_3 = arith.constant 0 : index
    %c0_4 = arith.constant 0 : index
    %3 = vector.load %arg2[%c0_3, %c0_4] : memref<1x96xf32, #tpu.memory_space<vmem>>, vector<1x96xf32>
    %4 = vector.broadcast %3 : vector<1x96xf32> to vector<80x96xf32>
    %5 = arith.addf %2, %4 : vector<80x96xf32>
    %c0_5 = arith.constant 0 : index
    %c0_6 = arith.constant 0 : index
    %6 = vector.load %arg3[%c0_5, %c0_6] : memref<80x96xf32, #tpu.memory_space<vmem>>, vector<80x96xf32>
    tpu.vector_store %arg3[%c0_5, %c0_6], %5 {strides = array<i32>} : memref<80x96xf32, #tpu.memory_space<vmem>>, vector<80x96xf32>,
    return
  }
}

module attributes {stable_mosaic.version = 11 : i64} {
  func.func @_proj_kernel(%arg0: memref<80x16xbf16, #tpu.memory_space<vmem>>, %arg1: memref<16x96xbf16, #tpu.memory_space<vmem>>, %arg2: memref<1x96xf32, #tpu.memory_space<vmem>>, %arg3: memref<80x96xf32, #tpu.memory_space<vmem>>) attributes {dimension_semantics = [], scalar_prefetch = 0 : i64, scratch_operands = 0 : i64, tpu.core_type = #tpu.core_type<tc>} {
    %c0 = arith.constant 0 : index
    %c0_0 = arith.constant 0 : index
    %0 = vector.load %arg0[%c0, %c0_0] : memref<80x16xbf16, #tpu.memory_space<vmem>>, vector<80x16xbf16>
    %c0_1 = arith.constant 0 : index
    %c0_2 = arith.constant 0 : index
    %1 = vector.load %arg1[%c0_1, %c0_2] : memref<16x96xbf16, #tpu.memory_space<vmem>>, vector<16x96xbf16>
    %cst = arith.constant dense<0.000000e+00> : vector<80x96xf32>
    %2 = tpu.matmul %0, %1, %cst {dimension_numbers = #tpu.dot_dimension_numbers<[1], [0], [0], [1], [0, 0, 1, 1], [], []>} : vector<80x16xbf16>, vector<16x96xbf16>, vector<80x96xf32> -> vector<80x96xf32>
    %c0_3 = arith.constant 0 : index
    %c0_4 = arith.constant 0 : index
    %3 = vector.load %arg2[%c0_3, %c0_4] : memref<1x96xf32, #tpu.memory_space<vmem>>, vector<1x96xf32>
    %4 = vector.broadcast %3 : vector<1x96xf32> to vector<80x96xf32>
    %5 = arith.addf %2, %4 : vector<80x96xf32>
    %c0_5 = arith.constant 0 : index
    %c0_6 = arith.constant 0 : index
    %6 = vector.load %arg3[%c0_5, %c0_6] : memref<80x96xf32, #tpu.memory_space<vmem>>, vector<80x96xf32>
    tpu.vector_store %arg3[%c0_5, %c0_6], %5 {strides = array<i32>} : memref<80x96xf32, #tpu.memory_space<vmem>>, vector<80x96xf32>,
    return
  }
}

module attributes {stable_mosaic.version = 11 : i64} {
  func.func @_seq_kernel(%arg0: i32, %arg1: memref<10x8x96xf32, #tpu.memory_space<vmem>>, %arg2: memref<32x96xbf16, #tpu.memory_space<vmem>>, %arg3: memref<1x32xf32, #tpu.memory_space<vmem>>, %arg4: memref<10x8x32xbf16, #tpu.memory_space<vmem>>, %arg5: memref<8x32xf32, #tpu.memory_space<vmem>>) attributes {dimension_semantics = [#tpu.dimension_semantics<arbitrary>], iteration_bounds = array<i64: 1>, scalar_prefetch = 0 : i64, scratch_operands = 1 : i64, tpu.core_type = #tpu.core_type<tc>, window_params = [{transform_indices = @transform_0, window_bounds = array<i64: 10, 8, 96>}, {pipeline_mode = #tpu.pipeline_mode<synchronous>, transform_indices = @transform_1, window_bounds = array<i64: 32, 96>}, {pipeline_mode = #tpu.pipeline_mode<synchronous>, transform_indices = @transform_2, window_bounds = array<i64: 1, 32>}, {transform_indices = @transform_3, window_bounds = array<i64: 10, 8, 32>}]} {
    %c0_i32 = arith.constant 0 : i32
    %0 = arith.cmpi eq, %arg0, %c0_i32 : i32
    %1 = arith.extui %0 : i1 to i32
    %c0_i32_0 = arith.constant 0 : i32
    %2 = arith.cmpi ne, %1, %c0_i32_0 : i32
    scf.if %2 {
      %cst_160 = arith.constant 0.000000e+00 : f32
      %423 = vector.broadcast %cst_160 : f32 to vector<8x32xf32>
      %c0_161 = arith.constant 0 : index
      %c0_162 = arith.constant 0 : index
      %424 = vector.load %arg5[%c0_161, %c0_162] : memref<8x32xf32, #tpu.memory_space<vmem>>, vector<8x32xf32>
      tpu.vector_store %arg5[%c0_161, %c0_162], %423 {strides = array<i32>} : memref<8x32xf32, #tpu.memory_space<vmem>>, vector<8x32xf32>,
    } else {
    }
    %c0_i32_1 = arith.constant 0 : i32
    %c0 = arith.constant 0 : index
    %c0_2 = arith.constant 0 : index
    %3 = vector.load %arg5[%c0, %c0_2] : memref<8x32xf32, #tpu.memory_space<vmem>>, vector<8x32xf32>
    %4 = arith.index_cast %c0_i32_1 : i32 to index
    %c0_3 = arith.constant 0 : index
    %c0_4 = arith.constant 0 : index
    %5 = vector.load %arg1[%4, %c0_3, %c0_4] : memref<10x8x96xf32, #tpu.memory_space<vmem>>, vector<1x8x96xf32>
    %6 = vector.shape_cast %5 : vector<1x8x96xf32> to vector<8x96xf32>
    %7 = arith.truncf %3 : vector<8x32xf32> to vector<8x32xbf16>
    %c0_5 = arith.constant 0 : index
    %c0_6 = arith.constant 0 : index
    %8 = vector.load %arg2[%c0_5, %c0_6] : memref<32x96xbf16, #tpu.memory_space<vmem>>, vector<32x96xbf16>
    %cst = arith.constant dense<0.000000e+00> : vector<8x96xf32>
    %9 = tpu.matmul %7, %8, %cst {dimension_numbers = #tpu.dot_dimension_numbers<[1], [0], [0], [1], [0, 0, 1, 1], [], []>} : vector<8x32xbf16>, vector<32x96xbf16>, vector<8x96xf32> -> vector<8x96xf32>
    %10 = vector.extract_strided_slice %6 {offsets = [0, 0], sizes = [8, 32], strides = [1, 1]} : vector<8x96xf32> to vector<8x32xf32>
    %11 = vector.extract_strided_slice %9 {offsets = [0, 0], sizes = [8, 32], strides = [1, 1]} : vector<8x96xf32> to vector<8x32xf32>
    %12 = arith.addf %10, %11 : vector<8x32xf32>
    %13 = arith.negf %12 : vector<8x32xf32>
    %14 = math.exp %13 : vector<8x32xf32>
    %cst_7 = arith.constant 1.000000e+00 : f32
    %15 = vector.broadcast %cst_7 : f32 to vector<8x32xf32>
    %16 = arith.addf %15, %14 : vector<8x32xf32>
    %17 = arith.divf %15, %16 : vector<8x32xf32>
    %18 = vector.extract_strided_slice %6 {offsets = [0, 32], sizes = [8, 32], strides = [1, 1]} : vector<8x96xf32> to vector<8x32xf32>
    %19 = vector.extract_strided_slice %9 {offsets = [0, 32], sizes = [8, 32], strides = [1, 1]} : vector<8x96xf32> to vector<8x32xf32>
    %20 = arith.addf %18, %19 : vector<8x32xf32>
    %21 = arith.negf %20 : vector<8x32xf32>
    %22 = math.exp %21 : vector<8x32xf32>
    %cst_8 = arith.constant 1.000000e+00 : f32
    %23 = vector.broadcast %cst_8 : f32 to vector<8x32xf32>
    %24 = arith.addf %23, %22 : vector<8x32xf32>
    %25 = arith.divf %23, %24 : vector<8x32xf32>
    %26 = vector.extract_strided_slice %6 {offsets = [0, 64], sizes = [8, 32], strides = [1, 1]} : vector<8x96xf32> to vector<8x32xf32>
    %27 = vector.extract_strided_slice %9 {offsets = [0, 64], sizes = [8, 32], strides = [1, 1]} : vector<8x96xf32> to vector<8x32xf32>
    %c0_9 = arith.constant 0 : index
    %c0_10 = arith.constant 0 : index
    %28 = vector.load %arg3[%c0_9, %c0_10] : memref<1x32xf32, #tpu.memory_space<vmem>>, vector<1x32xf32>
    %29 = vector.broadcast %28 : vector<1x32xf32> to vector<8x32xf32>
    %30 = arith.addf %27, %29 : vector<8x32xf32>
    %31 = arith.mulf %17, %30 : vector<8x32xf32>
    %32 = arith.addf %26, %31 : vector<8x32xf32>
    %33 = math.tanh %32 : vector<8x32xf32>
    %cst_11 = arith.constant 1.000000e+00 : f32
    %34 = vector.broadcast %cst_11 : f32 to vector<8x32xf32>
    %35 = arith.subf %34, %25 : vector<8x32xf32>
    %36 = arith.mulf %35, %33 : vector<8x32xf32>
    %37 = arith.mulf %25, %3 : vector<8x32xf32>
    %38 = arith.addf %36, %37 : vector<8x32xf32>
    %c0_12 = arith.constant 0 : index
    %c0_13 = arith.constant 0 : index
    %39 = vector.load %arg5[%c0_12, %c0_13] : memref<8x32xf32, #tpu.memory_space<vmem>>, vector<8x32xf32>
    tpu.vector_store %arg5[%c0_12, %c0_13], %38 {strides = array<i32>} : memref<8x32xf32, #tpu.memory_space<vmem>>, vector<8x32xf32>,
    %40 = arith.truncf %38 : vector<8x32xf32> to vector<8x32xbf16>
    %41 = arith.index_cast %c0_i32_1 : i32 to index
    %c0_14 = arith.constant 0 : index
    %c0_15 = arith.constant 0 : index
    %42 = vector.load %arg4[%41, %c0_14, %c0_15] : memref<10x8x32xbf16, #tpu.memory_space<vmem>>, vector<1x8x32xbf16>
    %43 = vector.shape_cast %42 : vector<1x8x32xbf16> to vector<8x32xbf16>
    %44 = vector.shape_cast %40 : vector<8x32xbf16> to vector<1x8x32xbf16>
    tpu.vector_store %arg4[%41, %c0_14, %c0_15], %44 {strides = array<i32>} : memref<10x8x32xbf16, #tpu.memory_space<vmem>>, vector<1x8x32xbf16>,
    %c1_i32 = arith.constant 1 : i32
    %c0_16 = arith.constant 0 : index
    %c0_17 = arith.constant 0 : index
    %45 = vector.load %arg5[%c0_16, %c0_17] : memref<8x32xf32, #tpu.memory_space<vmem>>, vector<8x32xf32>
    %46 = arith.index_cast %c1_i32 : i32 to index
    %c0_18 = arith.constant 0 : index
    %c0_19 = arith.constant 0 : index
    %47 = vector.load %arg1[%46, %c0_18, %c0_19] : memref<10x8x96xf32, #tpu.memory_space<vmem>>, vector<1x8x96xf32>
    %48 = vector.shape_cast %47 : vector<1x8x96xf32> to vector<8x96xf32>
    %49 = arith.truncf %45 : vector<8x32xf32> to vector<8x32xbf16>
    %c0_20 = arith.constant 0 : index
    %c0_21 = arith.constant 0 : index
    %50 = vector.load %arg2[%c0_20, %c0_21] : memref<32x96xbf16, #tpu.memory_space<vmem>>, vector<32x96xbf16>
    %cst_22 = arith.constant dense<0.000000e+00> : vector<8x96xf32>
    %51 = tpu.matmul %49, %50, %cst_22 {dimension_numbers = #tpu.dot_dimension_numbers<[1], [0], [0], [1], [0, 0, 1, 1], [], []>} : vector<8x32xbf16>, vector<32x96xbf16>, vector<8x96xf32> -> vector<8x96xf32>
    %52 = vector.extract_strided_slice %48 {offsets = [0, 0], sizes = [8, 32], strides = [1, 1]} : vector<8x96xf32> to vector<8x32xf32>
    %53 = vector.extract_strided_slice %51 {offsets = [0, 0], sizes = [8, 32], strides = [1, 1]} : vector<8x96xf32> to vector<8x32xf32>
    %54 = arith.addf %52, %53 : vector<8x32xf32>
    %55 = arith.negf %54 : vector<8x32xf32>
    %56 = math.exp %55 : vector<8x32xf32>
    %cst_23 = arith.constant 1.000000e+00 : f32
    %57 = vector.broadcast %cst_23 : f32 to vector<8x32xf32>
    %58 = arith.addf %57, %56 : vector<8x32xf32>
    %59 = arith.divf %57, %58 : vector<8x32xf32>
    %60 = vector.extract_strided_slice %48 {offsets = [0, 32], sizes = [8, 32], strides = [1, 1]} : vector<8x96xf32> to vector<8x32xf32>
    %61 = vector.extract_strided_slice %51 {offsets = [0, 32], sizes = [8, 32], strides = [1, 1]} : vector<8x96xf32> to vector<8x32xf32>
    %62 = arith.addf %60, %61 : vector<8x32xf32>
    %63 = arith.negf %62 : vector<8x32xf32>
    %64 = math.exp %63 : vector<8x32xf32>
    %cst_24 = arith.constant 1.000000e+00 : f32
    %65 = vector.broadcast %cst_24 : f32 to vector<8x32xf32>
    %66 = arith.addf %65, %64 : vector<8x32xf32>
    %67 = arith.divf %65, %66 : vector<8x32xf32>
    %68 = vector.extract_strided_slice %48 {offsets = [0, 64], sizes = [8, 32], strides = [1, 1]} : vector<8x96xf32> to vector<8x32xf32>
    %69 = vector.extract_strided_slice %51 {offsets = [0, 64], sizes = [8, 32], strides = [1, 1]} : vector<8x96xf32> to vector<8x32xf32>
    %c0_25 = arith.constant 0 : index
    %c0_26 = arith.constant 0 : index
    %70 = vector.load %arg3[%c0_25, %c0_26] : memref<1x32xf32, #tpu.memory_space<vmem>>, vector<1x32xf32>
    %71 = vector.broadcast %70 : vector<1x32xf32> to vector<8x32xf32>
    %72 = arith.addf %69, %71 : vector<8x32xf32>
    %73 = arith.mulf %59, %72 : vector<8x32xf32>
    %74 = arith.addf %68, %73 : vector<8x32xf32>
    %75 = math.tanh %74 : vector<8x32xf32>
    %cst_27 = arith.constant 1.000000e+00 : f32
    %76 = vector.broadcast %cst_27 : f32 to vector<8x32xf32>
    %77 = arith.subf %76, %67 : vector<8x32xf32>
    %78 = arith.mulf %77, %75 : vector<8x32xf32>
    %79 = arith.mulf %67, %45 : vector<8x32xf32>
    %80 = arith.addf %78, %79 : vector<8x32xf32>
    %c0_28 = arith.constant 0 : index
    %c0_29 = arith.constant 0 : index
    %81 = vector.load %arg5[%c0_28, %c0_29] : memref<8x32xf32, #tpu.memory_space<vmem>>, vector<8x32xf32>
    tpu.vector_store %arg5[%c0_28, %c0_29], %80 {strides = array<i32>} : memref<8x32xf32, #tpu.memory_space<vmem>>, vector<8x32xf32>,
    %82 = arith.truncf %80 : vector<8x32xf32> to vector<8x32xbf16>
    %83 = arith.index_cast %c1_i32 : i32 to index
    %c0_30 = arith.constant 0 : index
    %c0_31 = arith.constant 0 : index
    %84 = vector.load %arg4[%83, %c0_30, %c0_31] : memref<10x8x32xbf16, #tpu.memory_space<vmem>>, vector<1x8x32xbf16>
    %85 = vector.shape_cast %84 : vector<1x8x32xbf16> to vector<8x32xbf16>
    %86 = vector.shape_cast %82 : vector<8x32xbf16> to vector<1x8x32xbf16>
    tpu.vector_store %arg4[%83, %c0_30, %c0_31], %86 {strides = array<i32>} : memref<10x8x32xbf16, #tpu.memory_space<vmem>>, vector<1x8x32xbf16>,
    %c2_i32 = arith.constant 2 : i32
    %c0_32 = arith.constant 0 : index
    %c0_33 = arith.constant 0 : index
    %87 = vector.load %arg5[%c0_32, %c0_33] : memref<8x32xf32, #tpu.memory_space<vmem>>, vector<8x32xf32>
    %88 = arith.index_cast %c2_i32 : i32 to index
    %c0_34 = arith.constant 0 : index
    %c0_35 = arith.constant 0 : index
    %89 = vector.load %arg1[%88, %c0_34, %c0_35] : memref<10x8x96xf32, #tpu.memory_space<vmem>>, vector<1x8x96xf32>
    %90 = vector.shape_cast %89 : vector<1x8x96xf32> to vector<8x96xf32>
    %91 = arith.truncf %87 : vector<8x32xf32> to vector<8x32xbf16>
    %c0_36 = arith.constant 0 : index
    %c0_37 = arith.constant 0 : index
    %92 = vector.load %arg2[%c0_36, %c0_37] : memref<32x96xbf16, #tpu.memory_space<vmem>>, vector<32x96xbf16>
    %cst_38 = arith.constant dense<0.000000e+00> : vector<8x96xf32>
    %93 = tpu.matmul %91, %92, %cst_38 {dimension_numbers = #tpu.dot_dimension_numbers<[1], [0], [0], [1], [0, 0, 1, 1], [], []>} : vector<8x32xbf16>, vector<32x96xbf16>, vector<8x96xf32> -> vector<8x96xf32>
    %94 = vector.extract_strided_slice %90 {offsets = [0, 0], sizes = [8, 32], strides = [1, 1]} : vector<8x96xf32> to vector<8x32xf32>
    %95 = vector.extract_strided_slice %93 {offsets = [0, 0], sizes = [8, 32], strides = [1, 1]} : vector<8x96xf32> to vector<8x32xf32>
    %96 = arith.addf %94, %95 : vector<8x32xf32>
    %97 = arith.negf %96 : vector<8x32xf32>
    %98 = math.exp %97 : vector<8x32xf32>
    %cst_39 = arith.constant 1.000000e+00 : f32
    %99 = vector.broadcast %cst_39 : f32 to vector<8x32xf32>
    %100 = arith.addf %99, %98 : vector<8x32xf32>
    %101 = arith.divf %99, %100 : vector<8x32xf32>
    %102 = vector.extract_strided_slice %90 {offsets = [0, 32], sizes = [8, 32], strides = [1, 1]} : vector<8x96xf32> to vector<8x32xf32>
    %103 = vector.extract_strided_slice %93 {offsets = [0, 32], sizes = [8, 32], strides = [1, 1]} : vector<8x96xf32> to vector<8x32xf32>
    %104 = arith.addf %102, %103 : vector<8x32xf32>
    %105 = arith.negf %104 : vector<8x32xf32>
    %106 = math.exp %105 : vector<8x32xf32>
    %cst_40 = arith.constant 1.000000e+00 : f32
    %107 = vector.broadcast %cst_40 : f32 to vector<8x32xf32>
    %108 = arith.addf %107, %106 : vector<8x32xf32>
    %109 = arith.divf %107, %108 : vector<8x32xf32>
    %110 = vector.extract_strided_slice %90 {offsets = [0, 64], sizes = [8, 32], strides = [1, 1]} : vector<8x96xf32> to vector<8x32xf32>
    %111 = vector.extract_strided_slice %93 {offsets = [0, 64], sizes = [8, 32], strides = [1, 1]} : vector<8x96xf32> to vector<8x32xf32>
    %c0_41 = arith.constant 0 : index
    %c0_42 = arith.constant 0 : index
    %112 = vector.load %arg3[%c0_41, %c0_42] : memref<1x32xf32, #tpu.memory_space<vmem>>, vector<1x32xf32>
    %113 = vector.broadcast %112 : vector<1x32xf32> to vector<8x32xf32>
    %114 = arith.addf %111, %113 : vector<8x32xf32>
    %115 = arith.mulf %101, %114 : vector<8x32xf32>
    %116 = arith.addf %110, %115 : vector<8x32xf32>
    %117 = math.tanh %116 : vector<8x32xf32>
    %cst_43 = arith.constant 1.000000e+00 : f32
    %118 = vector.broadcast %cst_43 : f32 to vector<8x32xf32>
    %119 = arith.subf %118, %109 : vector<8x32xf32>
    %120 = arith.mulf %119, %117 : vector<8x32xf32>
    %121 = arith.mulf %109, %87 : vector<8x32xf32>
    %122 = arith.addf %120, %121 : vector<8x32xf32>
    %c0_44 = arith.constant 0 : index
    %c0_45 = arith.constant 0 : index
    %123 = vector.load %arg5[%c0_44, %c0_45] : memref<8x32xf32, #tpu.memory_space<vmem>>, vector<8x32xf32>
    tpu.vector_store %arg5[%c0_44, %c0_45], %122 {strides = array<i32>} : memref<8x32xf32, #tpu.memory_space<vmem>>, vector<8x32xf32>,
    %124 = arith.truncf %122 : vector<8x32xf32> to vector<8x32xbf16>
    %125 = arith.index_cast %c2_i32 : i32 to index
    %c0_46 = arith.constant 0 : index
    %c0_47 = arith.constant 0 : index
    %126 = vector.load %arg4[%125, %c0_46, %c0_47] : memref<10x8x32xbf16, #tpu.memory_space<vmem>>, vector<1x8x32xbf16>
    %127 = vector.shape_cast %126 : vector<1x8x32xbf16> to vector<8x32xbf16>
    %128 = vector.shape_cast %124 : vector<8x32xbf16> to vector<1x8x32xbf16>
    tpu.vector_store %arg4[%125, %c0_46, %c0_47], %128 {strides = array<i32>} : memref<10x8x32xbf16, #tpu.memory_space<vmem>>, vector<1x8x32xbf16>,
    %c3_i32 = arith.constant 3 : i32
    %c0_48 = arith.constant 0 : index
    %c0_49 = arith.constant 0 : index
    %129 = vector.load %arg5[%c0_48, %c0_49] : memref<8x32xf32, #tpu.memory_space<vmem>>, vector<8x32xf32>
    %130 = arith.index_cast %c3_i32 : i32 to index
    %c0_50 = arith.constant 0 : index
    %c0_51 = arith.constant 0 : index
    %131 = vector.load %arg1[%130, %c0_50, %c0_51] : memref<10x8x96xf32, #tpu.memory_space<vmem>>, vector<1x8x96xf32>
    %132 = vector.shape_cast %131 : vector<1x8x96xf32> to vector<8x96xf32>
    %133 = arith.truncf %129 : vector<8x32xf32> to vector<8x32xbf16>
    %c0_52 = arith.constant 0 : index
    %c0_53 = arith.constant 0 : index
    %134 = vector.load %arg2[%c0_52, %c0_53] : memref<32x96xbf16, #tpu.memory_space<vmem>>, vector<32x96xbf16>
    %cst_54 = arith.constant dense<0.000000e+00> : vector<8x96xf32>
    %135 = tpu.matmul %133, %134, %cst_54 {dimension_numbers = #tpu.dot_dimension_numbers<[1], [0], [0], [1], [0, 0, 1, 1], [], []>} : vector<8x32xbf16>, vector<32x96xbf16>, vector<8x96xf32> -> vector<8x96xf32>
    %136 = vector.extract_strided_slice %132 {offsets = [0, 0], sizes = [8, 32], strides = [1, 1]} : vector<8x96xf32> to vector<8x32xf32>
    %137 = vector.extract_strided_slice %135 {offsets = [0, 0], sizes = [8, 32], strides = [1, 1]} : vector<8x96xf32> to vector<8x32xf32>
    %138 = arith.addf %136, %137 : vector<8x32xf32>
    %139 = arith.negf %138 : vector<8x32xf32>
    %140 = math.exp %139 : vector<8x32xf32>
    %cst_55 = arith.constant 1.000000e+00 : f32
    %141 = vector.broadcast %cst_55 : f32 to vector<8x32xf32>
    %142 = arith.addf %141, %140 : vector<8x32xf32>
    %143 = arith.divf %141, %142 : vector<8x32xf32>
    %144 = vector.extract_strided_slice %132 {offsets = [0, 32], sizes = [8, 32], strides = [1, 1]} : vector<8x96xf32> to vector<8x32xf32>
    %145 = vector.extract_strided_slice %135 {offsets = [0, 32], sizes = [8, 32], strides = [1, 1]} : vector<8x96xf32> to vector<8x32xf32>
    %146 = arith.addf %144, %145 : vector<8x32xf32>
    %147 = arith.negf %146 : vector<8x32xf32>
    %148 = math.exp %147 : vector<8x32xf32>
    %cst_56 = arith.constant 1.000000e+00 : f32
    %149 = vector.broadcast %cst_56 : f32 to vector<8x32xf32>
    %150 = arith.addf %149, %148 : vector<8x32xf32>
    %151 = arith.divf %149, %150 : vector<8x32xf32>
    %152 = vector.extract_strided_slice %132 {offsets = [0, 64], sizes = [8, 32], strides = [1, 1]} : vector<8x96xf32> to vector<8x32xf32>
    %153 = vector.extract_strided_slice %135 {offsets = [0, 64], sizes = [8, 32], strides = [1, 1]} : vector<8x96xf32> to vector<8x32xf32>
    %c0_57 = arith.constant 0 : index
    %c0_58 = arith.constant 0 : index
    %154 = vector.load %arg3[%c0_57, %c0_58] : memref<1x32xf32, #tpu.memory_space<vmem>>, vector<1x32xf32>
    %155 = vector.broadcast %154 : vector<1x32xf32> to vector<8x32xf32>
    %156 = arith.addf %153, %155 : vector<8x32xf32>
    %157 = arith.mulf %143, %156 : vector<8x32xf32>
    %158 = arith.addf %152, %157 : vector<8x32xf32>
    %159 = math.tanh %158 : vector<8x32xf32>
    %cst_59 = arith.constant 1.000000e+00 : f32
    %160 = vector.broadcast %cst_59 : f32 to vector<8x32xf32>
    %161 = arith.subf %160, %151 : vector<8x32xf32>
    %162 = arith.mulf %161, %159 : vector<8x32xf32>
    %163 = arith.mulf %151, %129 : vector<8x32xf32>
    %164 = arith.addf %162, %163 : vector<8x32xf32>
    %c0_60 = arith.constant 0 : index
    %c0_61 = arith.constant 0 : index
    %165 = vector.load %arg5[%c0_60, %c0_61] : memref<8x32xf32, #tpu.memory_space<vmem>>, vector<8x32xf32>
    tpu.vector_store %arg5[%c0_60, %c0_61], %164 {strides = array<i32>} : memref<8x32xf32, #tpu.memory_space<vmem>>, vector<8x32xf32>,
    %166 = arith.truncf %164 : vector<8x32xf32> to vector<8x32xbf16>
    %167 = arith.index_cast %c3_i32 : i32 to index
    %c0_62 = arith.constant 0 : index
    %c0_63 = arith.constant 0 : index
    %168 = vector.load %arg4[%167, %c0_62, %c0_63] : memref<10x8x32xbf16, #tpu.memory_space<vmem>>, vector<1x8x32xbf16>
    %169 = vector.shape_cast %168 : vector<1x8x32xbf16> to vector<8x32xbf16>
    %170 = vector.shape_cast %166 : vector<8x32xbf16> to vector<1x8x32xbf16>
    tpu.vector_store %arg4[%167, %c0_62, %c0_63], %170 {strides = array<i32>} : memref<10x8x32xbf16, #tpu.memory_space<vmem>>, vector<1x8x32xbf16>,
    %c4_i32 = arith.constant 4 : i32
    %c0_64 = arith.constant 0 : index
    %c0_65 = arith.constant 0 : index
    %171 = vector.load %arg5[%c0_64, %c0_65] : memref<8x32xf32, #tpu.memory_space<vmem>>, vector<8x32xf32>
    %172 = arith.index_cast %c4_i32 : i32 to index
    %c0_66 = arith.constant 0 : index
    %c0_67 = arith.constant 0 : index
    %173 = vector.load %arg1[%172, %c0_66, %c0_67] : memref<10x8x96xf32, #tpu.memory_space<vmem>>, vector<1x8x96xf32>
    %174 = vector.shape_cast %173 : vector<1x8x96xf32> to vector<8x96xf32>
    %175 = arith.truncf %171 : vector<8x32xf32> to vector<8x32xbf16>
    %c0_68 = arith.constant 0 : index
    %c0_69 = arith.constant 0 : index
    %176 = vector.load %arg2[%c0_68, %c0_69] : memref<32x96xbf16, #tpu.memory_space<vmem>>, vector<32x96xbf16>
    %cst_70 = arith.constant dense<0.000000e+00> : vector<8x96xf32>
    %177 = tpu.matmul %175, %176, %cst_70 {dimension_numbers = #tpu.dot_dimension_numbers<[1], [0], [0], [1], [0, 0, 1, 1], [], []>} : vector<8x32xbf16>, vector<32x96xbf16>, vector<8x96xf32> -> vector<8x96xf32>
    %178 = vector.extract_strided_slice %174 {offsets = [0, 0], sizes = [8, 32], strides = [1, 1]} : vector<8x96xf32> to vector<8x32xf32>
    %179 = vector.extract_strided_slice %177 {offsets = [0, 0], sizes = [8, 32], strides = [1, 1]} : vector<8x96xf32> to vector<8x32xf32>
    %180 = arith.addf %178, %179 : vector<8x32xf32>
    %181 = arith.negf %180 : vector<8x32xf32>
    %182 = math.exp %181 : vector<8x32xf32>
    %cst_71 = arith.constant 1.000000e+00 : f32
    %183 = vector.broadcast %cst_71 : f32 to vector<8x32xf32>
    %184 = arith.addf %183, %182 : vector<8x32xf32>
    %185 = arith.divf %183, %184 : vector<8x32xf32>
    %186 = vector.extract_strided_slice %174 {offsets = [0, 32], sizes = [8, 32], strides = [1, 1]} : vector<8x96xf32> to vector<8x32xf32>
    %187 = vector.extract_strided_slice %177 {offsets = [0, 32], sizes = [8, 32], strides = [1, 1]} : vector<8x96xf32> to vector<8x32xf32>
    %188 = arith.addf %186, %187 : vector<8x32xf32>
    %189 = arith.negf %188 : vector<8x32xf32>
    %190 = math.exp %189 : vector<8x32xf32>
    %cst_72 = arith.constant 1.000000e+00 : f32
    %191 = vector.broadcast %cst_72 : f32 to vector<8x32xf32>
    %192 = arith.addf %191, %190 : vector<8x32xf32>
    %193 = arith.divf %191, %192 : vector<8x32xf32>
    %194 = vector.extract_strided_slice %174 {offsets = [0, 64], sizes = [8, 32], strides = [1, 1]} : vector<8x96xf32> to vector<8x32xf32>
    %195 = vector.extract_strided_slice %177 {offsets = [0, 64], sizes = [8, 32], strides = [1, 1]} : vector<8x96xf32> to vector<8x32xf32>
    %c0_73 = arith.constant 0 : index
    %c0_74 = arith.constant 0 : index
    %196 = vector.load %arg3[%c0_73, %c0_74] : memref<1x32xf32, #tpu.memory_space<vmem>>, vector<1x32xf32>
    %197 = vector.broadcast %196 : vector<1x32xf32> to vector<8x32xf32>
    %198 = arith.addf %195, %197 : vector<8x32xf32>
    %199 = arith.mulf %185, %198 : vector<8x32xf32>
    %200 = arith.addf %194, %199 : vector<8x32xf32>
    %201 = math.tanh %200 : vector<8x32xf32>
    %cst_75 = arith.constant 1.000000e+00 : f32
    %202 = vector.broadcast %cst_75 : f32 to vector<8x32xf32>
    %203 = arith.subf %202, %193 : vector<8x32xf32>
    %204 = arith.mulf %203, %201 : vector<8x32xf32>
    %205 = arith.mulf %193, %171 : vector<8x32xf32>
    %206 = arith.addf %204, %205 : vector<8x32xf32>
    %c0_76 = arith.constant 0 : index
    %c0_77 = arith.constant 0 : index
    %207 = vector.load %arg5[%c0_76, %c0_77] : memref<8x32xf32, #tpu.memory_space<vmem>>, vector<8x32xf32>
    tpu.vector_store %arg5[%c0_76, %c0_77], %206 {strides = array<i32>} : memref<8x32xf32, #tpu.memory_space<vmem>>, vector<8x32xf32>,
    %208 = arith.truncf %206 : vector<8x32xf32> to vector<8x32xbf16>
    %209 = arith.index_cast %c4_i32 : i32 to index
    %c0_78 = arith.constant 0 : index
    %c0_79 = arith.constant 0 : index
    %210 = vector.load %arg4[%209, %c0_78, %c0_79] : memref<10x8x32xbf16, #tpu.memory_space<vmem>>, vector<1x8x32xbf16>
    %211 = vector.shape_cast %210 : vector<1x8x32xbf16> to vector<8x32xbf16>
    %212 = vector.shape_cast %208 : vector<8x32xbf16> to vector<1x8x32xbf16>
    tpu.vector_store %arg4[%209, %c0_78, %c0_79], %212 {strides = array<i32>} : memref<10x8x32xbf16, #tpu.memory_space<vmem>>, vector<1x8x32xbf16>,
    %c5_i32 = arith.constant 5 : i32
    %c0_80 = arith.constant 0 : index
    %c0_81 = arith.constant 0 : index
    %213 = vector.load %arg5[%c0_80, %c0_81] : memref<8x32xf32, #tpu.memory_space<vmem>>, vector<8x32xf32>
    %214 = arith.index_cast %c5_i32 : i32 to index
    %c0_82 = arith.constant 0 : index
    %c0_83 = arith.constant 0 : index
    %215 = vector.load %arg1[%214, %c0_82, %c0_83] : memref<10x8x96xf32, #tpu.memory_space<vmem>>, vector<1x8x96xf32>
    %216 = vector.shape_cast %215 : vector<1x8x96xf32> to vector<8x96xf32>
    %217 = arith.truncf %213 : vector<8x32xf32> to vector<8x32xbf16>
    %c0_84 = arith.constant 0 : index
    %c0_85 = arith.constant 0 : index
    %218 = vector.load %arg2[%c0_84, %c0_85] : memref<32x96xbf16, #tpu.memory_space<vmem>>, vector<32x96xbf16>
    %cst_86 = arith.constant dense<0.000000e+00> : vector<8x96xf32>
    %219 = tpu.matmul %217, %218, %cst_86 {dimension_numbers = #tpu.dot_dimension_numbers<[1], [0], [0], [1], [0, 0, 1, 1], [], []>} : vector<8x32xbf16>, vector<32x96xbf16>, vector<8x96xf32> -> vector<8x96xf32>
    %220 = vector.extract_strided_slice %216 {offsets = [0, 0], sizes = [8, 32], strides = [1, 1]} : vector<8x96xf32> to vector<8x32xf32>
    %221 = vector.extract_strided_slice %219 {offsets = [0, 0], sizes = [8, 32], strides = [1, 1]} : vector<8x96xf32> to vector<8x32xf32>
    %222 = arith.addf %220, %221 : vector<8x32xf32>
    %223 = arith.negf %222 : vector<8x32xf32>
    %224 = math.exp %223 : vector<8x32xf32>
    %cst_87 = arith.constant 1.000000e+00 : f32
    %225 = vector.broadcast %cst_87 : f32 to vector<8x32xf32>
    %226 = arith.addf %225, %224 : vector<8x32xf32>
    %227 = arith.divf %225, %226 : vector<8x32xf32>
    %228 = vector.extract_strided_slice %216 {offsets = [0, 32], sizes = [8, 32], strides = [1, 1]} : vector<8x96xf32> to vector<8x32xf32>
    %229 = vector.extract_strided_slice %219 {offsets = [0, 32], sizes = [8, 32], strides = [1, 1]} : vector<8x96xf32> to vector<8x32xf32>
    %230 = arith.addf %228, %229 : vector<8x32xf32>
    %231 = arith.negf %230 : vector<8x32xf32>
    %232 = math.exp %231 : vector<8x32xf32>
    %cst_88 = arith.constant 1.000000e+00 : f32
    %233 = vector.broadcast %cst_88 : f32 to vector<8x32xf32>
    %234 = arith.addf %233, %232 : vector<8x32xf32>
    %235 = arith.divf %233, %234 : vector<8x32xf32>
    %236 = vector.extract_strided_slice %216 {offsets = [0, 64], sizes = [8, 32], strides = [1, 1]} : vector<8x96xf32> to vector<8x32xf32>
    %237 = vector.extract_strided_slice %219 {offsets = [0, 64], sizes = [8, 32], strides = [1, 1]} : vector<8x96xf32> to vector<8x32xf32>
    %c0_89 = arith.constant 0 : index
    %c0_90 = arith.constant 0 : index
    %238 = vector.load %arg3[%c0_89, %c0_90] : memref<1x32xf32, #tpu.memory_space<vmem>>, vector<1x32xf32>
    %239 = vector.broadcast %238 : vector<1x32xf32> to vector<8x32xf32>
    %240 = arith.addf %237, %239 : vector<8x32xf32>
    %241 = arith.mulf %227, %240 : vector<8x32xf32>
    %242 = arith.addf %236, %241 : vector<8x32xf32>
    %243 = math.tanh %242 : vector<8x32xf32>
    %cst_91 = arith.constant 1.000000e+00 : f32
    %244 = vector.broadcast %cst_91 : f32 to vector<8x32xf32>
    %245 = arith.subf %244, %235 : vector<8x32xf32>
    %246 = arith.mulf %245, %243 : vector<8x32xf32>
    %247 = arith.mulf %235, %213 : vector<8x32xf32>
    %248 = arith.addf %246, %247 : vector<8x32xf32>
    %c0_92 = arith.constant 0 : index
    %c0_93 = arith.constant 0 : index
    %249 = vector.load %arg5[%c0_92, %c0_93] : memref<8x32xf32, #tpu.memory_space<vmem>>, vector<8x32xf32>
    tpu.vector_store %arg5[%c0_92, %c0_93], %248 {strides = array<i32>} : memref<8x32xf32, #tpu.memory_space<vmem>>, vector<8x32xf32>,
    %250 = arith.truncf %248 : vector<8x32xf32> to vector<8x32xbf16>
    %251 = arith.index_cast %c5_i32 : i32 to index
    %c0_94 = arith.constant 0 : index
    %c0_95 = arith.constant 0 : index
    %252 = vector.load %arg4[%251, %c0_94, %c0_95] : memref<10x8x32xbf16, #tpu.memory_space<vmem>>, vector<1x8x32xbf16>
    %253 = vector.shape_cast %252 : vector<1x8x32xbf16> to vector<8x32xbf16>
    %254 = vector.shape_cast %250 : vector<8x32xbf16> to vector<1x8x32xbf16>
    tpu.vector_store %arg4[%251, %c0_94, %c0_95], %254 {strides = array<i32>} : memref<10x8x32xbf16, #tpu.memory_space<vmem>>, vector<1x8x32xbf16>,
    %c6_i32 = arith.constant 6 : i32
    %c0_96 = arith.constant 0 : index
    %c0_97 = arith.constant 0 : index
    %255 = vector.load %arg5[%c0_96, %c0_97] : memref<8x32xf32, #tpu.memory_space<vmem>>, vector<8x32xf32>
    %256 = arith.index_cast %c6_i32 : i32 to index
    %c0_98 = arith.constant 0 : index
    %c0_99 = arith.constant 0 : index
    %257 = vector.load %arg1[%256, %c0_98, %c0_99] : memref<10x8x96xf32, #tpu.memory_space<vmem>>, vector<1x8x96xf32>
    %258 = vector.shape_cast %257 : vector<1x8x96xf32> to vector<8x96xf32>
    %259 = arith.truncf %255 : vector<8x32xf32> to vector<8x32xbf16>
    %c0_100 = arith.constant 0 : index
    %c0_101 = arith.constant 0 : index
    %260 = vector.load %arg2[%c0_100, %c0_101] : memref<32x96xbf16, #tpu.memory_space<vmem>>, vector<32x96xbf16>
    %cst_102 = arith.constant dense<0.000000e+00> : vector<8x96xf32>
    %261 = tpu.matmul %259, %260, %cst_102 {dimension_numbers = #tpu.dot_dimension_numbers<[1], [0], [0], [1], [0, 0, 1, 1], [], []>} : vector<8x32xbf16>, vector<32x96xbf16>, vector<8x96xf32> -> vector<8x96xf32>
    %262 = vector.extract_strided_slice %258 {offsets = [0, 0], sizes = [8, 32], strides = [1, 1]} : vector<8x96xf32> to vector<8x32xf32>
    %263 = vector.extract_strided_slice %261 {offsets = [0, 0], sizes = [8, 32], strides = [1, 1]} : vector<8x96xf32> to vector<8x32xf32>
    %264 = arith.addf %262, %263 : vector<8x32xf32>
    %265 = arith.negf %264 : vector<8x32xf32>
    %266 = math.exp %265 : vector<8x32xf32>
    %cst_103 = arith.constant 1.000000e+00 : f32
    %267 = vector.broadcast %cst_103 : f32 to vector<8x32xf32>
    %268 = arith.addf %267, %266 : vector<8x32xf32>
    %269 = arith.divf %267, %268 : vector<8x32xf32>
    %270 = vector.extract_strided_slice %258 {offsets = [0, 32], sizes = [8, 32], strides = [1, 1]} : vector<8x96xf32> to vector<8x32xf32>
    %271 = vector.extract_strided_slice %261 {offsets = [0, 32], sizes = [8, 32], strides = [1, 1]} : vector<8x96xf32> to vector<8x32xf32>
    %272 = arith.addf %270, %271 : vector<8x32xf32>
    %273 = arith.negf %272 : vector<8x32xf32>
    %274 = math.exp %273 : vector<8x32xf32>
    %cst_104 = arith.constant 1.000000e+00 : f32
    %275 = vector.broadcast %cst_104 : f32 to vector<8x32xf32>
    %276 = arith.addf %275, %274 : vector<8x32xf32>
    %277 = arith.divf %275, %276 : vector<8x32xf32>
    %278 = vector.extract_strided_slice %258 {offsets = [0, 64], sizes = [8, 32], strides = [1, 1]} : vector<8x96xf32> to vector<8x32xf32>
    %279 = vector.extract_strided_slice %261 {offsets = [0, 64], sizes = [8, 32], strides = [1, 1]} : vector<8x96xf32> to vector<8x32xf32>
    %c0_105 = arith.constant 0 : index
    %c0_106 = arith.constant 0 : index
    %280 = vector.load %arg3[%c0_105, %c0_106] : memref<1x32xf32, #tpu.memory_space<vmem>>, vector<1x32xf32>
    %281 = vector.broadcast %280 : vector<1x32xf32> to vector<8x32xf32>
    %282 = arith.addf %279, %281 : vector<8x32xf32>
    %283 = arith.mulf %269, %282 : vector<8x32xf32>
    %284 = arith.addf %278, %283 : vector<8x32xf32>
    %285 = math.tanh %284 : vector<8x32xf32>
    %cst_107 = arith.constant 1.000000e+00 : f32
    %286 = vector.broadcast %cst_107 : f32 to vector<8x32xf32>
    %287 = arith.subf %286, %277 : vector<8x32xf32>
    %288 = arith.mulf %287, %285 : vector<8x32xf32>
    %289 = arith.mulf %277, %255 : vector<8x32xf32>
    %290 = arith.addf %288, %289 : vector<8x32xf32>
    %c0_108 = arith.constant 0 : index
    %c0_109 = arith.constant 0 : index
    %291 = vector.load %arg5[%c0_108, %c0_109] : memref<8x32xf32, #tpu.memory_space<vmem>>, vector<8x32xf32>
    tpu.vector_store %arg5[%c0_108, %c0_109], %290 {strides = array<i32>} : memref<8x32xf32, #tpu.memory_space<vmem>>, vector<8x32xf32>,
    %292 = arith.truncf %290 : vector<8x32xf32> to vector<8x32xbf16>
    %293 = arith.index_cast %c6_i32 : i32 to index
    %c0_110 = arith.constant 0 : index
    %c0_111 = arith.constant 0 : index
    %294 = vector.load %arg4[%293, %c0_110, %c0_111] : memref<10x8x32xbf16, #tpu.memory_space<vmem>>, vector<1x8x32xbf16>
    %295 = vector.shape_cast %294 : vector<1x8x32xbf16> to vector<8x32xbf16>
    %296 = vector.shape_cast %292 : vector<8x32xbf16> to vector<1x8x32xbf16>
    tpu.vector_store %arg4[%293, %c0_110, %c0_111], %296 {strides = array<i32>} : memref<10x8x32xbf16, #tpu.memory_space<vmem>>, vector<1x8x32xbf16>,
    %c7_i32 = arith.constant 7 : i32
    %c0_112 = arith.constant 0 : index
    %c0_113 = arith.constant 0 : index
    %297 = vector.load %arg5[%c0_112, %c0_113] : memref<8x32xf32, #tpu.memory_space<vmem>>, vector<8x32xf32>
    %298 = arith.index_cast %c7_i32 : i32 to index
    %c0_114 = arith.constant 0 : index
    %c0_115 = arith.constant 0 : index
    %299 = vector.load %arg1[%298, %c0_114, %c0_115] : memref<10x8x96xf32, #tpu.memory_space<vmem>>, vector<1x8x96xf32>
    %300 = vector.shape_cast %299 : vector<1x8x96xf32> to vector<8x96xf32>
    %301 = arith.truncf %297 : vector<8x32xf32> to vector<8x32xbf16>
    %c0_116 = arith.constant 0 : index
    %c0_117 = arith.constant 0 : index
    %302 = vector.load %arg2[%c0_116, %c0_117] : memref<32x96xbf16, #tpu.memory_space<vmem>>, vector<32x96xbf16>
    %cst_118 = arith.constant dense<0.000000e+00> : vector<8x96xf32>
    %303 = tpu.matmul %301, %302, %cst_118 {dimension_numbers = #tpu.dot_dimension_numbers<[1], [0], [0], [1], [0, 0, 1, 1], [], []>} : vector<8x32xbf16>, vector<32x96xbf16>, vector<8x96xf32> -> vector<8x96xf32>
    %304 = vector.extract_strided_slice %300 {offsets = [0, 0], sizes = [8, 32], strides = [1, 1]} : vector<8x96xf32> to vector<8x32xf32>
    %305 = vector.extract_strided_slice %303 {offsets = [0, 0], sizes = [8, 32], strides = [1, 1]} : vector<8x96xf32> to vector<8x32xf32>
    %306 = arith.addf %304, %305 : vector<8x32xf32>
    %307 = arith.negf %306 : vector<8x32xf32>
    %308 = math.exp %307 : vector<8x32xf32>
    %cst_119 = arith.constant 1.000000e+00 : f32
    %309 = vector.broadcast %cst_119 : f32 to vector<8x32xf32>
    %310 = arith.addf %309, %308 : vector<8x32xf32>
    %311 = arith.divf %309, %310 : vector<8x32xf32>
    %312 = vector.extract_strided_slice %300 {offsets = [0, 32], sizes = [8, 32], strides = [1, 1]} : vector<8x96xf32> to vector<8x32xf32>
    %313 = vector.extract_strided_slice %303 {offsets = [0, 32], sizes = [8, 32], strides = [1, 1]} : vector<8x96xf32> to vector<8x32xf32>
    %314 = arith.addf %312, %313 : vector<8x32xf32>
    %315 = arith.negf %314 : vector<8x32xf32>
    %316 = math.exp %315 : vector<8x32xf32>
    %cst_120 = arith.constant 1.000000e+00 : f32
    %317 = vector.broadcast %cst_120 : f32 to vector<8x32xf32>
    %318 = arith.addf %317, %316 : vector<8x32xf32>
    %319 = arith.divf %317, %318 : vector<8x32xf32>
    %320 = vector.extract_strided_slice %300 {offsets = [0, 64], sizes = [8, 32], strides = [1, 1]} : vector<8x96xf32> to vector<8x32xf32>
    %321 = vector.extract_strided_slice %303 {offsets = [0, 64], sizes = [8, 32], strides = [1, 1]} : vector<8x96xf32> to vector<8x32xf32>
    %c0_121 = arith.constant 0 : index
    %c0_122 = arith.constant 0 : index
    %322 = vector.load %arg3[%c0_121, %c0_122] : memref<1x32xf32, #tpu.memory_space<vmem>>, vector<1x32xf32>
    %323 = vector.broadcast %322 : vector<1x32xf32> to vector<8x32xf32>
    %324 = arith.addf %321, %323 : vector<8x32xf32>
    %325 = arith.mulf %311, %324 : vector<8x32xf32>
    %326 = arith.addf %320, %325 : vector<8x32xf32>
    %327 = math.tanh %326 : vector<8x32xf32>
    %cst_123 = arith.constant 1.000000e+00 : f32
    %328 = vector.broadcast %cst_123 : f32 to vector<8x32xf32>
    %329 = arith.subf %328, %319 : vector<8x32xf32>
    %330 = arith.mulf %329, %327 : vector<8x32xf32>
    %331 = arith.mulf %319, %297 : vector<8x32xf32>
    %332 = arith.addf %330, %331 : vector<8x32xf32>
    %c0_124 = arith.constant 0 : index
    %c0_125 = arith.constant 0 : index
    %333 = vector.load %arg5[%c0_124, %c0_125] : memref<8x32xf32, #tpu.memory_space<vmem>>, vector<8x32xf32>
    tpu.vector_store %arg5[%c0_124, %c0_125], %332 {strides = array<i32>} : memref<8x32xf32, #tpu.memory_space<vmem>>, vector<8x32xf32>,
    %334 = arith.truncf %332 : vector<8x32xf32> to vector<8x32xbf16>
    %335 = arith.index_cast %c7_i32 : i32 to index
    %c0_126 = arith.constant 0 : index
    %c0_127 = arith.constant 0 : index
    %336 = vector.load %arg4[%335, %c0_126, %c0_127] : memref<10x8x32xbf16, #tpu.memory_space<vmem>>, vector<1x8x32xbf16>
    %337 = vector.shape_cast %336 : vector<1x8x32xbf16> to vector<8x32xbf16>
    %338 = vector.shape_cast %334 : vector<8x32xbf16> to vector<1x8x32xbf16>
    tpu.vector_store %arg4[%335, %c0_126, %c0_127], %338 {strides = array<i32>} : memref<10x8x32xbf16, #tpu.memory_space<vmem>>, vector<1x8x32xbf16>,
    %c8_i32 = arith.constant 8 : i32
    %c0_128 = arith.constant 0 : index
    %c0_129 = arith.constant 0 : index
    %339 = vector.load %arg5[%c0_128, %c0_129] : memref<8x32xf32, #tpu.memory_space<vmem>>, vector<8x32xf32>
    %340 = arith.index_cast %c8_i32 : i32 to index
    %c0_130 = arith.constant 0 : index
    %c0_131 = arith.constant 0 : index
    %341 = vector.load %arg1[%340, %c0_130, %c0_131] : memref<10x8x96xf32, #tpu.memory_space<vmem>>, vector<1x8x96xf32>
    %342 = vector.shape_cast %341 : vector<1x8x96xf32> to vector<8x96xf32>
    %343 = arith.truncf %339 : vector<8x32xf32> to vector<8x32xbf16>
    %c0_132 = arith.constant 0 : index
    %c0_133 = arith.constant 0 : index
    %344 = vector.load %arg2[%c0_132, %c0_133] : memref<32x96xbf16, #tpu.memory_space<vmem>>, vector<32x96xbf16>
    %cst_134 = arith.constant dense<0.000000e+00> : vector<8x96xf32>
    %345 = tpu.matmul %343, %344, %cst_134 {dimension_numbers = #tpu.dot_dimension_numbers<[1], [0], [0], [1], [0, 0, 1, 1], [], []>} : vector<8x32xbf16>, vector<32x96xbf16>, vector<8x96xf32> -> vector<8x96xf32>
    %346 = vector.extract_strided_slice %342 {offsets = [0, 0], sizes = [8, 32], strides = [1, 1]} : vector<8x96xf32> to vector<8x32xf32>
    %347 = vector.extract_strided_slice %345 {offsets = [0, 0], sizes = [8, 32], strides = [1, 1]} : vector<8x96xf32> to vector<8x32xf32>
    %348 = arith.addf %346, %347 : vector<8x32xf32>
    %349 = arith.negf %348 : vector<8x32xf32>
    %350 = math.exp %349 : vector<8x32xf32>
    %cst_135 = arith.constant 1.000000e+00 : f32
    %351 = vector.broadcast %cst_135 : f32 to vector<8x32xf32>
    %352 = arith.addf %351, %350 : vector<8x32xf32>
    %353 = arith.divf %351, %352 : vector<8x32xf32>
    %354 = vector.extract_strided_slice %342 {offsets = [0, 32], sizes = [8, 32], strides = [1, 1]} : vector<8x96xf32> to vector<8x32xf32>
    %355 = vector.extract_strided_slice %345 {offsets = [0, 32], sizes = [8, 32], strides = [1, 1]} : vector<8x96xf32> to vector<8x32xf32>
    %356 = arith.addf %354, %355 : vector<8x32xf32>
    %357 = arith.negf %356 : vector<8x32xf32>
    %358 = math.exp %357 : vector<8x32xf32>
    %cst_136 = arith.constant 1.000000e+00 : f32
    %359 = vector.broadcast %cst_136 : f32 to vector<8x32xf32>
    %360 = arith.addf %359, %358 : vector<8x32xf32>
    %361 = arith.divf %359, %360 : vector<8x32xf32>
    %362 = vector.extract_strided_slice %342 {offsets = [0, 64], sizes = [8, 32], strides = [1, 1]} : vector<8x96xf32> to vector<8x32xf32>
    %363 = vector.extract_strided_slice %345 {offsets = [0, 64], sizes = [8, 32], strides = [1, 1]} : vector<8x96xf32> to vector<8x32xf32>
    %c0_137 = arith.constant 0 : index
    %c0_138 = arith.constant 0 : index
    %364 = vector.load %arg3[%c0_137, %c0_138] : memref<1x32xf32, #tpu.memory_space<vmem>>, vector<1x32xf32>
    %365 = vector.broadcast %364 : vector<1x32xf32> to vector<8x32xf32>
    %366 = arith.addf %363, %365 : vector<8x32xf32>
    %367 = arith.mulf %353, %366 : vector<8x32xf32>
    %368 = arith.addf %362, %367 : vector<8x32xf32>
    %369 = math.tanh %368 : vector<8x32xf32>
    %cst_139 = arith.constant 1.000000e+00 : f32
    %370 = vector.broadcast %cst_139 : f32 to vector<8x32xf32>
    %371 = arith.subf %370, %361 : vector<8x32xf32>
    %372 = arith.mulf %371, %369 : vector<8x32xf32>
    %373 = arith.mulf %361, %339 : vector<8x32xf32>
    %374 = arith.addf %372, %373 : vector<8x32xf32>
    %c0_140 = arith.constant 0 : index
    %c0_141 = arith.constant 0 : index
    %375 = vector.load %arg5[%c0_140, %c0_141] : memref<8x32xf32, #tpu.memory_space<vmem>>, vector<8x32xf32>
    tpu.vector_store %arg5[%c0_140, %c0_141], %374 {strides = array<i32>} : memref<8x32xf32, #tpu.memory_space<vmem>>, vector<8x32xf32>,
    %376 = arith.truncf %374 : vector<8x32xf32> to vector<8x32xbf16>
    %377 = arith.index_cast %c8_i32 : i32 to index
    %c0_142 = arith.constant 0 : index
    %c0_143 = arith.constant 0 : index
    %378 = vector.load %arg4[%377, %c0_142, %c0_143] : memref<10x8x32xbf16, #tpu.memory_space<vmem>>, vector<1x8x32xbf16>
    %379 = vector.shape_cast %378 : vector<1x8x32xbf16> to vector<8x32xbf16>
    %380 = vector.shape_cast %376 : vector<8x32xbf16> to vector<1x8x32xbf16>
    tpu.vector_store %arg4[%377, %c0_142, %c0_143], %380 {strides = array<i32>} : memref<10x8x32xbf16, #tpu.memory_space<vmem>>, vector<1x8x32xbf16>,
    %c9_i32 = arith.constant 9 : i32
    %c0_144 = arith.constant 0 : index
    %c0_145 = arith.constant 0 : index
    %381 = vector.load %arg5[%c0_144, %c0_145] : memref<8x32xf32, #tpu.memory_space<vmem>>, vector<8x32xf32>
    %382 = arith.index_cast %c9_i32 : i32 to index
    %c0_146 = arith.constant 0 : index
    %c0_147 = arith.constant 0 : index
    %383 = vector.load %arg1[%382, %c0_146, %c0_147] : memref<10x8x96xf32, #tpu.memory_space<vmem>>, vector<1x8x96xf32>
    %384 = vector.shape_cast %383 : vector<1x8x96xf32> to vector<8x96xf32>
    %385 = arith.truncf %381 : vector<8x32xf32> to vector<8x32xbf16>
    %c0_148 = arith.constant 0 : index
    %c0_149 = arith.constant 0 : index
    %386 = vector.load %arg2[%c0_148, %c0_149] : memref<32x96xbf16, #tpu.memory_space<vmem>>, vector<32x96xbf16>
    %cst_150 = arith.constant dense<0.000000e+00> : vector<8x96xf32>
    %387 = tpu.matmul %385, %386, %cst_150 {dimension_numbers = #tpu.dot_dimension_numbers<[1], [0], [0], [1], [0, 0, 1, 1], [], []>} : vector<8x32xbf16>, vector<32x96xbf16>, vector<8x96xf32> -> vector<8x96xf32>
    %388 = vector.extract_strided_slice %384 {offsets = [0, 0], sizes = [8, 32], strides = [1, 1]} : vector<8x96xf32> to vector<8x32xf32>
    %389 = vector.extract_strided_slice %387 {offsets = [0, 0], sizes = [8, 32], strides = [1, 1]} : vector<8x96xf32> to vector<8x32xf32>
    %390 = arith.addf %388, %389 : vector<8x32xf32>
    %391 = arith.negf %390 : vector<8x32xf32>
    %392 = math.exp %391 : vector<8x32xf32>
    %cst_151 = arith.constant 1.000000e+00 : f32
    %393 = vector.broadcast %cst_151 : f32 to vector<8x32xf32>
    %394 = arith.addf %393, %392 : vector<8x32xf32>
    %395 = arith.divf %393, %394 : vector<8x32xf32>
    %396 = vector.extract_strided_slice %384 {offsets = [0, 32], sizes = [8, 32], strides = [1, 1]} : vector<8x96xf32> to vector<8x32xf32>
    %397 = vector.extract_strided_slice %387 {offsets = [0, 32], sizes = [8, 32], strides = [1, 1]} : vector<8x96xf32> to vector<8x32xf32>
    %398 = arith.addf %396, %397 : vector<8x32xf32>
    %399 = arith.negf %398 : vector<8x32xf32>
    %400 = math.exp %399 : vector<8x32xf32>
    %cst_152 = arith.constant 1.000000e+00 : f32
    %401 = vector.broadcast %cst_152 : f32 to vector<8x32xf32>
    %402 = arith.addf %401, %400 : vector<8x32xf32>
    %403 = arith.divf %401, %402 : vector<8x32xf32>
    %404 = vector.extract_strided_slice %384 {offsets = [0, 64], sizes = [8, 32], strides = [1, 1]} : vector<8x96xf32> to vector<8x32xf32>
    %405 = vector.extract_strided_slice %387 {offsets = [0, 64], sizes = [8, 32], strides = [1, 1]} : vector<8x96xf32> to vector<8x32xf32>
    %c0_153 = arith.constant 0 : index
    %c0_154 = arith.constant 0 : index
    %406 = vector.load %arg3[%c0_153, %c0_154] : memref<1x32xf32, #tpu.memory_space<vmem>>, vector<1x32xf32>
    %407 = vector.broadcast %406 : vector<1x32xf32> to vector<8x32xf32>
    %408 = arith.addf %405, %407 : vector<8x32xf32>
    %409 = arith.mulf %395, %408 : vector<8x32xf32>
    %410 = arith.addf %404, %409 : vector<8x32xf32>
    %411 = math.tanh %410 : vector<8x32xf32>
    %cst_155 = arith.constant 1.000000e+00 : f32
    %412 = vector.broadcast %cst_155 : f32 to vector<8x32xf32>
    %413 = arith.subf %412, %403 : vector<8x32xf32>
    %414 = arith.mulf %413, %411 : vector<8x32xf32>
    %415 = arith.mulf %403, %381 : vector<8x32xf32>
    %416 = arith.addf %414, %415 : vector<8x32xf32>
    %c0_156 = arith.constant 0 : index
    %c0_157 = arith.constant 0 : index
    %417 = vector.load %arg5[%c0_156, %c0_157] : memref<8x32xf32, #tpu.memory_space<vmem>>, vector<8x32xf32>
    tpu.vector_store %arg5[%c0_156, %c0_157], %416 {strides = array<i32>} : memref<8x32xf32, #tpu.memory_space<vmem>>, vector<8x32xf32>,
    %418 = arith.truncf %416 : vector<8x32xf32> to vector<8x32xbf16>
    %419 = arith.index_cast %c9_i32 : i32 to index
    %c0_158 = arith.constant 0 : index
    %c0_159 = arith.constant 0 : index
    %420 = vector.load %arg4[%419, %c0_158, %c0_159] : memref<10x8x32xbf16, #tpu.memory_space<vmem>>, vector<1x8x32xbf16>
    %421 = vector.shape_cast %420 : vector<1x8x32xbf16> to vector<8x32xbf16>
    %422 = vector.shape_cast %418 : vector<8x32xbf16> to vector<1x8x32xbf16>
    tpu.vector_store %arg4[%419, %c0_158, %c0_159], %422 {strides = array<i32>} : memref<10x8x32xbf16, #tpu.memory_space<vmem>>, vector<1x8x32xbf16>,
    %c10_i32 = arith.constant 10 : i32
    return
  }
  func.func @transform_0(%arg0: i32) -> (i32, i32, i32) {
    %c0_i32 = arith.constant 0 : i32
    %c0_i32_0 = arith.constant 0 : i32
    %c0_i32_1 = arith.constant 0 : i32
    return %arg0, %c0_i32, %c0_i32_0 : i32, i32, i32
  }
  func.func @transform_1(%arg0: i32) -> (i32, i32) {
    %c0_i32 = arith.constant 0 : i32
    %c0_i32_0 = arith.constant 0 : i32
    %c0_i32_1 = arith.constant 0 : i32
    return %c0_i32, %c0_i32_0 : i32, i32
  }
  func.func @transform_2(%arg0: i32) -> (i32, i32) {
    %c0_i32 = arith.constant 0 : i32
    %c0_i32_0 = arith.constant 0 : i32
    %c0_i32_1 = arith.constant 0 : i32
    return %c0_i32, %c0_i32_0 : i32, i32
  }
  func.func @transform_3(%arg0: i32) -> (i32, i32, i32) {
    %c0_i32 = arith.constant 0 : i32
    %c0_i32_0 = arith.constant 0 : i32
    %c0_i32_1 = arith.constant 0 : i32
    return %arg0, %c0_i32, %c0_i32_0 : i32, i32, i32
  }
}

module attributes {stable_mosaic.version = 11 : i64} {
  func.func @_seq_kernel(%arg0: i32, %arg1: memref<10x8x96xf32, #tpu.memory_space<vmem>>, %arg2: memref<32x96xbf16, #tpu.memory_space<vmem>>, %arg3: memref<1x32xf32, #tpu.memory_space<vmem>>, %arg4: memref<32x4xbf16, #tpu.memory_space<vmem>>, %arg5: memref<1x4xf32, #tpu.memory_space<vmem>>, %arg6: memref<8x4xf32, #tpu.memory_space<vmem>>, %arg7: memref<8x32xf32, #tpu.memory_space<vmem>>) attributes {dimension_semantics = [#tpu.dimension_semantics<arbitrary>], iteration_bounds = array<i64: 1>, scalar_prefetch = 0 : i64, scratch_operands = 1 : i64, tpu.core_type = #tpu.core_type<tc>, window_params = [{transform_indices = @transform_0, window_bounds = array<i64: 10, 8, 96>}, {pipeline_mode = #tpu.pipeline_mode<synchronous>, transform_indices = @transform_1, window_bounds = array<i64: 32, 96>}, {pipeline_mode = #tpu.pipeline_mode<synchronous>, transform_indices = @transform_2, window_bounds = array<i64: 1, 32>}, {pipeline_mode = #tpu.pipeline_mode<synchronous>, transform_indices = @transform_3, window_bounds = array<i64: 32, 4>}, {pipeline_mode = #tpu.pipeline_mode<synchronous>, transform_indices = @transform_4, window_bounds = array<i64: 1, 4>}, {pipeline_mode = #tpu.pipeline_mode<synchronous>, transform_indices = @transform_5, window_bounds = array<i64: 8, 4>}]} {
    %c0_i32 = arith.constant 0 : i32
    %0 = arith.cmpi eq, %arg0, %c0_i32 : i32
    %1 = arith.extui %0 : i1 to i32
    %c0_i32_0 = arith.constant 0 : i32
    %2 = arith.cmpi ne, %1, %c0_i32_0 : i32
    scf.if %2 {
      %cst_142 = arith.constant 0.000000e+00 : f32
      %376 = vector.broadcast %cst_142 : f32 to vector<8x32xf32>
      %c0_143 = arith.constant 0 : index
      %c0_144 = arith.constant 0 : index
      %377 = vector.load %arg7[%c0_143, %c0_144] : memref<8x32xf32, #tpu.memory_space<vmem>>, vector<8x32xf32>
      tpu.vector_store %arg7[%c0_143, %c0_144], %376 {strides = array<i32>} : memref<8x32xf32, #tpu.memory_space<vmem>>, vector<8x32xf32>,
    } else {
    }
    %c0_i32_1 = arith.constant 0 : i32
    %c0 = arith.constant 0 : index
    %c0_2 = arith.constant 0 : index
    %3 = vector.load %arg7[%c0, %c0_2] : memref<8x32xf32, #tpu.memory_space<vmem>>, vector<8x32xf32>
    %4 = arith.index_cast %c0_i32_1 : i32 to index
    %c0_3 = arith.constant 0 : index
    %c0_4 = arith.constant 0 : index
    %5 = vector.load %arg1[%4, %c0_3, %c0_4] : memref<10x8x96xf32, #tpu.memory_space<vmem>>, vector<1x8x96xf32>
    %6 = vector.shape_cast %5 : vector<1x8x96xf32> to vector<8x96xf32>
    %7 = arith.truncf %3 : vector<8x32xf32> to vector<8x32xbf16>
    %c0_5 = arith.constant 0 : index
    %c0_6 = arith.constant 0 : index
    %8 = vector.load %arg2[%c0_5, %c0_6] : memref<32x96xbf16, #tpu.memory_space<vmem>>, vector<32x96xbf16>
    %cst = arith.constant dense<0.000000e+00> : vector<8x96xf32>
    %9 = tpu.matmul %7, %8, %cst {dimension_numbers = #tpu.dot_dimension_numbers<[1], [0], [0], [1], [0, 0, 1, 1], [], []>} : vector<8x32xbf16>, vector<32x96xbf16>, vector<8x96xf32> -> vector<8x96xf32>
    %10 = vector.extract_strided_slice %6 {offsets = [0, 0], sizes = [8, 32], strides = [1, 1]} : vector<8x96xf32> to vector<8x32xf32>
    %11 = vector.extract_strided_slice %9 {offsets = [0, 0], sizes = [8, 32], strides = [1, 1]} : vector<8x96xf32> to vector<8x32xf32>
    %12 = arith.addf %10, %11 : vector<8x32xf32>
    %13 = arith.negf %12 : vector<8x32xf32>
    %14 = math.exp %13 : vector<8x32xf32>
    %cst_7 = arith.constant 1.000000e+00 : f32
    %15 = vector.broadcast %cst_7 : f32 to vector<8x32xf32>
    %16 = arith.addf %15, %14 : vector<8x32xf32>
    %17 = arith.divf %15, %16 : vector<8x32xf32>
    %18 = vector.extract_strided_slice %6 {offsets = [0, 32], sizes = [8, 32], strides = [1, 1]} : vector<8x96xf32> to vector<8x32xf32>
    %19 = vector.extract_strided_slice %9 {offsets = [0, 32], sizes = [8, 32], strides = [1, 1]} : vector<8x96xf32> to vector<8x32xf32>
    %20 = arith.addf %18, %19 : vector<8x32xf32>
    %21 = arith.negf %20 : vector<8x32xf32>
    %22 = math.exp %21 : vector<8x32xf32>
    %cst_8 = arith.constant 1.000000e+00 : f32
    %23 = vector.broadcast %cst_8 : f32 to vector<8x32xf32>
    %24 = arith.addf %23, %22 : vector<8x32xf32>
    %25 = arith.divf %23, %24 : vector<8x32xf32>
    %26 = vector.extract_strided_slice %6 {offsets = [0, 64], sizes = [8, 32], strides = [1, 1]} : vector<8x96xf32> to vector<8x32xf32>
    %27 = vector.extract_strided_slice %9 {offsets = [0, 64], sizes = [8, 32], strides = [1, 1]} : vector<8x96xf32> to vector<8x32xf32>
    %c0_9 = arith.constant 0 : index
    %c0_10 = arith.constant 0 : index
    %28 = vector.load %arg3[%c0_9, %c0_10] : memref<1x32xf32, #tpu.memory_space<vmem>>, vector<1x32xf32>
    %29 = vector.broadcast %28 : vector<1x32xf32> to vector<8x32xf32>
    %30 = arith.addf %27, %29 : vector<8x32xf32>
    %31 = arith.mulf %17, %30 : vector<8x32xf32>
    %32 = arith.addf %26, %31 : vector<8x32xf32>
    %33 = math.tanh %32 : vector<8x32xf32>
    %cst_11 = arith.constant 1.000000e+00 : f32
    %34 = vector.broadcast %cst_11 : f32 to vector<8x32xf32>
    %35 = arith.subf %34, %25 : vector<8x32xf32>
    %36 = arith.mulf %35, %33 : vector<8x32xf32>
    %37 = arith.mulf %25, %3 : vector<8x32xf32>
    %38 = arith.addf %36, %37 : vector<8x32xf32>
    %c0_12 = arith.constant 0 : index
    %c0_13 = arith.constant 0 : index
    %39 = vector.load %arg7[%c0_12, %c0_13] : memref<8x32xf32, #tpu.memory_space<vmem>>, vector<8x32xf32>
    tpu.vector_store %arg7[%c0_12, %c0_13], %38 {strides = array<i32>} : memref<8x32xf32, #tpu.memory_space<vmem>>, vector<8x32xf32>,
    %c1_i32 = arith.constant 1 : i32
    %c0_14 = arith.constant 0 : index
    %c0_15 = arith.constant 0 : index
    %40 = vector.load %arg7[%c0_14, %c0_15] : memref<8x32xf32, #tpu.memory_space<vmem>>, vector<8x32xf32>
    %41 = arith.index_cast %c1_i32 : i32 to index
    %c0_16 = arith.constant 0 : index
    %c0_17 = arith.constant 0 : index
    %42 = vector.load %arg1[%41, %c0_16, %c0_17] : memref<10x8x96xf32, #tpu.memory_space<vmem>>, vector<1x8x96xf32>
    %43 = vector.shape_cast %42 : vector<1x8x96xf32> to vector<8x96xf32>
    %44 = arith.truncf %40 : vector<8x32xf32> to vector<8x32xbf16>
    %c0_18 = arith.constant 0 : index
    %c0_19 = arith.constant 0 : index
    %45 = vector.load %arg2[%c0_18, %c0_19] : memref<32x96xbf16, #tpu.memory_space<vmem>>, vector<32x96xbf16>
    %cst_20 = arith.constant dense<0.000000e+00> : vector<8x96xf32>
    %46 = tpu.matmul %44, %45, %cst_20 {dimension_numbers = #tpu.dot_dimension_numbers<[1], [0], [0], [1], [0, 0, 1, 1], [], []>} : vector<8x32xbf16>, vector<32x96xbf16>, vector<8x96xf32> -> vector<8x96xf32>
    %47 = vector.extract_strided_slice %43 {offsets = [0, 0], sizes = [8, 32], strides = [1, 1]} : vector<8x96xf32> to vector<8x32xf32>
    %48 = vector.extract_strided_slice %46 {offsets = [0, 0], sizes = [8, 32], strides = [1, 1]} : vector<8x96xf32> to vector<8x32xf32>
    %49 = arith.addf %47, %48 : vector<8x32xf32>
    %50 = arith.negf %49 : vector<8x32xf32>
    %51 = math.exp %50 : vector<8x32xf32>
    %cst_21 = arith.constant 1.000000e+00 : f32
    %52 = vector.broadcast %cst_21 : f32 to vector<8x32xf32>
    %53 = arith.addf %52, %51 : vector<8x32xf32>
    %54 = arith.divf %52, %53 : vector<8x32xf32>
    %55 = vector.extract_strided_slice %43 {offsets = [0, 32], sizes = [8, 32], strides = [1, 1]} : vector<8x96xf32> to vector<8x32xf32>
    %56 = vector.extract_strided_slice %46 {offsets = [0, 32], sizes = [8, 32], strides = [1, 1]} : vector<8x96xf32> to vector<8x32xf32>
    %57 = arith.addf %55, %56 : vector<8x32xf32>
    %58 = arith.negf %57 : vector<8x32xf32>
    %59 = math.exp %58 : vector<8x32xf32>
    %cst_22 = arith.constant 1.000000e+00 : f32
    %60 = vector.broadcast %cst_22 : f32 to vector<8x32xf32>
    %61 = arith.addf %60, %59 : vector<8x32xf32>
    %62 = arith.divf %60, %61 : vector<8x32xf32>
    %63 = vector.extract_strided_slice %43 {offsets = [0, 64], sizes = [8, 32], strides = [1, 1]} : vector<8x96xf32> to vector<8x32xf32>
    %64 = vector.extract_strided_slice %46 {offsets = [0, 64], sizes = [8, 32], strides = [1, 1]} : vector<8x96xf32> to vector<8x32xf32>
    %c0_23 = arith.constant 0 : index
    %c0_24 = arith.constant 0 : index
    %65 = vector.load %arg3[%c0_23, %c0_24] : memref<1x32xf32, #tpu.memory_space<vmem>>, vector<1x32xf32>
    %66 = vector.broadcast %65 : vector<1x32xf32> to vector<8x32xf32>
    %67 = arith.addf %64, %66 : vector<8x32xf32>
    %68 = arith.mulf %54, %67 : vector<8x32xf32>
    %69 = arith.addf %63, %68 : vector<8x32xf32>
    %70 = math.tanh %69 : vector<8x32xf32>
    %cst_25 = arith.constant 1.000000e+00 : f32
    %71 = vector.broadcast %cst_25 : f32 to vector<8x32xf32>
    %72 = arith.subf %71, %62 : vector<8x32xf32>
    %73 = arith.mulf %72, %70 : vector<8x32xf32>
    %74 = arith.mulf %62, %40 : vector<8x32xf32>
    %75 = arith.addf %73, %74 : vector<8x32xf32>
    %c0_26 = arith.constant 0 : index
    %c0_27 = arith.constant 0 : index
    %76 = vector.load %arg7[%c0_26, %c0_27] : memref<8x32xf32, #tpu.memory_space<vmem>>, vector<8x32xf32>
    tpu.vector_store %arg7[%c0_26, %c0_27], %75 {strides = array<i32>} : memref<8x32xf32, #tpu.memory_space<vmem>>, vector<8x32xf32>,
    %c2_i32 = arith.constant 2 : i32
    %c0_28 = arith.constant 0 : index
    %c0_29 = arith.constant 0 : index
    %77 = vector.load %arg7[%c0_28, %c0_29] : memref<8x32xf32, #tpu.memory_space<vmem>>, vector<8x32xf32>
    %78 = arith.index_cast %c2_i32 : i32 to index
    %c0_30 = arith.constant 0 : index
    %c0_31 = arith.constant 0 : index
    %79 = vector.load %arg1[%78, %c0_30, %c0_31] : memref<10x8x96xf32, #tpu.memory_space<vmem>>, vector<1x8x96xf32>
    %80 = vector.shape_cast %79 : vector<1x8x96xf32> to vector<8x96xf32>
    %81 = arith.truncf %77 : vector<8x32xf32> to vector<8x32xbf16>
    %c0_32 = arith.constant 0 : index
    %c0_33 = arith.constant 0 : index
    %82 = vector.load %arg2[%c0_32, %c0_33] : memref<32x96xbf16, #tpu.memory_space<vmem>>, vector<32x96xbf16>
    %cst_34 = arith.constant dense<0.000000e+00> : vector<8x96xf32>
    %83 = tpu.matmul %81, %82, %cst_34 {dimension_numbers = #tpu.dot_dimension_numbers<[1], [0], [0], [1], [0, 0, 1, 1], [], []>} : vector<8x32xbf16>, vector<32x96xbf16>, vector<8x96xf32> -> vector<8x96xf32>
    %84 = vector.extract_strided_slice %80 {offsets = [0, 0], sizes = [8, 32], strides = [1, 1]} : vector<8x96xf32> to vector<8x32xf32>
    %85 = vector.extract_strided_slice %83 {offsets = [0, 0], sizes = [8, 32], strides = [1, 1]} : vector<8x96xf32> to vector<8x32xf32>
    %86 = arith.addf %84, %85 : vector<8x32xf32>
    %87 = arith.negf %86 : vector<8x32xf32>
    %88 = math.exp %87 : vector<8x32xf32>
    %cst_35 = arith.constant 1.000000e+00 : f32
    %89 = vector.broadcast %cst_35 : f32 to vector<8x32xf32>
    %90 = arith.addf %89, %88 : vector<8x32xf32>
    %91 = arith.divf %89, %90 : vector<8x32xf32>
    %92 = vector.extract_strided_slice %80 {offsets = [0, 32], sizes = [8, 32], strides = [1, 1]} : vector<8x96xf32> to vector<8x32xf32>
    %93 = vector.extract_strided_slice %83 {offsets = [0, 32], sizes = [8, 32], strides = [1, 1]} : vector<8x96xf32> to vector<8x32xf32>
    %94 = arith.addf %92, %93 : vector<8x32xf32>
    %95 = arith.negf %94 : vector<8x32xf32>
    %96 = math.exp %95 : vector<8x32xf32>
    %cst_36 = arith.constant 1.000000e+00 : f32
    %97 = vector.broadcast %cst_36 : f32 to vector<8x32xf32>
    %98 = arith.addf %97, %96 : vector<8x32xf32>
    %99 = arith.divf %97, %98 : vector<8x32xf32>
    %100 = vector.extract_strided_slice %80 {offsets = [0, 64], sizes = [8, 32], strides = [1, 1]} : vector<8x96xf32> to vector<8x32xf32>
    %101 = vector.extract_strided_slice %83 {offsets = [0, 64], sizes = [8, 32], strides = [1, 1]} : vector<8x96xf32> to vector<8x32xf32>
    %c0_37 = arith.constant 0 : index
    %c0_38 = arith.constant 0 : index
    %102 = vector.load %arg3[%c0_37, %c0_38] : memref<1x32xf32, #tpu.memory_space<vmem>>, vector<1x32xf32>
    %103 = vector.broadcast %102 : vector<1x32xf32> to vector<8x32xf32>
    %104 = arith.addf %101, %103 : vector<8x32xf32>
    %105 = arith.mulf %91, %104 : vector<8x32xf32>
    %106 = arith.addf %100, %105 : vector<8x32xf32>
    %107 = math.tanh %106 : vector<8x32xf32>
    %cst_39 = arith.constant 1.000000e+00 : f32
    %108 = vector.broadcast %cst_39 : f32 to vector<8x32xf32>
    %109 = arith.subf %108, %99 : vector<8x32xf32>
    %110 = arith.mulf %109, %107 : vector<8x32xf32>
    %111 = arith.mulf %99, %77 : vector<8x32xf32>
    %112 = arith.addf %110, %111 : vector<8x32xf32>
    %c0_40 = arith.constant 0 : index
    %c0_41 = arith.constant 0 : index
    %113 = vector.load %arg7[%c0_40, %c0_41] : memref<8x32xf32, #tpu.memory_space<vmem>>, vector<8x32xf32>
    tpu.vector_store %arg7[%c0_40, %c0_41], %112 {strides = array<i32>} : memref<8x32xf32, #tpu.memory_space<vmem>>, vector<8x32xf32>,
    %c3_i32 = arith.constant 3 : i32
    %c0_42 = arith.constant 0 : index
    %c0_43 = arith.constant 0 : index
    %114 = vector.load %arg7[%c0_42, %c0_43] : memref<8x32xf32, #tpu.memory_space<vmem>>, vector<8x32xf32>
    %115 = arith.index_cast %c3_i32 : i32 to index
    %c0_44 = arith.constant 0 : index
    %c0_45 = arith.constant 0 : index
    %116 = vector.load %arg1[%115, %c0_44, %c0_45] : memref<10x8x96xf32, #tpu.memory_space<vmem>>, vector<1x8x96xf32>
    %117 = vector.shape_cast %116 : vector<1x8x96xf32> to vector<8x96xf32>
    %118 = arith.truncf %114 : vector<8x32xf32> to vector<8x32xbf16>
    %c0_46 = arith.constant 0 : index
    %c0_47 = arith.constant 0 : index
    %119 = vector.load %arg2[%c0_46, %c0_47] : memref<32x96xbf16, #tpu.memory_space<vmem>>, vector<32x96xbf16>
    %cst_48 = arith.constant dense<0.000000e+00> : vector<8x96xf32>
    %120 = tpu.matmul %118, %119, %cst_48 {dimension_numbers = #tpu.dot_dimension_numbers<[1], [0], [0], [1], [0, 0, 1, 1], [], []>} : vector<8x32xbf16>, vector<32x96xbf16>, vector<8x96xf32> -> vector<8x96xf32>
    %121 = vector.extract_strided_slice %117 {offsets = [0, 0], sizes = [8, 32], strides = [1, 1]} : vector<8x96xf32> to vector<8x32xf32>
    %122 = vector.extract_strided_slice %120 {offsets = [0, 0], sizes = [8, 32], strides = [1, 1]} : vector<8x96xf32> to vector<8x32xf32>
    %123 = arith.addf %121, %122 : vector<8x32xf32>
    %124 = arith.negf %123 : vector<8x32xf32>
    %125 = math.exp %124 : vector<8x32xf32>
    %cst_49 = arith.constant 1.000000e+00 : f32
    %126 = vector.broadcast %cst_49 : f32 to vector<8x32xf32>
    %127 = arith.addf %126, %125 : vector<8x32xf32>
    %128 = arith.divf %126, %127 : vector<8x32xf32>
    %129 = vector.extract_strided_slice %117 {offsets = [0, 32], sizes = [8, 32], strides = [1, 1]} : vector<8x96xf32> to vector<8x32xf32>
    %130 = vector.extract_strided_slice %120 {offsets = [0, 32], sizes = [8, 32], strides = [1, 1]} : vector<8x96xf32> to vector<8x32xf32>
    %131 = arith.addf %129, %130 : vector<8x32xf32>
    %132 = arith.negf %131 : vector<8x32xf32>
    %133 = math.exp %132 : vector<8x32xf32>
    %cst_50 = arith.constant 1.000000e+00 : f32
    %134 = vector.broadcast %cst_50 : f32 to vector<8x32xf32>
    %135 = arith.addf %134, %133 : vector<8x32xf32>
    %136 = arith.divf %134, %135 : vector<8x32xf32>
    %137 = vector.extract_strided_slice %117 {offsets = [0, 64], sizes = [8, 32], strides = [1, 1]} : vector<8x96xf32> to vector<8x32xf32>
    %138 = vector.extract_strided_slice %120 {offsets = [0, 64], sizes = [8, 32], strides = [1, 1]} : vector<8x96xf32> to vector<8x32xf32>
    %c0_51 = arith.constant 0 : index
    %c0_52 = arith.constant 0 : index
    %139 = vector.load %arg3[%c0_51, %c0_52] : memref<1x32xf32, #tpu.memory_space<vmem>>, vector<1x32xf32>
    %140 = vector.broadcast %139 : vector<1x32xf32> to vector<8x32xf32>
    %141 = arith.addf %138, %140 : vector<8x32xf32>
    %142 = arith.mulf %128, %141 : vector<8x32xf32>
    %143 = arith.addf %137, %142 : vector<8x32xf32>
    %144 = math.tanh %143 : vector<8x32xf32>
    %cst_53 = arith.constant 1.000000e+00 : f32
    %145 = vector.broadcast %cst_53 : f32 to vector<8x32xf32>
    %146 = arith.subf %145, %136 : vector<8x32xf32>
    %147 = arith.mulf %146, %144 : vector<8x32xf32>
    %148 = arith.mulf %136, %114 : vector<8x32xf32>
    %149 = arith.addf %147, %148 : vector<8x32xf32>
    %c0_54 = arith.constant 0 : index
    %c0_55 = arith.constant 0 : index
    %150 = vector.load %arg7[%c0_54, %c0_55] : memref<8x32xf32, #tpu.memory_space<vmem>>, vector<8x32xf32>
    tpu.vector_store %arg7[%c0_54, %c0_55], %149 {strides = array<i32>} : memref<8x32xf32, #tpu.memory_space<vmem>>, vector<8x32xf32>,
    %c4_i32 = arith.constant 4 : i32
    %c0_56 = arith.constant 0 : index
    %c0_57 = arith.constant 0 : index
    %151 = vector.load %arg7[%c0_56, %c0_57] : memref<8x32xf32, #tpu.memory_space<vmem>>, vector<8x32xf32>
    %152 = arith.index_cast %c4_i32 : i32 to index
    %c0_58 = arith.constant 0 : index
    %c0_59 = arith.constant 0 : index
    %153 = vector.load %arg1[%152, %c0_58, %c0_59] : memref<10x8x96xf32, #tpu.memory_space<vmem>>, vector<1x8x96xf32>
    %154 = vector.shape_cast %153 : vector<1x8x96xf32> to vector<8x96xf32>
    %155 = arith.truncf %151 : vector<8x32xf32> to vector<8x32xbf16>
    %c0_60 = arith.constant 0 : index
    %c0_61 = arith.constant 0 : index
    %156 = vector.load %arg2[%c0_60, %c0_61] : memref<32x96xbf16, #tpu.memory_space<vmem>>, vector<32x96xbf16>
    %cst_62 = arith.constant dense<0.000000e+00> : vector<8x96xf32>
    %157 = tpu.matmul %155, %156, %cst_62 {dimension_numbers = #tpu.dot_dimension_numbers<[1], [0], [0], [1], [0, 0, 1, 1], [], []>} : vector<8x32xbf16>, vector<32x96xbf16>, vector<8x96xf32> -> vector<8x96xf32>
    %158 = vector.extract_strided_slice %154 {offsets = [0, 0], sizes = [8, 32], strides = [1, 1]} : vector<8x96xf32> to vector<8x32xf32>
    %159 = vector.extract_strided_slice %157 {offsets = [0, 0], sizes = [8, 32], strides = [1, 1]} : vector<8x96xf32> to vector<8x32xf32>
    %160 = arith.addf %158, %159 : vector<8x32xf32>
    %161 = arith.negf %160 : vector<8x32xf32>
    %162 = math.exp %161 : vector<8x32xf32>
    %cst_63 = arith.constant 1.000000e+00 : f32
    %163 = vector.broadcast %cst_63 : f32 to vector<8x32xf32>
    %164 = arith.addf %163, %162 : vector<8x32xf32>
    %165 = arith.divf %163, %164 : vector<8x32xf32>
    %166 = vector.extract_strided_slice %154 {offsets = [0, 32], sizes = [8, 32], strides = [1, 1]} : vector<8x96xf32> to vector<8x32xf32>
    %167 = vector.extract_strided_slice %157 {offsets = [0, 32], sizes = [8, 32], strides = [1, 1]} : vector<8x96xf32> to vector<8x32xf32>
    %168 = arith.addf %166, %167 : vector<8x32xf32>
    %169 = arith.negf %168 : vector<8x32xf32>
    %170 = math.exp %169 : vector<8x32xf32>
    %cst_64 = arith.constant 1.000000e+00 : f32
    %171 = vector.broadcast %cst_64 : f32 to vector<8x32xf32>
    %172 = arith.addf %171, %170 : vector<8x32xf32>
    %173 = arith.divf %171, %172 : vector<8x32xf32>
    %174 = vector.extract_strided_slice %154 {offsets = [0, 64], sizes = [8, 32], strides = [1, 1]} : vector<8x96xf32> to vector<8x32xf32>
    %175 = vector.extract_strided_slice %157 {offsets = [0, 64], sizes = [8, 32], strides = [1, 1]} : vector<8x96xf32> to vector<8x32xf32>
    %c0_65 = arith.constant 0 : index
    %c0_66 = arith.constant 0 : index
    %176 = vector.load %arg3[%c0_65, %c0_66] : memref<1x32xf32, #tpu.memory_space<vmem>>, vector<1x32xf32>
    %177 = vector.broadcast %176 : vector<1x32xf32> to vector<8x32xf32>
    %178 = arith.addf %175, %177 : vector<8x32xf32>
    %179 = arith.mulf %165, %178 : vector<8x32xf32>
    %180 = arith.addf %174, %179 : vector<8x32xf32>
    %181 = math.tanh %180 : vector<8x32xf32>
    %cst_67 = arith.constant 1.000000e+00 : f32
    %182 = vector.broadcast %cst_67 : f32 to vector<8x32xf32>
    %183 = arith.subf %182, %173 : vector<8x32xf32>
    %184 = arith.mulf %183, %181 : vector<8x32xf32>
    %185 = arith.mulf %173, %151 : vector<8x32xf32>
    %186 = arith.addf %184, %185 : vector<8x32xf32>
    %c0_68 = arith.constant 0 : index
    %c0_69 = arith.constant 0 : index
    %187 = vector.load %arg7[%c0_68, %c0_69] : memref<8x32xf32, #tpu.memory_space<vmem>>, vector<8x32xf32>
    tpu.vector_store %arg7[%c0_68, %c0_69], %186 {strides = array<i32>} : memref<8x32xf32, #tpu.memory_space<vmem>>, vector<8x32xf32>,
    %c5_i32 = arith.constant 5 : i32
    %c0_70 = arith.constant 0 : index
    %c0_71 = arith.constant 0 : index
    %188 = vector.load %arg7[%c0_70, %c0_71] : memref<8x32xf32, #tpu.memory_space<vmem>>, vector<8x32xf32>
    %189 = arith.index_cast %c5_i32 : i32 to index
    %c0_72 = arith.constant 0 : index
    %c0_73 = arith.constant 0 : index
    %190 = vector.load %arg1[%189, %c0_72, %c0_73] : memref<10x8x96xf32, #tpu.memory_space<vmem>>, vector<1x8x96xf32>
    %191 = vector.shape_cast %190 : vector<1x8x96xf32> to vector<8x96xf32>
    %192 = arith.truncf %188 : vector<8x32xf32> to vector<8x32xbf16>
    %c0_74 = arith.constant 0 : index
    %c0_75 = arith.constant 0 : index
    %193 = vector.load %arg2[%c0_74, %c0_75] : memref<32x96xbf16, #tpu.memory_space<vmem>>, vector<32x96xbf16>
    %cst_76 = arith.constant dense<0.000000e+00> : vector<8x96xf32>
    %194 = tpu.matmul %192, %193, %cst_76 {dimension_numbers = #tpu.dot_dimension_numbers<[1], [0], [0], [1], [0, 0, 1, 1], [], []>} : vector<8x32xbf16>, vector<32x96xbf16>, vector<8x96xf32> -> vector<8x96xf32>
    %195 = vector.extract_strided_slice %191 {offsets = [0, 0], sizes = [8, 32], strides = [1, 1]} : vector<8x96xf32> to vector<8x32xf32>
    %196 = vector.extract_strided_slice %194 {offsets = [0, 0], sizes = [8, 32], strides = [1, 1]} : vector<8x96xf32> to vector<8x32xf32>
    %197 = arith.addf %195, %196 : vector<8x32xf32>
    %198 = arith.negf %197 : vector<8x32xf32>
    %199 = math.exp %198 : vector<8x32xf32>
    %cst_77 = arith.constant 1.000000e+00 : f32
    %200 = vector.broadcast %cst_77 : f32 to vector<8x32xf32>
    %201 = arith.addf %200, %199 : vector<8x32xf32>
    %202 = arith.divf %200, %201 : vector<8x32xf32>
    %203 = vector.extract_strided_slice %191 {offsets = [0, 32], sizes = [8, 32], strides = [1, 1]} : vector<8x96xf32> to vector<8x32xf32>
    %204 = vector.extract_strided_slice %194 {offsets = [0, 32], sizes = [8, 32], strides = [1, 1]} : vector<8x96xf32> to vector<8x32xf32>
    %205 = arith.addf %203, %204 : vector<8x32xf32>
    %206 = arith.negf %205 : vector<8x32xf32>
    %207 = math.exp %206 : vector<8x32xf32>
    %cst_78 = arith.constant 1.000000e+00 : f32
    %208 = vector.broadcast %cst_78 : f32 to vector<8x32xf32>
    %209 = arith.addf %208, %207 : vector<8x32xf32>
    %210 = arith.divf %208, %209 : vector<8x32xf32>
    %211 = vector.extract_strided_slice %191 {offsets = [0, 64], sizes = [8, 32], strides = [1, 1]} : vector<8x96xf32> to vector<8x32xf32>
    %212 = vector.extract_strided_slice %194 {offsets = [0, 64], sizes = [8, 32], strides = [1, 1]} : vector<8x96xf32> to vector<8x32xf32>
    %c0_79 = arith.constant 0 : index
    %c0_80 = arith.constant 0 : index
    %213 = vector.load %arg3[%c0_79, %c0_80] : memref<1x32xf32, #tpu.memory_space<vmem>>, vector<1x32xf32>
    %214 = vector.broadcast %213 : vector<1x32xf32> to vector<8x32xf32>
    %215 = arith.addf %212, %214 : vector<8x32xf32>
    %216 = arith.mulf %202, %215 : vector<8x32xf32>
    %217 = arith.addf %211, %216 : vector<8x32xf32>
    %218 = math.tanh %217 : vector<8x32xf32>
    %cst_81 = arith.constant 1.000000e+00 : f32
    %219 = vector.broadcast %cst_81 : f32 to vector<8x32xf32>
    %220 = arith.subf %219, %210 : vector<8x32xf32>
    %221 = arith.mulf %220, %218 : vector<8x32xf32>
    %222 = arith.mulf %210, %188 : vector<8x32xf32>
    %223 = arith.addf %221, %222 : vector<8x32xf32>
    %c0_82 = arith.constant 0 : index
    %c0_83 = arith.constant 0 : index
    %224 = vector.load %arg7[%c0_82, %c0_83] : memref<8x32xf32, #tpu.memory_space<vmem>>, vector<8x32xf32>
    tpu.vector_store %arg7[%c0_82, %c0_83], %223 {strides = array<i32>} : memref<8x32xf32, #tpu.memory_space<vmem>>, vector<8x32xf32>,
    %c6_i32 = arith.constant 6 : i32
    %c0_84 = arith.constant 0 : index
    %c0_85 = arith.constant 0 : index
    %225 = vector.load %arg7[%c0_84, %c0_85] : memref<8x32xf32, #tpu.memory_space<vmem>>, vector<8x32xf32>
    %226 = arith.index_cast %c6_i32 : i32 to index
    %c0_86 = arith.constant 0 : index
    %c0_87 = arith.constant 0 : index
    %227 = vector.load %arg1[%226, %c0_86, %c0_87] : memref<10x8x96xf32, #tpu.memory_space<vmem>>, vector<1x8x96xf32>
    %228 = vector.shape_cast %227 : vector<1x8x96xf32> to vector<8x96xf32>
    %229 = arith.truncf %225 : vector<8x32xf32> to vector<8x32xbf16>
    %c0_88 = arith.constant 0 : index
    %c0_89 = arith.constant 0 : index
    %230 = vector.load %arg2[%c0_88, %c0_89] : memref<32x96xbf16, #tpu.memory_space<vmem>>, vector<32x96xbf16>
    %cst_90 = arith.constant dense<0.000000e+00> : vector<8x96xf32>
    %231 = tpu.matmul %229, %230, %cst_90 {dimension_numbers = #tpu.dot_dimension_numbers<[1], [0], [0], [1], [0, 0, 1, 1], [], []>} : vector<8x32xbf16>, vector<32x96xbf16>, vector<8x96xf32> -> vector<8x96xf32>
    %232 = vector.extract_strided_slice %228 {offsets = [0, 0], sizes = [8, 32], strides = [1, 1]} : vector<8x96xf32> to vector<8x32xf32>
    %233 = vector.extract_strided_slice %231 {offsets = [0, 0], sizes = [8, 32], strides = [1, 1]} : vector<8x96xf32> to vector<8x32xf32>
    %234 = arith.addf %232, %233 : vector<8x32xf32>
    %235 = arith.negf %234 : vector<8x32xf32>
    %236 = math.exp %235 : vector<8x32xf32>
    %cst_91 = arith.constant 1.000000e+00 : f32
    %237 = vector.broadcast %cst_91 : f32 to vector<8x32xf32>
    %238 = arith.addf %237, %236 : vector<8x32xf32>
    %239 = arith.divf %237, %238 : vector<8x32xf32>
    %240 = vector.extract_strided_slice %228 {offsets = [0, 32], sizes = [8, 32], strides = [1, 1]} : vector<8x96xf32> to vector<8x32xf32>
    %241 = vector.extract_strided_slice %231 {offsets = [0, 32], sizes = [8, 32], strides = [1, 1]} : vector<8x96xf32> to vector<8x32xf32>
    %242 = arith.addf %240, %241 : vector<8x32xf32>
    %243 = arith.negf %242 : vector<8x32xf32>
    %244 = math.exp %243 : vector<8x32xf32>
    %cst_92 = arith.constant 1.000000e+00 : f32
    %245 = vector.broadcast %cst_92 : f32 to vector<8x32xf32>
    %246 = arith.addf %245, %244 : vector<8x32xf32>
    %247 = arith.divf %245, %246 : vector<8x32xf32>
    %248 = vector.extract_strided_slice %228 {offsets = [0, 64], sizes = [8, 32], strides = [1, 1]} : vector<8x96xf32> to vector<8x32xf32>
    %249 = vector.extract_strided_slice %231 {offsets = [0, 64], sizes = [8, 32], strides = [1, 1]} : vector<8x96xf32> to vector<8x32xf32>
    %c0_93 = arith.constant 0 : index
    %c0_94 = arith.constant 0 : index
    %250 = vector.load %arg3[%c0_93, %c0_94] : memref<1x32xf32, #tpu.memory_space<vmem>>, vector<1x32xf32>
    %251 = vector.broadcast %250 : vector<1x32xf32> to vector<8x32xf32>
    %252 = arith.addf %249, %251 : vector<8x32xf32>
    %253 = arith.mulf %239, %252 : vector<8x32xf32>
    %254 = arith.addf %248, %253 : vector<8x32xf32>
    %255 = math.tanh %254 : vector<8x32xf32>
    %cst_95 = arith.constant 1.000000e+00 : f32
    %256 = vector.broadcast %cst_95 : f32 to vector<8x32xf32>
    %257 = arith.subf %256, %247 : vector<8x32xf32>
    %258 = arith.mulf %257, %255 : vector<8x32xf32>
    %259 = arith.mulf %247, %225 : vector<8x32xf32>
    %260 = arith.addf %258, %259 : vector<8x32xf32>
    %c0_96 = arith.constant 0 : index
    %c0_97 = arith.constant 0 : index
    %261 = vector.load %arg7[%c0_96, %c0_97] : memref<8x32xf32, #tpu.memory_space<vmem>>, vector<8x32xf32>
    tpu.vector_store %arg7[%c0_96, %c0_97], %260 {strides = array<i32>} : memref<8x32xf32, #tpu.memory_space<vmem>>, vector<8x32xf32>,
    %c7_i32 = arith.constant 7 : i32
    %c0_98 = arith.constant 0 : index
    %c0_99 = arith.constant 0 : index
    %262 = vector.load %arg7[%c0_98, %c0_99] : memref<8x32xf32, #tpu.memory_space<vmem>>, vector<8x32xf32>
    %263 = arith.index_cast %c7_i32 : i32 to index
    %c0_100 = arith.constant 0 : index
    %c0_101 = arith.constant 0 : index
    %264 = vector.load %arg1[%263, %c0_100, %c0_101] : memref<10x8x96xf32, #tpu.memory_space<vmem>>, vector<1x8x96xf32>
    %265 = vector.shape_cast %264 : vector<1x8x96xf32> to vector<8x96xf32>
    %266 = arith.truncf %262 : vector<8x32xf32> to vector<8x32xbf16>
    %c0_102 = arith.constant 0 : index
    %c0_103 = arith.constant 0 : index
    %267 = vector.load %arg2[%c0_102, %c0_103] : memref<32x96xbf16, #tpu.memory_space<vmem>>, vector<32x96xbf16>
    %cst_104 = arith.constant dense<0.000000e+00> : vector<8x96xf32>
    %268 = tpu.matmul %266, %267, %cst_104 {dimension_numbers = #tpu.dot_dimension_numbers<[1], [0], [0], [1], [0, 0, 1, 1], [], []>} : vector<8x32xbf16>, vector<32x96xbf16>, vector<8x96xf32> -> vector<8x96xf32>
    %269 = vector.extract_strided_slice %265 {offsets = [0, 0], sizes = [8, 32], strides = [1, 1]} : vector<8x96xf32> to vector<8x32xf32>
    %270 = vector.extract_strided_slice %268 {offsets = [0, 0], sizes = [8, 32], strides = [1, 1]} : vector<8x96xf32> to vector<8x32xf32>
    %271 = arith.addf %269, %270 : vector<8x32xf32>
    %272 = arith.negf %271 : vector<8x32xf32>
    %273 = math.exp %272 : vector<8x32xf32>
    %cst_105 = arith.constant 1.000000e+00 : f32
    %274 = vector.broadcast %cst_105 : f32 to vector<8x32xf32>
    %275 = arith.addf %274, %273 : vector<8x32xf32>
    %276 = arith.divf %274, %275 : vector<8x32xf32>
    %277 = vector.extract_strided_slice %265 {offsets = [0, 32], sizes = [8, 32], strides = [1, 1]} : vector<8x96xf32> to vector<8x32xf32>
    %278 = vector.extract_strided_slice %268 {offsets = [0, 32], sizes = [8, 32], strides = [1, 1]} : vector<8x96xf32> to vector<8x32xf32>
    %279 = arith.addf %277, %278 : vector<8x32xf32>
    %280 = arith.negf %279 : vector<8x32xf32>
    %281 = math.exp %280 : vector<8x32xf32>
    %cst_106 = arith.constant 1.000000e+00 : f32
    %282 = vector.broadcast %cst_106 : f32 to vector<8x32xf32>
    %283 = arith.addf %282, %281 : vector<8x32xf32>
    %284 = arith.divf %282, %283 : vector<8x32xf32>
    %285 = vector.extract_strided_slice %265 {offsets = [0, 64], sizes = [8, 32], strides = [1, 1]} : vector<8x96xf32> to vector<8x32xf32>
    %286 = vector.extract_strided_slice %268 {offsets = [0, 64], sizes = [8, 32], strides = [1, 1]} : vector<8x96xf32> to vector<8x32xf32>
    %c0_107 = arith.constant 0 : index
    %c0_108 = arith.constant 0 : index
    %287 = vector.load %arg3[%c0_107, %c0_108] : memref<1x32xf32, #tpu.memory_space<vmem>>, vector<1x32xf32>
    %288 = vector.broadcast %287 : vector<1x32xf32> to vector<8x32xf32>
    %289 = arith.addf %286, %288 : vector<8x32xf32>
    %290 = arith.mulf %276, %289 : vector<8x32xf32>
    %291 = arith.addf %285, %290 : vector<8x32xf32>
    %292 = math.tanh %291 : vector<8x32xf32>
    %cst_109 = arith.constant 1.000000e+00 : f32
    %293 = vector.broadcast %cst_109 : f32 to vector<8x32xf32>
    %294 = arith.subf %293, %284 : vector<8x32xf32>
    %295 = arith.mulf %294, %292 : vector<8x32xf32>
    %296 = arith.mulf %284, %262 : vector<8x32xf32>
    %297 = arith.addf %295, %296 : vector<8x32xf32>
    %c0_110 = arith.constant 0 : index
    %c0_111 = arith.constant 0 : index
    %298 = vector.load %arg7[%c0_110, %c0_111] : memref<8x32xf32, #tpu.memory_space<vmem>>, vector<8x32xf32>
    tpu.vector_store %arg7[%c0_110, %c0_111], %297 {strides = array<i32>} : memref<8x32xf32, #tpu.memory_space<vmem>>, vector<8x32xf32>,
    %c8_i32 = arith.constant 8 : i32
    %c0_112 = arith.constant 0 : index
    %c0_113 = arith.constant 0 : index
    %299 = vector.load %arg7[%c0_112, %c0_113] : memref<8x32xf32, #tpu.memory_space<vmem>>, vector<8x32xf32>
    %300 = arith.index_cast %c8_i32 : i32 to index
    %c0_114 = arith.constant 0 : index
    %c0_115 = arith.constant 0 : index
    %301 = vector.load %arg1[%300, %c0_114, %c0_115] : memref<10x8x96xf32, #tpu.memory_space<vmem>>, vector<1x8x96xf32>
    %302 = vector.shape_cast %301 : vector<1x8x96xf32> to vector<8x96xf32>
    %303 = arith.truncf %299 : vector<8x32xf32> to vector<8x32xbf16>
    %c0_116 = arith.constant 0 : index
    %c0_117 = arith.constant 0 : index
    %304 = vector.load %arg2[%c0_116, %c0_117] : memref<32x96xbf16, #tpu.memory_space<vmem>>, vector<32x96xbf16>
    %cst_118 = arith.constant dense<0.000000e+00> : vector<8x96xf32>
    %305 = tpu.matmul %303, %304, %cst_118 {dimension_numbers = #tpu.dot_dimension_numbers<[1], [0], [0], [1], [0, 0, 1, 1], [], []>} : vector<8x32xbf16>, vector<32x96xbf16>, vector<8x96xf32> -> vector<8x96xf32>
    %306 = vector.extract_strided_slice %302 {offsets = [0, 0], sizes = [8, 32], strides = [1, 1]} : vector<8x96xf32> to vector<8x32xf32>
    %307 = vector.extract_strided_slice %305 {offsets = [0, 0], sizes = [8, 32], strides = [1, 1]} : vector<8x96xf32> to vector<8x32xf32>
    %308 = arith.addf %306, %307 : vector<8x32xf32>
    %309 = arith.negf %308 : vector<8x32xf32>
    %310 = math.exp %309 : vector<8x32xf32>
    %cst_119 = arith.constant 1.000000e+00 : f32
    %311 = vector.broadcast %cst_119 : f32 to vector<8x32xf32>
    %312 = arith.addf %311, %310 : vector<8x32xf32>
    %313 = arith.divf %311, %312 : vector<8x32xf32>
    %314 = vector.extract_strided_slice %302 {offsets = [0, 32], sizes = [8, 32], strides = [1, 1]} : vector<8x96xf32> to vector<8x32xf32>
    %315 = vector.extract_strided_slice %305 {offsets = [0, 32], sizes = [8, 32], strides = [1, 1]} : vector<8x96xf32> to vector<8x32xf32>
    %316 = arith.addf %314, %315 : vector<8x32xf32>
    %317 = arith.negf %316 : vector<8x32xf32>
    %318 = math.exp %317 : vector<8x32xf32>
    %cst_120 = arith.constant 1.000000e+00 : f32
    %319 = vector.broadcast %cst_120 : f32 to vector<8x32xf32>
    %320 = arith.addf %319, %318 : vector<8x32xf32>
    %321 = arith.divf %319, %320 : vector<8x32xf32>
    %322 = vector.extract_strided_slice %302 {offsets = [0, 64], sizes = [8, 32], strides = [1, 1]} : vector<8x96xf32> to vector<8x32xf32>
    %323 = vector.extract_strided_slice %305 {offsets = [0, 64], sizes = [8, 32], strides = [1, 1]} : vector<8x96xf32> to vector<8x32xf32>
    %c0_121 = arith.constant 0 : index
    %c0_122 = arith.constant 0 : index
    %324 = vector.load %arg3[%c0_121, %c0_122] : memref<1x32xf32, #tpu.memory_space<vmem>>, vector<1x32xf32>
    %325 = vector.broadcast %324 : vector<1x32xf32> to vector<8x32xf32>
    %326 = arith.addf %323, %325 : vector<8x32xf32>
    %327 = arith.mulf %313, %326 : vector<8x32xf32>
    %328 = arith.addf %322, %327 : vector<8x32xf32>
    %329 = math.tanh %328 : vector<8x32xf32>
    %cst_123 = arith.constant 1.000000e+00 : f32
    %330 = vector.broadcast %cst_123 : f32 to vector<8x32xf32>
    %331 = arith.subf %330, %321 : vector<8x32xf32>
    %332 = arith.mulf %331, %329 : vector<8x32xf32>
    %333 = arith.mulf %321, %299 : vector<8x32xf32>
    %334 = arith.addf %332, %333 : vector<8x32xf32>
    %c0_124 = arith.constant 0 : index
    %c0_125 = arith.constant 0 : index
    %335 = vector.load %arg7[%c0_124, %c0_125] : memref<8x32xf32, #tpu.memory_space<vmem>>, vector<8x32xf32>
    tpu.vector_store %arg7[%c0_124, %c0_125], %334 {strides = array<i32>} : memref<8x32xf32, #tpu.memory_space<vmem>>, vector<8x32xf32>,
    %c9_i32 = arith.constant 9 : i32
    %c0_126 = arith.constant 0 : index
    %c0_127 = arith.constant 0 : index
    %336 = vector.load %arg7[%c0_126, %c0_127] : memref<8x32xf32, #tpu.memory_space<vmem>>, vector<8x32xf32>
    %337 = arith.index_cast %c9_i32 : i32 to index
    %c0_128 = arith.constant 0 : index
    %c0_129 = arith.constant 0 : index
    %338 = vector.load %arg1[%337, %c0_128, %c0_129] : memref<10x8x96xf32, #tpu.memory_space<vmem>>, vector<1x8x96xf32>
    %339 = vector.shape_cast %338 : vector<1x8x96xf32> to vector<8x96xf32>
    %340 = arith.truncf %336 : vector<8x32xf32> to vector<8x32xbf16>
    %c0_130 = arith.constant 0 : index
    %c0_131 = arith.constant 0 : index
    %341 = vector.load %arg2[%c0_130, %c0_131] : memref<32x96xbf16, #tpu.memory_space<vmem>>, vector<32x96xbf16>
    %cst_132 = arith.constant dense<0.000000e+00> : vector<8x96xf32>
    %342 = tpu.matmul %340, %341, %cst_132 {dimension_numbers = #tpu.dot_dimension_numbers<[1], [0], [0], [1], [0, 0, 1, 1], [], []>} : vector<8x32xbf16>, vector<32x96xbf16>, vector<8x96xf32> -> vector<8x96xf32>
    %343 = vector.extract_strided_slice %339 {offsets = [0, 0], sizes = [8, 32], strides = [1, 1]} : vector<8x96xf32> to vector<8x32xf32>
    %344 = vector.extract_strided_slice %342 {offsets = [0, 0], sizes = [8, 32], strides = [1, 1]} : vector<8x96xf32> to vector<8x32xf32>
    %345 = arith.addf %343, %344 : vector<8x32xf32>
    %346 = arith.negf %345 : vector<8x32xf32>
    %347 = math.exp %346 : vector<8x32xf32>
    %cst_133 = arith.constant 1.000000e+00 : f32
    %348 = vector.broadcast %cst_133 : f32 to vector<8x32xf32>
    %349 = arith.addf %348, %347 : vector<8x32xf32>
    %350 = arith.divf %348, %349 : vector<8x32xf32>
    %351 = vector.extract_strided_slice %339 {offsets = [0, 32], sizes = [8, 32], strides = [1, 1]} : vector<8x96xf32> to vector<8x32xf32>
    %352 = vector.extract_strided_slice %342 {offsets = [0, 32], sizes = [8, 32], strides = [1, 1]} : vector<8x96xf32> to vector<8x32xf32>
    %353 = arith.addf %351, %352 : vector<8x32xf32>
    %354 = arith.negf %353 : vector<8x32xf32>
    %355 = math.exp %354 : vector<8x32xf32>
    %cst_134 = arith.constant 1.000000e+00 : f32
    %356 = vector.broadcast %cst_134 : f32 to vector<8x32xf32>
    %357 = arith.addf %356, %355 : vector<8x32xf32>
    %358 = arith.divf %356, %357 : vector<8x32xf32>
    %359 = vector.extract_strided_slice %339 {offsets = [0, 64], sizes = [8, 32], strides = [1, 1]} : vector<8x96xf32> to vector<8x32xf32>
    %360 = vector.extract_strided_slice %342 {offsets = [0, 64], sizes = [8, 32], strides = [1, 1]} : vector<8x96xf32> to vector<8x32xf32>
    %c0_135 = arith.constant 0 : index
    %c0_136 = arith.constant 0 : index
    %361 = vector.load %arg3[%c0_135, %c0_136] : memref<1x32xf32, #tpu.memory_space<vmem>>, vector<1x32xf32>
    %362 = vector.broadcast %361 : vector<1x32xf32> to vector<8x32xf32>
    %363 = arith.addf %360, %362 : vector<8x32xf32>
    %364 = arith.mulf %350, %363 : vector<8x32xf32>
    %365 = arith.addf %359, %364 : vector<8x32xf32>
    %366 = math.tanh %365 : vector<8x32xf32>
    %cst_137 = arith.constant 1.000000e+00 : f32
    %367 = vector.broadcast %cst_137 : f32 to vector<8x32xf32>
    %368 = arith.subf %367, %358 : vector<8x32xf32>
    %369 = arith.mulf %368, %366 : vector<8x32xf32>
    %370 = arith.mulf %358, %336 : vector<8x32xf32>
    %371 = arith.addf %369, %370 : vector<8x32xf32>
    %c0_138 = arith.constant 0 : index
    %c0_139 = arith.constant 0 : index
    %372 = vector.load %arg7[%c0_138, %c0_139] : memref<8x32xf32, #tpu.memory_space<vmem>>, vector<8x32xf32>
    tpu.vector_store %arg7[%c0_138, %c0_139], %371 {strides = array<i32>} : memref<8x32xf32, #tpu.memory_space<vmem>>, vector<8x32xf32>,
    %c10_i32 = arith.constant 10 : i32
    %c0_i32_140 = arith.constant 0 : i32
    %373 = arith.cmpi eq, %arg0, %c0_i32_140 : i32
    %374 = arith.extui %373 : i1 to i32
    %c0_i32_141 = arith.constant 0 : i32
    %375 = arith.cmpi ne, %374, %c0_i32_141 : i32
    scf.if %375 {
      %c0_142 = arith.constant 0 : index
      %c0_143 = arith.constant 0 : index
      %376 = vector.load %arg7[%c0_142, %c0_143] : memref<8x32xf32, #tpu.memory_space<vmem>>, vector<8x32xf32>
      %377 = arith.truncf %376 : vector<8x32xf32> to vector<8x32xbf16>
      %c0_144 = arith.constant 0 : index
      %c0_145 = arith.constant 0 : index
      %378 = vector.load %arg4[%c0_144, %c0_145] : memref<32x4xbf16, #tpu.memory_space<vmem>>, vector<32x4xbf16>
      %cst_146 = arith.constant dense<0.000000e+00> : vector<8x4xf32>
      %379 = tpu.matmul %377, %378, %cst_146 {dimension_numbers = #tpu.dot_dimension_numbers<[1], [0], [0], [1], [0, 0, 1, 1], [], []>} : vector<8x32xbf16>, vector<32x4xbf16>, vector<8x4xf32> -> vector<8x4xf32>
      %c0_147 = arith.constant 0 : index
      %c0_148 = arith.constant 0 : index
      %380 = vector.load %arg5[%c0_147, %c0_148] : memref<1x4xf32, #tpu.memory_space<vmem>>, vector<1x4xf32>
      %381 = vector.broadcast %380 : vector<1x4xf32> to vector<8x4xf32>
      %382 = arith.addf %379, %381 : vector<8x4xf32>
      %c0_149 = arith.constant 0 : index
      %c0_150 = arith.constant 0 : index
      %383 = vector.load %arg6[%c0_149, %c0_150] : memref<8x4xf32, #tpu.memory_space<vmem>>, vector<8x4xf32>
      tpu.vector_store %arg6[%c0_149, %c0_150], %382 {strides = array<i32>} : memref<8x4xf32, #tpu.memory_space<vmem>>, vector<8x4xf32>,
    } else {
    }
    return
  }
  func.func @transform_0(%arg0: i32) -> (i32, i32, i32) {
    %c0_i32 = arith.constant 0 : i32
    %c0_i32_0 = arith.constant 0 : i32
    %c0_i32_1 = arith.constant 0 : i32
    return %arg0, %c0_i32, %c0_i32_0 : i32, i32, i32
  }
  func.func @transform_1(%arg0: i32) -> (i32, i32) {
    %c0_i32 = arith.constant 0 : i32
    %c0_i32_0 = arith.constant 0 : i32
    %c0_i32_1 = arith.constant 0 : i32
    return %c0_i32, %c0_i32_0 : i32, i32
  }
  func.func @transform_2(%arg0: i32) -> (i32, i32) {
    %c0_i32 = arith.constant 0 : i32
    %c0_i32_0 = arith.constant 0 : i32
    %c0_i32_1 = arith.constant 0 : i32
    return %c0_i32, %c0_i32_0 : i32, i32
  }
  func.func @transform_3(%arg0: i32) -> (i32, i32) {
    %c0_i32 = arith.constant 0 : i32
    %c0_i32_0 = arith.constant 0 : i32
    %c0_i32_1 = arith.constant 0 : i32
    return %c0_i32, %c0_i32_0 : i32, i32
  }
  func.func @transform_4(%arg0: i32) -> (i32, i32) {
    %c0_i32 = arith.constant 0 : i32
    %c0_i32_0 = arith.constant 0 : i32
    %c0_i32_1 = arith.constant 0 : i32
    return %c0_i32, %c0_i32_0 : i32, i32
  }
  func.func @transform_5(%arg0: i32) -> (i32, i32) {
    %c0_i32 = arith.constant 0 : i32
    %c0_i32_0 = arith.constant 0 : i32
    %c0_i32_1 = arith.constant 0 : i32
    return %c0_i32, %c0_i32_0 : i32, i32
  }
}

</mosaic_0001>

<bundles_post_ra>
// kernel: rnn_forward.4
= control target key start
LH: loop header
LB: loop body
LE: loop exit
PB: predicated region body
PF: predicated region fallthrough
CT: control target
= control target key end

     0   :  { %v219_v0 = vmov 0.0   ;;  %vm220_vm0 = vmmov 0   ;;  %vm65_vm1 = vcmask 130048   ;;  %vm154_vm2 = vcmask 785408   ;;  %s307_s1 = inlined_call_operand.vmem [shape: bf16[16,96], index: 1, kind: input, shape index: {}]   ;;  %s308_s0 = inlined_call_operand.vmem [shape: bf16[80,16], index: 0, kind: input, shape index: {}]   ;;  %s309_s2 = inlined_call_operand.vmem [shape: f32[1,96], index: 2, kind: input, shape index: {}]   ;;  %s310_s3 = inlined_call_operand.vmem [shape: f32[80,96], index: 3, kind: output, shape index: {}]  }
   0x1   :  { %187 = vmatprep.subr.bf16.mxu0 %v219_v0  ;;  %v213_v1 = vld [vmem:[%s307_s1] sm:$0xff]   ;;  %189 = vmatprep.mubr.msk.bf16.mxu0 %vm220_vm0, %v219_v0  ;;  %v215_v3 = vld [vmem:[%s308_s0 + $0x18] sm:$0xff]   ;;  %v216_v4 = vld [vmem:[%s308_s0 + $0x8] sm:$0xff]  }
   0x2   :  { %v214_v2 = vld [vmem:[%s308_s0] sm:$0xff]   ;;  %209 = vmatprep.subr.bf16.mxu1 %v219_v0  ;;  %201 = vmatprep.mubr.msk.bf16.mxu1 %vm220_vm0, %v219_v0  ;;  %v218_v6 = vld [vmem:[%s308_s0 + $0x10] sm:$0xff]  }
   0x3   :  { %188 = vmatpush3.bf16.msra.mxu0 %v213_v1  ;;  %210 = vmatpush3.bf16.msra.mxu1 %v213_v1  ;;  %v217_v5 = vld [vmem:[%s308_s0 + $0x20] sm:$0xff]  }
   0x4   :  { %v169_v7 = vld [vmem:[%s309_s2] ss:$0 sm:$0xff] }
   0x6   :  { %190 = vmatmul.mubr.msk.bf16.vlgmr.msra.gmra.mrb[0].mxu0 %vm65_vm1, %v214_v2  ;;  %202 = vmatmul.mubr.msk.bf16.vlgmr.msra.gmra.mrb[0].mxu1 %vm65_vm1, %v215_v3 }
   0x7   :  { %193 = vmatprep.mubr.msk.bf16.mxu0 %vm220_vm0, %v219_v0  ;;  %205 = vmatprep.mubr.msk.bf16.mxu1 %vm220_vm0, %v219_v0 }
   0xe   :  { %194 = vmatmul.mubr.msk.bf16.gmra.mrb[4].mxu0 %vm65_vm1, %v216_v4  ;;  %206 = vmatmul.mubr.msk.bf16.gmra.mrb[4].mxu1 %vm65_vm1, %v217_v5 }
   0xf   :  { %197 = vmatprep.mubr.msk.bf16.mxu0 %vm220_vm0, %v219_v0 }
  0x16   :  { %198 = vmatmul.mubr.msk.bf16.gmra.mrb[8].mxu0 %vm65_vm1, %v218_v6 }
  0xd9   :  { %v115_v8 = vpop.f32.mrb[0].mxu0  ;;  %v139_v9 = vpop.f32.mrb[0].mxu1 }
  0xda   :  { %v116_v10 = vadd.f32 %v169_v7, %v115_v8  ;;  %v191_v11 = vpop.f32.mrb[1].mxu0  ;;  %v140_v12 = vadd.f32 %v169_v7, %v139_v9  ;;  %v203_v13 = vpop.f32.mrb[1].mxu1 }
  0xdb   :  { %v118_v14 = vpop.f32.mrb[2].mxu0  ;;  %v142_v15 = vpop.f32.mrb[2].mxu1 }
  0xdc   :  { %155 = vst.msk [vmem:[%s310_s3] sm:$0xff] %vm154_vm2, %v116_v10  ;;  %v119_v16 = vadd.f32 %v169_v7, %v118_v14  ;;  %v192_v17 = vpop.f32.mrb[3].mxu0  ;;  %161 = vst.msk [vmem:[%s310_s3 + $0x30] sm:$0xff] %vm154_vm2, %v140_v12  ;;  %v143_v18 = vadd.f32 %v169_v7, %v142_v15  ;;  %v204_v19 = vpop.f32.mrb[3].mxu1 }
  0xde   :  { %156 = vst.msk [vmem:[%s310_s3 + $0x8] sm:$0xff] %vm154_vm2, %v119_v16  ;;  %162 = vst.msk [vmem:[%s310_s3 + $0x38] sm:$0xff] %vm154_vm2, %v143_v18 }
  0xe1   :  { %v123_v20 = vpop.f32.mrb[4].mxu0  ;;  %v147_v21 = vpop.f32.mrb[4].mxu1 }
  0xe2   :  { %v124_v22 = vadd.f32 %v169_v7, %v123_v20  ;;  %v195_v23 = vpop.f32.mrb[5].mxu0  ;;  %v148_v24 = vadd.f32 %v169_v7, %v147_v21  ;;  %v207_v25 = vpop.f32.mrb[5].mxu1 }
  0xe3   :  { %v126_v26 = vpop.f32.mrb[6].mxu0  ;;  %v150_v27 = vpop.f32.mrb[6].mxu1 }
  0xe4   :  { %157 = vst.msk [vmem:[%s310_s3 + $0x10] sm:$0xff] %vm154_vm2, %v124_v22  ;;  %v127_v28 = vadd.f32 %v169_v7, %v126_v26  ;;  %v196_v29 = vpop.f32.mrb[7].mxu0  ;;  %163 = vst.msk [vmem:[%s310_s3 + $0x40] sm:$0xff] %vm154_vm2, %v148_v24  ;;  %v151_v30 = vadd.f32 %v169_v7, %v150_v27  ;;  %v208_v31 = vpop.f32.mrb[7].mxu1 }
  0xe6   :  { %158 = vst.msk [vmem:[%s310_s3 + $0x18] sm:$0xff] %vm154_vm2, %v127_v28  ;;  %164 = vst.msk [vmem:[%s310_s3 + $0x48] sm:$0xff] %vm154_vm2, %v151_v30 }
  0xe9   :  { %v131_v32 = vpop.f32.mrb[8].mxu0 }
  0xea   :  { %v132_v33 = vadd.f32 %v169_v7, %v131_v32  ;;  %v199_v34 = vpop.f32.mrb[9].mxu0 }
  0xeb   :  { %v134_v35 = vpop.f32.mrb[10].mxu0 }
  0xec   :  { %159 = vst.msk [vmem:[%s310_s3 + $0x20] sm:$0xff] %vm154_vm2, %v132_v33  ;;  %v135_v36 = vadd.f32 %v169_v7, %v134_v35  ;;  %v200_v37 = vpop.f32.mrb[11].mxu0 }
  0xee   :  { %160 = vst.msk [vmem:[%s310_s3 + $0x28] sm:$0xff] %vm154_vm2, %v135_v36 }

// kernel: rnn_forward.6
= control target key start
LH: loop header
LB: loop body
LE: loop exit
PB: predicated region body
PF: predicated region fallthrough
CT: control target
= control target key end

     0   :  { %v234_v0 = vmov 0.0   ;;  %vm235_vm0 = vmmov 0   ;;  %vm73_vm1 = vcmask 261120   ;;  %vm162_vm2 = vcmask 785408   ;;  %s325_s1 = inlined_call_operand.vmem [shape: bf16[32,96], index: 1, kind: input, shape index: {}]   ;;  %s326_s0 = inlined_call_operand.vmem [shape: bf16[80,32], index: 0, kind: input, shape index: {}]   ;;  %s327_s2 = inlined_call_operand.vmem [shape: f32[1,96], index: 2, kind: input, shape index: {}]   ;;  %s328_s3 = inlined_call_operand.vmem [shape: f32[80,96], index: 3, kind: output, shape index: {}]  }
   0x1   :  { %197 = vmatprep.subr.bf16.mxu0 %v234_v0  ;;  %v227_v1 = vld [vmem:[%s325_s1] sm:$0xff]   ;;  %221 = vmatprep.subr.bf16.mxu1 %v234_v0  ;;  %v228_v2 = vld [vmem:[%s325_s1 + $0x8] sm:$0xff]   ;;  %v230_v4 = vld [vmem:[%s326_s0 + $0x18] sm:$0xff]  }
   0x2   :  { %201 = vmatprep.mubr.msk.bf16.mxu0 %vm235_vm0, %v234_v0  ;;  %213 = vmatprep.mubr.msk.bf16.mxu1 %vm235_vm0, %v234_v0  ;;  %v229_v3 = vld [vmem:[%s326_s0] sm:$0xff]   ;;  %v231_v5 = vld [vmem:[%s326_s0 + $0x8] sm:$0xff]   ;;  %v233_v7 = vld [vmem:[%s326_s0 + $0x10] sm:$0xff]  }
   0x3   :  { %198 = vmatpush3.bf16.msra.mxu0 %v227_v1  ;;  %223 = vmatpush3.bf16.msra.mxu1 %v227_v1  ;;  %v232_v6 = vld [vmem:[%s326_s0 + $0x20] sm:$0xff]  }
   0x4   :  { %199 = vmatprep.subr.bf16.mxu0 %v234_v0  ;;  %222 = vmatprep.subr.bf16.mxu1 %v234_v0  ;;  %v177_v8 = vld [vmem:[%s327_s2] ss:$0 sm:$0xff] }
   0x7   :  { %200 = vmatpush3.bf16.msra.mxu0 %v228_v2  ;;  %224 = vmatpush3.bf16.msra.mxu1 %v228_v2 }
   0xa   :  { %202 = vmatmul.mubr.msk.bf16.vlgmr.msra.gmra.mrb[0].mxu0 %vm73_vm1, %v229_v3  ;;  %214 = vmatmul.mubr.msk.bf16.vlgmr.msra.gmra.mrb[0].mxu1 %vm73_vm1, %v230_v4 }
   0xb   :  { %205 = vmatprep.mubr.msk.bf16.mxu0 %vm235_vm0, %v234_v0  ;;  %217 = vmatprep.mubr.msk.bf16.mxu1 %vm235_vm0, %v234_v0 }
  0x12   :  { %206 = vmatmul.mubr.msk.bf16.gmra.mrb[4].mxu0 %vm73_vm1, %v231_v5  ;;  %218 = vmatmul.mubr.msk.bf16.gmra.mrb[4].mxu1 %vm73_vm1, %v232_v6 }
  0x13   :  { %209 = vmatprep.mubr.msk.bf16.mxu0 %vm235_vm0, %v234_v0 }
  0x1a   :  { %210 = vmatmul.mubr.msk.bf16.gmra.mrb[8].mxu0 %vm73_vm1, %v233_v7 }
  0xdd   :  { %v123_v9 = vpop.f32.mrb[0].mxu0  ;;  %v147_v10 = vpop.f32.mrb[0].mxu1 }
  0xde   :  { %v124_v11 = vadd.f32 %v177_v8, %v123_v9  ;;  %v203_v12 = vpop.f32.mrb[1].mxu0  ;;  %v148_v13 = vadd.f32 %v177_v8, %v147_v10  ;;  %v215_v14 = vpop.f32.mrb[1].mxu1 }
  0xdf   :  { %v126_v15 = vpop.f32.mrb[2].mxu0  ;;  %v150_v16 = vpop.f32.mrb[2].mxu1 }
  0xe0   :  { %163 = vst.msk [vmem:[%s328_s3] sm:$0xff] %vm162_vm2, %v124_v11  ;;  %v127_v17 = vadd.f32 %v177_v8, %v126_v15  ;;  %v204_v18 = vpop.f32.mrb[3].mxu0  ;;  %169 = vst.msk [vmem:[%s328_s3 + $0x30] sm:$0xff] %vm162_vm2, %v148_v13  ;;  %v151_v19 = vadd.f32 %v177_v8, %v150_v16  ;;  %v216_v20 = vpop.f32.mrb[3].mxu1 }
  0xe2   :  { %164 = vst.msk [vmem:[%s328_s3 + $0x8] sm:$0xff] %vm162_vm2, %v127_v17  ;;  %170 = vst.msk [vmem:[%s328_s3 + $0x38] sm:$0xff] %vm162_vm2, %v151_v19 }
  0xe5   :  { %v131_v21 = vpop.f32.mrb[4].mxu0  ;;  %v155_v22 = vpop.f32.mrb[4].mxu1 }
  0xe6   :  { %v132_v23 = vadd.f32 %v177_v8, %v131_v21  ;;  %v207_v24 = vpop.f32.mrb[5].mxu0  ;;  %v156_v25 = vadd.f32 %v177_v8, %v155_v22  ;;  %v219_v26 = vpop.f32.mrb[5].mxu1 }
  0xe7   :  { %v134_v27 = vpop.f32.mrb[6].mxu0  ;;  %v158_v28 = vpop.f32.mrb[6].mxu1 }
  0xe8   :  { %165 = vst.msk [vmem:[%s328_s3 + $0x10] sm:$0xff] %vm162_vm2, %v132_v23  ;;  %v135_v29 = vadd.f32 %v177_v8, %v134_v27  ;;  %v208_v30 = vpop.f32.mrb[7].mxu0  ;;  %171 = vst.msk [vmem:[%s328_s3 + $0x40] sm:$0xff] %vm162_vm2, %v156_v25  ;;  %v159_v31 = vadd.f32 %v177_v8, %v158_v28  ;;  %v220_v32 = vpop.f32.mrb[7].mxu1 }
  0xea   :  { %166 = vst.msk [vmem:[%s328_s3 + $0x18] sm:$0xff] %vm162_vm2, %v135_v29  ;;  %172 = vst.msk [vmem:[%s328_s3 + $0x48] sm:$0xff] %vm162_vm2, %v159_v31 }
  0xed   :  { %v139_v33 = vpop.f32.mrb[8].mxu0 }
  0xee   :  { %v140_v34 = vadd.f32 %v177_v8, %v139_v33  ;;  %v211_v35 = vpop.f32.mrb[9].mxu0 }
  0xef   :  { %v142_v36 = vpop.f32.mrb[10].mxu0 }
  0xf0   :  { %167 = vst.msk [vmem:[%s328_s3 + $0x20] sm:$0xff] %vm162_vm2, %v140_v34  ;;  %v143_v37 = vadd.f32 %v177_v8, %v142_v36  ;;  %v212_v38 = vpop.f32.mrb[11].mxu0 }
  0xf2   :  { %168 = vst.msk [vmem:[%s328_s3 + $0x28] sm:$0xff] %vm162_vm2, %v143_v37 }

// kernel: rnn_forward.5
= control target key start
LH: loop header
LB: loop body
LE: loop exit
PB: predicated region body
PF: predicated region fallthrough
CT: control target
= control target key end

     0   :  { %vm19_vm0 = vcmask 261120   ;;  %v1478_v0 = vmov 0.0   ;;  %vm1479_vm1 = vmmov 0   ;;  %s1480_s18 = smov 64   ;;  %s1482_s21 = smov 96   ;;  %vm136_vm2 = vcmask 257024   ;;  %s1820_s1 = inlined_call_operand.vmem [shape: bf16[32,96], index: 1, kind: input, shape index: {}]   ;;  %s1821_s2 = inlined_call_operand.vmem [shape: f32[1,32], index: 2, kind: input, shape index: {}]   ;;  %s1822_s0 = inlined_call_operand.vmem [shape: f32[10,8,96], index: 0, kind: input, shape index: {}]   ;;  %s1823_s3 = inlined_call_operand.vmem [shape: bf16[10,8,32], index: 3, kind: output, shape index: {}]  }
   0x1   :  { %1313 = vmatprep.subr.bf16.mxu0 %v1478_v0  ;;  %v1398_v1 = vld [vmem:[%s1820_s1] sm:$0xff]   ;;  %1317 = vmatprep.mubr.msk.bf16.mxu0 %vm1479_vm1, %v1478_v0  ;;  %20 = vst.msk [vmem:[#allocation2] sm:$0xff] %vm19_vm0, %v1478_v0  ;;  %v1399_v2 = vld [vmem:[%s1820_s1 + $0x8] sm:$0xff]  }
   0x2   :  { %1321 = vmatprep.subr.bf16.mxu1 %v1478_v0  ;;  %1325 = vmatprep.mubr.msk.bf16.mxu1 %vm1479_vm1, %v1478_v0  ;;  %v1520_v3 = vld [vmem:[%s1821_s2] ss:$0 sm:$0xff]  ;;  %s1481_s2 = smov 32   ;;  %v1401_v24 = vld [vmem:[%s1820_s1 + $0x8] sm:$0xff]  }
   0x3   :  { %1314 = vmatpush3.bf16.msra.mxu0 %v1398_v1  ;;  %97 = vrot.lane.b32.xlu0 %v1520_v3, %s1480_s18  ;;  %v22_v12 = vld [vmem:[%s1822_s0] sm:$0xff]  ;;  %v1201_v40 = vld [vmem:[%s1822_s0 + $0x8] sm:$0xff] }
   0x4   :  { %1315 = vmatprep.subr.bf16.mxu0 %v1478_v0  ;;  %v1400_v23 = vld [vmem:[%s1820_s1] sm:$0xff]   ;;  %v1403_v52 = vld [vmem:[%s1820_s1 + $0x8] sm:$0xff]  }
   0x5   :  { %1322 = vmatpush3.bf16.msra.mxu1 %v1400_v23  ;;  %v1402_v51 = vld [vmem:[%s1820_s1] sm:$0xff]  }
   0x6   :  { %1323 = vmatprep.subr.bf16.mxu1 %v1478_v0 }
   0x7   :  { %1316 = vmatpush3.bf16.msra.mxu0 %v1399_v2 }
   0x8   :  { %v21_v4 = vld [vmem:[#allocation2] sm:$0xff]  ;;  %1329 = vmatprep.subr.bf16.mxu0 %v1478_v0 }
   0x9   :  { %v23_v5 = vpack.c.bf16 %v21_v4, %v21_v4  ;;  %1324 = vmatpush3.bf16.msra.mxu1 %v1401_v24 }
   0xa   :  { %1337 = vmatprep.subr.bf16.mxu1 %v1478_v0 }
   0xb   :  { %1318 = vmatmul.mubr.msk.bf16.vlgmr.msra.gmra.mrb[0].mxu0 %vm19_vm0, %v23_v5 }
   0xc   :  { %1333 = vmatprep.mubr.msk.bf16.mxu0 %vm1479_vm1, %v1478_v0  ;;  %1330 = vmatpush3.bf16.msra.mxu0 %v1402_v51 }
   0xd   :  { %1331 = vmatprep.subr.bf16.mxu0 %v1478_v0 }
  0x10   :  { %1332 = vmatpush3.bf16.msra.mxu0 %v1403_v52 }
  0x11   :  { %1345 = vmatprep.subr.bf16.mxu0 %v1478_v0 }
  0x75   :  { %v98_v6 = vpop.permute.xlu0 %97 }
  0xde   :  { %v78_v7 = vpop.f32.mrb[0].mxu0 }
  0xdf   :  { %v100_v8 = vadd.f32 %v98_v6, %v78_v7  ;;  %v1319_v9 = vpop.f32.mrb[1].mxu0  ;;  %v84_v13 = vadd.f32 %v78_v7, %v22_v12  ;;  %v1209_v6 = vld [vmem:[%s1822_s0 + $0x10] sm:$0xff] }
  0xe0   :  { %v81_v10 = vpop.f32.mrb[2].mxu0 }
  0xe1   :  { %102 = vrot.lane.b32.xlu0 %v100_v8, %s1480_s18  ;;  %v1320_v11 = vpop.f32.mrb[3].mxu0  ;;  %v1198_v14 = vmul.f32 -1.442695, %v84_v13 }
  0xe3   :  { %1418 = vpow2.f32 %v1198_v14 }
  0xe5   :  { %119 = vrot.lane.b32.xlu0 %v21_v4, %s1481_s2 }
  0xe9   :  { %214 = vrot.lane.b32.xlu0 %v1520_v3, %s1480_s18 }
  0xed   :  { %v1419_v15 = vpop.eup %1418 }
  0xee   :  { %v88_v16 = vadd.f32 1.0, %v1419_v15 }
  0xf0   :  { %1420 = vrcp.f32 %v88_v16 }
  0xfa   :  { %v1421_v17 = vpop.eup %1420 }
  0xfb   :  { %v112_v26 = vsub.f32 1.0, %v1421_v17 }
 0x153   :  { %v103_v18 = vpop.permute.xlu0 %102 }
 0x154   :  { %v105_v19 = vmul.f32 %v1421_v17, %v103_v18  ;;  %v1405_v18 = vld [vmem:[%s1820_s1 + $0x8] sm:$0xff]  }
 0x156   :  { %107 = vrot.lane.b32.xlu1 %v105_v19, %s1480_s18 }
 0x157   :  { %v120_v25 = vpop.permute.xlu0 %119 }
 0x158   :  { %v122_v28 = vmul.f32 %v1421_v17, %v120_v25  ;;  %v1404_v17 = vld [vmem:[%s1820_s1] sm:$0xff]  }
 0x15b   :  { %v215_v34 = vpop.permute.xlu0 %214 }
 0x1c8   :  { %v108_v20 = vpop.permute.xlu1 %107 }
 0x1c9   :  { %v110_v21 = vadd.f32 %v108_v20, %v22_v12 }
 0x1cb   :  { %1422 = vtanh.f32 %v110_v21 }
 0x1d5   :  { %v1423_v22 = vpop.eup %1422 }
 0x1d6   :  { %114 = vrot.lane.b32.xlu1 %v1423_v22, %s1482_s21 }
 0x248   :  { %v115_v27 = vpop.permute.xlu1 %114 }
 0x249   :  { %v117_v29 = vmul.f32 %v115_v27, %v112_v26 }
 0x24b   :  { %v1546_v30 = vadd.f32 %v122_v28, %v117_v29 }
 0x24d   :  { %125 = vrot.lane.b32.xlu1 %v1546_v30, %s1482_s21 }
 0x2bf   :  { %v126_v31 = vpop.permute.xlu1 %125 }
 0x2c0   :  { %128 = vst.msk [vmem:[#allocation2] sm:$0xff] %vm19_vm0, %v126_v31 }
 0x2c7   :  { %v138_v32 = vld [vmem:[#allocation2] sm:$0xff] }
 0x2c8   :  { %v141_v33 = vpack.c.bf16 %v138_v32, %v138_v32 }
 0x2ca   :  { %1326 = vmatmul.mubr.msk.bf16.vlgmr.msra.gmra.mrb[0].mxu1 %vm19_vm0, %v141_v33 }
 0x2cb   :  { %1341 = vmatprep.mubr.msk.bf16.mxu1 %vm1479_vm1, %v1478_v0  ;;  %1338 = vmatpush3.bf16.msra.mxu1 %v1404_v17 }
 0x2cc   :  { %1339 = vmatprep.subr.bf16.mxu1 %v1478_v0 }
 0x2cf   :  { %1340 = vmatpush3.bf16.msra.mxu1 %v1405_v18 }
 0x2d0   :  { %1353 = vmatprep.subr.bf16.mxu1 %v1478_v0 }
 0x39d   :  { %v195_v35 = vpop.f32.mrb[0].mxu1 }
 0x39e   :  { %v217_v36 = vadd.f32 %v215_v34, %v195_v35  ;;  %v1327_v37 = vpop.f32.mrb[1].mxu1  ;;  %v201_v41 = vadd.f32 %v1201_v40, %v195_v35  ;;  %v1217_v35 = vld [vmem:[%s1822_s0 + $0x18] sm:$0xff] }
 0x39f   :  { %v198_v38 = vpop.f32.mrb[2].mxu1 }
 0x3a0   :  { %219 = vrot.lane.b32.xlu1 %v217_v36, %s1480_s18  ;;  %v1328_v39 = vpop.f32.mrb[3].mxu1  ;;  %v1205_v42 = vmul.f32 -1.442695, %v201_v41 }
 0x3a2   :  { %1424 = vpow2.f32 %v1205_v42 }
 0x3ac   :  { %v1425_v43 = vpop.eup %1424 }
 0x3ad   :  { %v205_v44 = vadd.f32 1.0, %v1425_v43 }
 0x3af   :  { %1426 = vrcp.f32 %v205_v44 }
 0x3b9   :  { %v1427_v45 = vpop.eup %1426 }
 0x3ba   :  { %v229_v54 = vsub.f32 1.0, %v1427_v45 }
 0x412   :  { %v220_v46 = vpop.permute.xlu1 %219 }
 0x413   :  { %v222_v47 = vmul.f32 %v1427_v45, %v220_v46  ;;  %v1406_v46 = vld [vmem:[%s1820_s1] sm:$0xff]  }
 0x415   :  { %224 = vrot.lane.b32.xlu0 %v222_v47, %s1480_s18  ;;  %v1407_v47 = vld [vmem:[%s1820_s1 + $0x8] sm:$0xff]  }
 0x419   :  { %236 = vrot.lane.b32.xlu0 %v138_v32, %s1481_s2 }
 0x41d   :  { %331 = vrot.lane.b32.xlu0 %v1520_v3, %s1480_s18 }
 0x487   :  { %v225_v48 = vpop.permute.xlu0 %224 }
 0x488   :  { %v227_v49 = vadd.f32 %v1201_v40, %v225_v48 }
 0x48a   :  { %1428 = vtanh.f32 %v227_v49 }
 0x48b   :  { %v237_v53 = vpop.permute.xlu0 %236 }
 0x48c   :  { %v239_v56 = vmul.f32 %v1427_v45, %v237_v53 }
 0x48f   :  { %v332_v62 = vpop.permute.xlu0 %331 }
 0x494   :  { %v1429_v50 = vpop.eup %1428 }
 0x495   :  { %231 = vrot.lane.b32.xlu1 %v1429_v50, %s1482_s21 }
 0x507   :  { %v232_v55 = vpop.permute.xlu1 %231 }
 0x508   :  { %v234_v57 = vmul.f32 %v232_v55, %v229_v54 }
 0x50a   :  { %v1571_v58 = vadd.f32 %v239_v56, %v234_v57 }
 0x50c   :  { %242 = vrot.lane.b32.xlu1 %v1571_v58, %s1482_s21 }
 0x57e   :  { %v243_v59 = vpop.permute.xlu1 %242 }
 0x57f   :  { %245 = vst.msk [vmem:[#allocation2] sm:$0xff] %vm19_vm0, %v243_v59 }
 0x586   :  { %v255_v60 = vld [vmem:[#allocation2] sm:$0xff] }
 0x587   :  { %v258_v61 = vpack.c.bf16 %v255_v60, %v255_v60 }
 0x589   :  { %1334 = vmatmul.mubr.msk.bf16.vlgmr.msra.gmra.mrb[4].mxu0 %vm19_vm0, %v258_v61 }
 0x58a   :  { %1349 = vmatprep.mubr.msk.bf16.mxu0 %vm1479_vm1, %v1478_v0  ;;  %1346 = vmatpush3.bf16.msra.mxu0 %v1406_v46 }
 0x58b   :  { %1347 = vmatprep.subr.bf16.mxu0 %v1478_v0 }
 0x58e   :  { %1348 = vmatpush3.bf16.msra.mxu0 %v1407_v47 }
 0x58f   :  { %1361 = vmatprep.subr.bf16.mxu0 %v1478_v0 }
 0x65c   :  { %v312_v63 = vpop.f32.mrb[4].mxu0 }
 0x65d   :  { %v334_v1 = vadd.f32 %v332_v62, %v312_v63  ;;  %v1335_v2 = vpop.f32.mrb[5].mxu0  ;;  %v318_v7 = vadd.f32 %v1209_v6, %v312_v63 }
 0x65e   :  { %v315_v4 = vpop.f32.mrb[6].mxu0 }
 0x65f   :  { %v1336_v5 = vpop.f32.mrb[7].mxu0  ;;  %336 = vrot.lane.b32.xlu1 %v334_v1, %s1480_s18  ;;  %v1213_v8 = vmul.f32 -1.442695, %v318_v7  ;;  %v1225_v1 = vld [vmem:[%s1822_s0 + $0x20] sm:$0xff] }
 0x661   :  { %1430 = vpow2.f32 %v1213_v8 }
 0x66b   :  { %v1431_v9 = vpop.eup %1430 }
 0x66c   :  { %v322_v10 = vadd.f32 1.0, %v1431_v9 }
 0x66e   :  { %1432 = vrcp.f32 %v322_v10 }
 0x678   :  { %v1433_v11 = vpop.eup %1432 }
 0x679   :  { %v346_v20 = vsub.f32 1.0, %v1433_v11 }
 0x6d1   :  { %v337_v12 = vpop.permute.xlu1 %336 }
 0x6d2   :  { %v339_v13 = vmul.f32 %v1433_v11, %v337_v12 }
 0x6d4   :  { %341 = vrot.lane.b32.xlu0 %v339_v13, %s1480_s18  ;;  %v1408_v13 = vld [vmem:[%s1820_s1] sm:$0xff]  }
 0x6d8   :  { %353 = vrot.lane.b32.xlu0 %v255_v60, %s1481_s2 }
 0x6dc   :  { %448 = vrot.lane.b32.xlu0 %v1520_v3, %s1480_s18 }
 0x746   :  { %v342_v14 = vpop.permute.xlu0 %341 }
 0x747   :  { %v344_v15 = vadd.f32 %v1209_v6, %v342_v14  ;;  %v1409_v14 = vld [vmem:[%s1820_s1 + $0x8] sm:$0xff]  }
 0x749   :  { %1434 = vtanh.f32 %v344_v15 }
 0x74a   :  { %v354_v19 = vpop.permute.xlu0 %353 }
 0x74b   :  { %v356_v22 = vmul.f32 %v1433_v11, %v354_v19 }
 0x74e   :  { %v449_v28 = vpop.permute.xlu0 %448 }
 0x753   :  { %v1435_v16 = vpop.eup %1434 }
 0x754   :  { %348 = vrot.lane.b32.xlu1 %v1435_v16, %s1482_s21 }
 0x7c6   :  { %v349_v21 = vpop.permute.xlu1 %348 }
 0x7c7   :  { %v351_v23 = vmul.f32 %v349_v21, %v346_v20 }
 0x7c9   :  { %v1596_v24 = vadd.f32 %v356_v22, %v351_v23 }
 0x7cb   :  { %359 = vrot.lane.b32.xlu1 %v1596_v24, %s1482_s21 }
 0x83d   :  { %v360_v25 = vpop.permute.xlu1 %359 }
 0x83e   :  { %362 = vst.msk [vmem:[#allocation2] sm:$0xff] %vm19_vm0, %v360_v25 }
 0x845   :  { %v372_v26 = vld [vmem:[#allocation2] sm:$0xff] }
 0x846   :  { %v375_v27 = vpack.c.bf16 %v372_v26, %v372_v26 }
 0x848   :  { %1342 = vmatmul.mubr.msk.bf16.vlgmr.msra.gmra.mrb[4].mxu1 %vm19_vm0, %v375_v27 }
 0x849   :  { %1357 = vmatprep.mubr.msk.bf16.mxu1 %vm1479_vm1, %v1478_v0  ;;  %1354 = vmatpush3.bf16.msra.mxu1 %v1408_v13 }
 0x84a   :  { %1355 = vmatprep.subr.bf16.mxu1 %v1478_v0 }
 0x84d   :  { %1356 = vmatpush3.bf16.msra.mxu1 %v1409_v14 }
 0x84e   :  { %1369 = vmatprep.subr.bf16.mxu1 %v1478_v0 }
 0x91b   :  { %v429_v29 = vpop.f32.mrb[4].mxu1 }
 0x91c   :  { %v451_v31 = vadd.f32 %v449_v28, %v429_v29  ;;  %v1343_v32 = vpop.f32.mrb[5].mxu1  ;;  %v435_v36 = vadd.f32 %v1217_v35, %v429_v29 }
 0x91d   :  { %v432_v33 = vpop.f32.mrb[6].mxu1  ;;  %v1233_v32 = vld [vmem:[%s1822_s0 + $0x28] sm:$0xff] }
 0x91e   :  { %453 = vrot.lane.b32.xlu1 %v451_v31, %s1480_s18  ;;  %v1344_v34 = vpop.f32.mrb[7].mxu1  ;;  %v1221_v37 = vmul.f32 -1.442695, %v435_v36 }
 0x920   :  { %1436 = vpow2.f32 %v1221_v37 }
 0x92a   :  { %v1437_v38 = vpop.eup %1436 }
 0x92b   :  { %v439_v39 = vadd.f32 1.0, %v1437_v38 }
 0x92d   :  { %1438 = vrcp.f32 %v439_v39 }
 0x937   :  { %v1439_v40 = vpop.eup %1438 }
 0x938   :  { %v463_v49 = vsub.f32 1.0, %v1439_v40 }
 0x990   :  { %v454_v41 = vpop.permute.xlu1 %453 }
 0x991   :  { %v456_v42 = vmul.f32 %v1439_v40, %v454_v41 }
 0x993   :  { %458 = vrot.lane.b32.xlu0 %v456_v42, %s1480_s18 }
 0x997   :  { %470 = vrot.lane.b32.xlu0 %v372_v26, %s1481_s2 }
 0x99b   :  { %565 = vrot.lane.b32.xlu0 %v1520_v3, %s1480_s18 }
 0xa05   :  { %v459_v43 = vpop.permute.xlu0 %458 }
 0xa06   :  { %v461_v44 = vadd.f32 %v1217_v35, %v459_v43  ;;  %v1410_v43 = vld [vmem:[%s1820_s1] sm:$0xff]  }
 0xa08   :  { %1440 = vtanh.f32 %v461_v44  ;;  %v1411_v44 = vld [vmem:[%s1820_s1 + $0x8] sm:$0xff]  }
 0xa09   :  { %v471_v48 = vpop.permute.xlu0 %470 }
 0xa0a   :  { %v473_v51 = vmul.f32 %v1439_v40, %v471_v48 }
 0xa0d   :  { %v566_v57 = vpop.permute.xlu0 %565 }
 0xa12   :  { %v1441_v45 = vpop.eup %1440 }
 0xa13   :  { %465 = vrot.lane.b32.xlu1 %v1441_v45, %s1482_s21 }
 0xa85   :  { %v466_v50 = vpop.permute.xlu1 %465 }
 0xa86   :  { %v468_v52 = vmul.f32 %v466_v50, %v463_v49 }
 0xa88   :  { %v1621_v53 = vadd.f32 %v473_v51, %v468_v52 }
 0xa8a   :  { %476 = vrot.lane.b32.xlu1 %v1621_v53, %s1482_s21 }
 0xafc   :  { %v477_v54 = vpop.permute.xlu1 %476 }
 0xafd   :  { %479 = vst.msk [vmem:[#allocation2] sm:$0xff] %vm19_vm0, %v477_v54 }
 0xb04   :  { %v489_v55 = vld [vmem:[#allocation2] sm:$0xff] }
 0xb05   :  { %v492_v56 = vpack.c.bf16 %v489_v55, %v489_v55 }
 0xb07   :  { %1350 = vmatmul.mubr.msk.bf16.vlgmr.msra.gmra.mrb[8].mxu0 %vm19_vm0, %v492_v56 }
 0xb08   :  { %1365 = vmatprep.mubr.msk.bf16.mxu0 %vm1479_vm1, %v1478_v0  ;;  %1362 = vmatpush3.bf16.msra.mxu0 %v1410_v43  ;;  %v1415_v43 = vld [vmem:[%s1820_s1 + $0x8] sm:$0xff]  }
 0xb09   :  { %1363 = vmatprep.subr.bf16.mxu0 %v1478_v0 }
 0xb0c   :  { %1364 = vmatpush3.bf16.msra.mxu0 %v1411_v44 }
 0xb0d   :  { %1377 = vmatprep.subr.bf16.mxu0 %v1478_v0 }
 0xbda   :  { %v546_v59 = vpop.f32.mrb[8].mxu0 }
 0xbdb   :  { %v568_v60 = vadd.f32 %v566_v57, %v546_v59  ;;  %v1351_v61 = vpop.f32.mrb[9].mxu0  ;;  %v552_v2 = vadd.f32 %v1225_v1, %v546_v59 }
 0xbdc   :  { %v549_v62 = vpop.f32.mrb[10].mxu0 }
 0xbdd   :  { %v1352_v63 = vpop.f32.mrb[11].mxu0  ;;  %570 = vrot.lane.b32.xlu1 %v568_v60, %s1480_s18  ;;  %v1229_v4 = vmul.f32 -1.442695, %v552_v2  ;;  %v1241_v62 = vld [vmem:[%s1822_s0 + $0x30] sm:$0xff] }
 0xbdf   :  { %1442 = vpow2.f32 %v1229_v4 }
 0xbe9   :  { %v1443_v5 = vpop.eup %1442 }
 0xbea   :  { %v556_v6 = vadd.f32 1.0, %v1443_v5 }
 0xbec   :  { %1444 = vrcp.f32 %v556_v6 }
 0xbf6   :  { %v1445_v7 = vpop.eup %1444 }
 0xbf7   :  { %v580_v16 = vsub.f32 1.0, %v1445_v7 }
 0xc4f   :  { %v571_v8 = vpop.permute.xlu1 %570 }
 0xc50   :  { %v573_v9 = vmul.f32 %v1445_v7, %v571_v8 }
 0xc52   :  { %575 = vrot.lane.b32.xlu0 %v573_v9, %s1480_s18 }
 0xc56   :  { %587 = vrot.lane.b32.xlu0 %v489_v55, %s1481_s2 }
 0xc5a   :  { %682 = vrot.lane.b32.xlu0 %v1520_v3, %s1480_s18 }
 0xcc4   :  { %v576_v10 = vpop.permute.xlu0 %575 }
 0xcc5   :  { %v578_v11 = vadd.f32 %v1225_v1, %v576_v10 }
 0xcc7   :  { %1446 = vtanh.f32 %v578_v11  ;;  %v1412_v11 = vld [vmem:[%s1820_s1] sm:$0xff]  }
 0xcc8   :  { %v588_v15 = vpop.permute.xlu0 %587 }
 0xcc9   :  { %v590_v18 = vmul.f32 %v1445_v7, %v588_v15 }
 0xccc   :  { %v683_v25 = vpop.permute.xlu0 %682 }
 0xcd1   :  { %v1447_v12 = vpop.eup %1446 }
 0xcd2   :  { %582 = vrot.lane.b32.xlu1 %v1447_v12, %s1482_s21  ;;  %v1413_v12 = vld [vmem:[%s1820_s1 + $0x8] sm:$0xff]  }
 0xd44   :  { %v583_v17 = vpop.permute.xlu1 %582 }
 0xd45   :  { %v585_v19 = vmul.f32 %v583_v17, %v580_v16 }
 0xd47   :  { %v1646_v20 = vadd.f32 %v590_v18, %v585_v19 }
 0xd49   :  { %593 = vrot.lane.b32.xlu1 %v1646_v20, %s1482_s21 }
 0xdbb   :  { %v594_v21 = vpop.permute.xlu1 %593 }
 0xdbc   :  { %596 = vst.msk [vmem:[#allocation2] sm:$0xff] %vm19_vm0, %v594_v21 }
 0xdc3   :  { %v606_v22 = vld [vmem:[#allocation2] sm:$0xff] }
 0xdc4   :  { %v609_v23 = vpack.c.bf16 %v606_v22, %v606_v22 }
 0xdc6   :  { %1358 = vmatmul.mubr.msk.bf16.vlgmr.msra.gmra.mrb[8].mxu1 %vm19_vm0, %v609_v23 }
 0xdc7   :  { %1373 = vmatprep.mubr.msk.bf16.mxu1 %vm1479_vm1, %v1478_v0  ;;  %1370 = vmatpush3.bf16.msra.mxu1 %v1412_v11  ;;  %v1416_v11 = vld [vmem:[%s1820_s1] sm:$0xff]  }
 0xdc8   :  { %1371 = vmatprep.subr.bf16.mxu1 %v1478_v0 }
 0xdcb   :  { %1372 = vmatpush3.bf16.msra.mxu1 %v1413_v12  ;;  %v1417_v12 = vld [vmem:[%s1820_s1 + $0x8] sm:$0xff]  }
 0xdcc   :  { %1385 = vmatprep.subr.bf16.mxu1 %v1478_v0 }
 0xe99   :  { %v663_v26 = vpop.f32.mrb[8].mxu1 }
 0xe9a   :  { %v685_v27 = vadd.f32 %v683_v25, %v663_v26  ;;  %v1359_v28 = vpop.f32.mrb[9].mxu1  ;;  %v669_v33 = vadd.f32 %v1233_v32, %v663_v26 }
 0xe9b   :  { %v666_v29 = vpop.f32.mrb[10].mxu1 }
 0xe9c   :  { %687 = vrot.lane.b32.xlu1 %v685_v27, %s1480_s18  ;;  %v1360_v31 = vpop.f32.mrb[11].mxu1  ;;  %v1237_v34 = vmul.f32 -1.442695, %v669_v33 }
 0xe9d   :  { %v1249_v31 = vld [vmem:[%s1822_s0 + $0x38] sm:$0xff] }
 0xe9e   :  { %1448 = vpow2.f32 %v1237_v34 }
 0xea8   :  { %v1449_v35 = vpop.eup %1448 }
 0xea9   :  { %v673_v36 = vadd.f32 1.0, %v1449_v35 }
 0xeab   :  { %1450 = vrcp.f32 %v673_v36 }
 0xeb5   :  { %v1451_v37 = vpop.eup %1450 }
 0xeb6   :  { %v697_v46 = vsub.f32 1.0, %v1451_v37 }
 0xf0e   :  { %v688_v38 = vpop.permute.xlu1 %687 }
 0xf0f   :  { %v690_v39 = vmul.f32 %v1451_v37, %v688_v38 }
 0xf11   :  { %692 = vrot.lane.b32.xlu0 %v690_v39, %s1480_s18 }
 0xf15   :  { %704 = vrot.lane.b32.xlu0 %v606_v22, %s1481_s2 }
 0xf19   :  { %799 = vrot.lane.b32.xlu0 %v1520_v3, %s1480_s18 }
 0xf83   :  { %v693_v40 = vpop.permute.xlu0 %692 }
 0xf84   :  { %v695_v41 = vadd.f32 %v1233_v32, %v693_v40 }
 0xf86   :  { %1452 = vtanh.f32 %v695_v41 }
 0xf87   :  { %v705_v45 = vpop.permute.xlu0 %704 }
 0xf88   :  { %v707_v48 = vmul.f32 %v1451_v37, %v705_v45 }
 0xf8b   :  { %v800_v55 = vpop.permute.xlu0 %799 }
 0xf90   :  { %v1453_v42 = vpop.eup %1452 }
 0xf91   :  { %699 = vrot.lane.b32.xlu1 %v1453_v42, %s1482_s21  ;;  %v1414_v42 = vld [vmem:[%s1820_s1] sm:$0xff]  }
0x1003   :  { %v700_v47 = vpop.permute.xlu1 %699 }
0x1004   :  { %v702_v49 = vmul.f32 %v700_v47, %v697_v46 }
0x1006   :  { %v1671_v50 = vadd.f32 %v707_v48, %v702_v49 }
0x1008   :  { %710 = vrot.lane.b32.xlu1 %v1671_v50, %s1482_s21 }
0x107a   :  { %v711_v51 = vpop.permute.xlu1 %710 }
0x107b   :  { %713 = vst.msk [vmem:[#allocation2] sm:$0xff] %vm19_vm0, %v711_v51 }
0x1082   :  { %v723_v52 = vld [vmem:[#allocation2] sm:$0xff] }
0x1083   :  { %v726_v54 = vpack.c.bf16 %v723_v52, %v723_v52 }
0x1085   :  { %1366 = vmatmul.mubr.msk.bf16.vlgmr.msra.gmra.mrb[12].mxu0 %vm19_vm0, %v726_v54 }
0x1086   :  { %1381 = vmatprep.mubr.msk.bf16.mxu0 %vm1479_vm1, %v1478_v0  ;;  %1378 = vmatpush3.bf16.msra.mxu0 %v1414_v42 }
0x1087   :  { %1379 = vmatprep.subr.bf16.mxu0 %v1478_v0 }
0x108a   :  { %1380 = vmatpush3.bf16.msra.mxu0 %v1415_v43 }
0x1158   :  { %v780_v56 = vpop.f32.mrb[12].mxu0 }
0x1159   :  { %v802_v57 = vadd.f32 %v800_v55, %v780_v56  ;;  %v1367_v59 = vpop.f32.mrb[13].mxu0  ;;  %v786_v63 = vadd.f32 %v1241_v62, %v780_v56 }
0x115a   :  { %v783_v60 = vpop.f32.mrb[14].mxu0 }
0x115b   :  { %v1368_v61 = vpop.f32.mrb[15].mxu0  ;;  %804 = vrot.lane.b32.xlu1 %v802_v57, %s1480_s18  ;;  %v1245_v1 = vmul.f32 -1.442695, %v786_v63 }
0x115d   :  { %1454 = vpow2.f32 %v1245_v1 }
0x1167   :  { %v1455_v2 = vpop.eup %1454 }
0x1168   :  { %v790_v4 = vadd.f32 1.0, %v1455_v2 }
0x116a   :  { %1456 = vrcp.f32 %v790_v4 }
0x1174   :  { %v1457_v5 = vpop.eup %1456 }
0x1175   :  { %v814_v14 = vsub.f32 1.0, %v1457_v5 }
0x11cd   :  { %v805_v6 = vpop.permute.xlu1 %804 }
0x11ce   :  { %v807_v7 = vmul.f32 %v1457_v5, %v805_v6 }
0x11d0   :  { %809 = vrot.lane.b32.xlu0 %v807_v7, %s1480_s18 }
0x11d4   :  { %821 = vrot.lane.b32.xlu0 %v723_v52, %s1481_s2 }
0x11d8   :  { %916 = vrot.lane.b32.xlu0 %v1520_v3, %s1480_s18 }
0x1242   :  { %v810_v8 = vpop.permute.xlu0 %809 }
0x1243   :  { %v812_v9 = vadd.f32 %v1241_v62, %v810_v8  ;;  %v1257_v62 = vld [vmem:[%s1822_s0 + $0x40] sm:$0xff] }
0x1245   :  { %1458 = vtanh.f32 %v812_v9 }
0x1246   :  { %v822_v13 = vpop.permute.xlu0 %821 }
0x1247   :  { %v824_v16 = vmul.f32 %v1457_v5, %v822_v13 }
0x124a   :  { %v917_v23 = vpop.permute.xlu0 %916 }
0x124f   :  { %v1459_v10 = vpop.eup %1458 }
0x1250   :  { %816 = vrot.lane.b32.xlu1 %v1459_v10, %s1482_s21 }
0x12c2   :  { %v817_v15 = vpop.permute.xlu1 %816 }
0x12c3   :  { %v819_v17 = vmul.f32 %v817_v15, %v814_v14 }
0x12c5   :  { %v1696_v18 = vadd.f32 %v824_v16, %v819_v17 }
0x12c7   :  { %827 = vrot.lane.b32.xlu1 %v1696_v18, %s1482_s21 }
0x1339   :  { %v828_v19 = vpop.permute.xlu1 %827 }
0x133a   :  { %830 = vst.msk [vmem:[#allocation2] sm:$0xff] %vm19_vm0, %v828_v19 }
0x1341   :  { %v840_v21 = vld [vmem:[#allocation2] sm:$0xff] }
0x1342   :  { %v843_v22 = vpack.c.bf16 %v840_v21, %v840_v21 }
0x1344   :  { %1374 = vmatmul.mubr.msk.bf16.vlgmr.msra.gmra.mrb[12].mxu1 %vm19_vm0, %v843_v22 }
0x1345   :  { %1389 = vmatprep.mubr.msk.bf16.mxu1 %vm1479_vm1, %v1478_v0  ;;  %1386 = vmatpush3.bf16.msra.mxu1 %v1416_v11 }
0x1346   :  { %1387 = vmatprep.subr.bf16.mxu1 %v1478_v0 }
0x1349   :  { %1388 = vmatpush3.bf16.msra.mxu1 %v1417_v12 }
0x1417   :  { %v897_v25 = vpop.f32.mrb[12].mxu1 }
0x1418   :  { %v919_v26 = vadd.f32 %v917_v23, %v897_v25  ;;  %v1375_v27 = vpop.f32.mrb[13].mxu1  ;;  %v903_v32 = vadd.f32 %v1249_v31, %v897_v25 }
0x1419   :  { %v900_v28 = vpop.f32.mrb[14].mxu1 }
0x141a   :  { %921 = vrot.lane.b32.xlu1 %v919_v26, %s1480_s18  ;;  %v1376_v29 = vpop.f32.mrb[15].mxu1  ;;  %v1253_v33 = vmul.f32 -1.442695, %v903_v32 }
0x141b   :  { %v1265_v29 = vld [vmem:[%s1822_s0 + $0x48] sm:$0xff] }
0x141c   :  { %1460 = vpow2.f32 %v1253_v33 }
0x1426   :  { %v1461_v34 = vpop.eup %1460 }
0x1427   :  { %v907_v35 = vadd.f32 1.0, %v1461_v34 }
0x1429   :  { %1462 = vrcp.f32 %v907_v35 }
0x1433   :  { %v1463_v36 = vpop.eup %1462 }
0x1434   :  { %v931_v45 = vsub.f32 1.0, %v1463_v36 }
0x148c   :  { %v922_v37 = vpop.permute.xlu1 %921 }
0x148d   :  { %v924_v38 = vmul.f32 %v1463_v36, %v922_v37 }
0x148f   :  { %926 = vrot.lane.b32.xlu0 %v924_v38, %s1480_s18  ;;  %v1274_v38 = vpack.c.bf16 %v1571_v58, %v1571_v58 }
0x1493   :  { %938 = vrot.lane.b32.xlu0 %v840_v21, %s1481_s2 }
0x1497   :  { %1033 = vrot.lane.b32.xlu0 %v1520_v3, %s1480_s18 }
0x1501   :  { %v927_v39 = vpop.permute.xlu0 %926 }
0x1502   :  { %v929_v40 = vadd.f32 %v1249_v31, %v927_v39  ;;  %v1276_v39 = vpack.c.bf16 %v1621_v53, %v1621_v53 }
0x1504   :  { %1464 = vtanh.f32 %v929_v40  ;;  %v1278_v40 = vpack.c.bf16 %v1671_v50, %v1671_v50 }
0x1505   :  { %v939_v44 = vpop.permute.xlu0 %938 }
0x1506   :  { %v941_v47 = vmul.f32 %v1463_v36, %v939_v44 }
0x1509   :  { %v1034_v55 = vpop.permute.xlu0 %1033 }
0x150e   :  { %v1465_v41 = vpop.eup %1464 }
0x150f   :  { %933 = vrot.lane.b32.xlu1 %v1465_v41, %s1482_s21 }
0x1581   :  { %v934_v46 = vpop.permute.xlu1 %933 }
0x1582   :  { %v936_v48 = vmul.f32 %v934_v46, %v931_v45  ;;  %v1273_v46 = vpack.c.bf16 %v1546_v30, %v1546_v30  ;;  %v1277_v30 = vpack.c.bf16 %v1646_v20, %v1646_v20 }
0x1584   :  { %v1720_v49 = vadd.f32 %v941_v47, %v936_v48  ;;  %v1275_v48 = vpack.c.bf16 %v1596_v24, %v1596_v24 }
0x1586   :  { %944 = vrot.lane.b32.xlu1 %v1720_v49, %s1482_s21  ;;  %v1280_v41 = vpack.c.bf16 %v1720_v49, %v1720_v49  ;;  %v1279_v49 = vpack.c.bf16 %v1696_v18, %v1696_v18 }
0x15f8   :  { %v945_v51 = vpop.permute.xlu1 %944 }
0x15f9   :  { %947 = vst.msk [vmem:[#allocation2] sm:$0xff] %vm19_vm0, %v945_v51 }
0x1600   :  { %v957_v52 = vld [vmem:[#allocation2] sm:$0xff] }
0x1601   :  { %v960_v54 = vpack.c.bf16 %v957_v52, %v957_v52 }
0x1603   :  { %1382 = vmatmul.mubr.msk.bf16.vlgmr.msra.gmra.mrb[16].mxu0 %vm19_vm0, %v960_v54 }
0x16d6   :  { %v1014_v56 = vpop.f32.mrb[16].mxu0 }
0x16d7   :  { %v1036_v57 = vadd.f32 %v1034_v55, %v1014_v56  ;;  %v1383_v59 = vpop.f32.mrb[17].mxu0  ;;  %v1020_v63 = vadd.f32 %v1257_v62, %v1014_v56 }
0x16d8   :  { %v1017_v60 = vpop.f32.mrb[18].mxu0 }
0x16d9   :  { %v1384_v61 = vpop.f32.mrb[19].mxu0  ;;  %1038 = vrot.lane.b32.xlu1 %v1036_v57, %s1480_s18  ;;  %v1261_v1 = vmul.f32 -1.442695, %v1020_v63 }
0x16db   :  { %1466 = vpow2.f32 %v1261_v1 }
0x16e5   :  { %v1467_v2 = vpop.eup %1466 }
0x16e6   :  { %v1024_v4 = vadd.f32 1.0, %v1467_v2 }
0x16e8   :  { %1468 = vrcp.f32 %v1024_v4 }
0x16f2   :  { %v1469_v5 = vpop.eup %1468 }
0x174b   :  { %v1039_v6 = vpop.permute.xlu1 %1038 }
0x174c   :  { %v1041_v7 = vmul.f32 %v1469_v5, %v1039_v6 }
0x174e   :  { %1043 = vrot.lane.b32.xlu0 %v1041_v7, %s1480_s18 }
0x1752   :  { %1055 = vrot.lane.b32.xlu0 %v957_v52, %s1481_s2 }
0x1756   :  { %1150 = vrot.lane.b32.xlu0 %v1520_v3, %s1480_s18  ;;  %v1048_v3 = vsub.f32 1.0, %v1469_v5 }
0x17c0   :  { %v1044_v8 = vpop.permute.xlu0 %1043 }
0x17c1   :  { %v1046_v9 = vadd.f32 %v1257_v62, %v1044_v8 }
0x17c3   :  { %1470 = vtanh.f32 %v1046_v9 }
0x17c4   :  { %v1056_v13 = vpop.permute.xlu0 %1055 }
0x17c5   :  { %v1058_v15 = vmul.f32 %v1469_v5, %v1056_v13 }
0x17c8   :  { %v1151_v23 = vpop.permute.xlu0 %1150 }
0x17cd   :  { %v1471_v10 = vpop.eup %1470 }
0x17ce   :  { %1050 = vrot.lane.b32.xlu1 %v1471_v10, %s1482_s21 }
0x1840   :  { %v1051_v14 = vpop.permute.xlu1 %1050 }
0x1841   :  { %v1053_v16 = vmul.f32 %v1051_v14, %v1048_v3 }
0x1843   :  { %v1059_v17 = vadd.f32 %v1058_v15, %v1053_v16 }
0x1845   :  { %1061 = vrot.lane.b32.xlu1 %v1059_v17, %s1482_s21  ;;  %v1281_v51 = vpack.c.bf16 %v1059_v17, %v1059_v17 }
0x18b7   :  { %v1062_v19 = vpop.permute.xlu1 %1061 }
0x18b8   :  { %1064 = vst.msk [vmem:[#allocation2] sm:$0xff] %vm19_vm0, %v1062_v19 }
0x18bf   :  { %v1074_v21 = vld [vmem:[#allocation2] sm:$0xff] }
0x18c0   :  { %v1077_v22 = vpack.c.bf16 %v1074_v21, %v1074_v21 }
0x18c2   :  { %1390 = vmatmul.mubr.msk.bf16.vlgmr.msra.gmra.mrb[16].mxu1 %vm19_vm0, %v1077_v22 }
0x1995   :  { %v1131_v25 = vpop.f32.mrb[16].mxu1 }
0x1996   :  { %v1153_v26 = vadd.f32 %v1151_v23, %v1131_v25  ;;  %v1391_v0 = vpop.f32.mrb[17].mxu1  ;;  %v1137_v31 = vadd.f32 %v1265_v29, %v1131_v25 }
0x1997   :  { %v1134_v27 = vpop.f32.mrb[18].mxu1 }
0x1998   :  { %1155 = vrot.lane.b32.xlu1 %v1153_v26, %s1480_s18  ;;  %v1392_v28 = vpop.f32.mrb[19].mxu1  ;;  %v1269_v32 = vmul.f32 -1.442695, %v1137_v31 }
0x199a   :  { %1472 = vpow2.f32 %v1269_v32 }
0x19a4   :  { %v1473_v33 = vpop.eup %1472 }
0x19a5   :  { %v1141_v34 = vadd.f32 1.0, %v1473_v33 }
0x19a7   :  { %1474 = vrcp.f32 %v1141_v34 }
0x19b1   :  { %v1475_v35 = vpop.eup %1474 }
0x19b2   :  { %v1165_v24 = vsub.f32 1.0, %v1475_v35 }
0x1a0a   :  { %v1156_v36 = vpop.permute.xlu1 %1155 }
0x1a0b   :  { %v1158_v37 = vmul.f32 %v1475_v35, %v1156_v36 }
0x1a0d   :  { %1160 = vrot.lane.b32.xlu0 %v1158_v37, %s1480_s18 }
0x1a11   :  { %1172 = vrot.lane.b32.xlu0 %v1074_v21, %s1481_s2 }
0x1a15   :  { %250 = vrot.lane.b32.xlu0 %v1274_v38, %s1482_s21 }
0x1a19   :  { %484 = vrot.lane.b32.xlu0 %v1276_v39, %s1482_s21 }
0x1a1d   :  { %718 = vrot.lane.b32.xlu0 %v1278_v40, %s1482_s21 }
0x1a21   :  { %952 = vrot.lane.b32.xlu0 %v1280_v41, %s1482_s21 }
0x1a7f   :  { %v1161_v42 = vpop.permute.xlu0 %1160 }
0x1a80   :  { %v1163_v43 = vadd.f32 %v1265_v29, %v1161_v42 }
0x1a82   :  { %1476 = vtanh.f32 %v1163_v43 }
0x1a83   :  { %v1173_v58 = vpop.permute.xlu0 %1172 }
0x1a84   :  { %v1175_v54 = vmul.f32 %v1475_v35, %v1173_v58 }
0x1a87   :  { %v251_v44 = vpop.permute.xlu0 %250 }
0x1a88   :  { %1208 = vst.msk [vmem:[%s1823_s3 + $0x4] sm:$0xf] %vm136_vm2, %v251_v44 }
0x1a8b   :  { %v485_v53 = vpop.permute.xlu0 %484 }
0x1a8c   :  { %v1477_v50 = vpop.eup %1476  ;;  %1224 = vst.msk [vmem:[%s1823_s3 + $0xc] sm:$0xf] %vm136_vm2, %v485_v53 }
0x1a8d   :  { %1167 = vrot.lane.b32.xlu1 %v1477_v50, %s1482_s21 }
0x1a8f   :  { %v719_v45 = vpop.permute.xlu0 %718 }
0x1a90   :  { %1240 = vst.msk [vmem:[%s1823_s3 + $0x14] sm:$0xf] %vm136_vm2, %v719_v45 }
0x1a91   :  { %133 = vrot.lane.b32.xlu1 %v1273_v46, %s1482_s21 }
0x1a93   :  { %v953_v47 = vpop.permute.xlu0 %952 }
0x1a94   :  { %1256 = vst.msk [vmem:[%s1823_s3 + $0x1c] sm:$0xf] %vm136_vm2, %v953_v47 }
0x1a95   :  { %367 = vrot.lane.b32.xlu1 %v1275_v48, %s1482_s21 }
0x1a99   :  { %601 = vrot.lane.b32.xlu1 %v1277_v30, %s1482_s21 }
0x1a9d   :  { %835 = vrot.lane.b32.xlu1 %v1279_v49, %s1482_s21 }
0x1aa1   :  { %1069 = vrot.lane.b32.xlu1 %v1281_v51, %s1482_s21 }
0x1aff   :  { %v1168_v52 = vpop.permute.xlu1 %1167 }
0x1b00   :  { %v1170_v55 = vmul.f32 %v1168_v52, %v1165_v24 }
0x1b02   :  { %v1176_v56 = vadd.f32 %v1175_v54, %v1170_v55 }
0x1b03   :  { %v134_v57 = vpop.permute.xlu1 %133 }
0x1b04   :  { %137 = vst.msk [vmem:[%s1823_s3] sm:$0xf] %vm136_vm2, %v134_v57  ;;  %1178 = vrot.lane.b32.xlu0 %v1176_v56, %s1482_s21  ;;  %v1282_v20 = vpack.c.bf16 %v1176_v56, %v1176_v56 }
0x1b06   :  { %1186 = vrot.lane.b32.xlu1 %v1282_v20, %s1482_s21 }
0x1b07   :  { %v368_v18 = vpop.permute.xlu1 %367 }
0x1b08   :  { %1216 = vst.msk [vmem:[%s1823_s3 + $0x8] sm:$0xf] %vm136_vm2, %v368_v18 }
0x1b0b   :  { %v602_v59 = vpop.permute.xlu1 %601 }
0x1b0c   :  { %1232 = vst.msk [vmem:[%s1823_s3 + $0x10] sm:$0xf] %vm136_vm2, %v602_v59 }
0x1b0f   :  { %v836_v60 = vpop.permute.xlu1 %835 }
0x1b10   :  { %1248 = vst.msk [vmem:[%s1823_s3 + $0x18] sm:$0xf] %vm136_vm2, %v836_v60 }
0x1b13   :  { %v1070_v61 = vpop.permute.xlu1 %1069 }
0x1b14   :  { %1264 = vst.msk [vmem:[%s1823_s3 + $0x20] sm:$0xf] %vm136_vm2, %v1070_v61 }
0x1b76   :  { %v1179_v62 = vpop.permute.xlu0 %1178 }
0x1b77   :  { %1181 = vst.msk [vmem:[#allocation2] sm:$0xff] %vm19_vm0, %v1179_v62 }
0x1b78   :  { %v1187_v63 = vpop.permute.xlu1 %1186 }
0x1b79   :  { %1272 = vst.msk [vmem:[%s1823_s3 + $0x24] sm:$0xf] %vm136_vm2, %v1187_v63 }

// kernel: rnn_forward.7
= control target key start
LH: loop header
LB: loop body
LE: loop exit
PB: predicated region body
PF: predicated region fallthrough
CT: control target
= control target key end

     0   :  { %vm25_vm0 = vcmask 261120   ;;  %v1455_v0 = vmov 0.0   ;;  %vm1456_vm1 = vmmov 0   ;;  %s1457_s24 = smov 64   ;;  %s1459_s27 = smov 96   ;;  %vm1178_vm2 = vcmask 31744   ;;  %s1734_s1 = inlined_call_operand.vmem [shape: bf16[32,96], index: 1, kind: input, shape index: {}]   ;;  %s1735_s2 = inlined_call_operand.vmem [shape: f32[1,32], index: 2, kind: input, shape index: {}]   ;;  %s1736_s0 = inlined_call_operand.vmem [shape: f32[10,8,96], index: 0, kind: input, shape index: {}]   ;;  %s1737_s3 = inlined_call_operand.vmem [shape: bf16[32,4], index: 3, kind: input, shape index: {}]   ;;  %s1738_s4 = inlined_call_operand.vmem [shape: f32[1,4], index: 4, kind: input, shape index: {}]   ;;  %s1739_s5 = inlined_call_operand.vmem [shape: f32[8,4], index: 5, kind: output, shape index: {}]  }
   0x1   :  { %1280 = vmatprep.subr.bf16.mxu0 %v1455_v0  ;;  %v1373_v1 = vld [vmem:[%s1734_s1] sm:$0xff]   ;;  %1284 = vmatprep.mubr.msk.bf16.mxu0 %vm1456_vm1, %v1455_v0  ;;  %26 = vst.msk [vmem:[#allocation2] sm:$0xff] %vm25_vm0, %v1455_v0  ;;  %v1374_v2 = vld [vmem:[%s1734_s1 + $0x8] sm:$0xff]  }
   0x2   :  { %1288 = vmatprep.subr.bf16.mxu1 %v1455_v0  ;;  %1292 = vmatprep.mubr.msk.bf16.mxu1 %vm1456_vm1, %v1455_v0  ;;  %v1507_v3 = vld [vmem:[%s1735_s2] ss:$0 sm:$0xff]  ;;  %s1458_s2 = smov 32   ;;  %v1376_v24 = vld [vmem:[%s1734_s1 + $0x8] sm:$0xff]  }
   0x3   :  { %1281 = vmatpush3.bf16.msra.mxu0 %v1373_v1  ;;  %103 = vrot.lane.b32.xlu0 %v1507_v3, %s1457_s24  ;;  %v28_v12 = vld [vmem:[%s1736_s0] sm:$0xff]  ;;  %v1189_v40 = vld [vmem:[%s1736_s0 + $0x8] sm:$0xff] }
   0x4   :  { %1282 = vmatprep.subr.bf16.mxu0 %v1455_v0  ;;  %v1375_v23 = vld [vmem:[%s1734_s1] sm:$0xff]   ;;  %v1378_v52 = vld [vmem:[%s1734_s1 + $0x8] sm:$0xff]  }
   0x5   :  { %1289 = vmatpush3.bf16.msra.mxu1 %v1375_v23  ;;  %v1377_v51 = vld [vmem:[%s1734_s1] sm:$0xff]  }
   0x6   :  { %1290 = vmatprep.subr.bf16.mxu1 %v1455_v0 }
   0x7   :  { %1283 = vmatpush3.bf16.msra.mxu0 %v1374_v2 }
   0x8   :  { %v27_v4 = vld [vmem:[#allocation2] sm:$0xff]  ;;  %1296 = vmatprep.subr.bf16.mxu0 %v1455_v0 }
   0x9   :  { %v29_v5 = vpack.c.bf16 %v27_v4, %v27_v4  ;;  %1291 = vmatpush3.bf16.msra.mxu1 %v1376_v24 }
   0xa   :  { %1304 = vmatprep.subr.bf16.mxu1 %v1455_v0 }
   0xb   :  { %1285 = vmatmul.mubr.msk.bf16.vlgmr.msra.gmra.mrb[0].mxu0 %vm25_vm0, %v29_v5 }
   0xc   :  { %1300 = vmatprep.mubr.msk.bf16.mxu0 %vm1456_vm1, %v1455_v0  ;;  %1297 = vmatpush3.bf16.msra.mxu0 %v1377_v51 }
   0xd   :  { %1298 = vmatprep.subr.bf16.mxu0 %v1455_v0 }
  0x10   :  { %1299 = vmatpush3.bf16.msra.mxu0 %v1378_v52 }
  0x11   :  { %1312 = vmatprep.subr.bf16.mxu0 %v1455_v0 }
  0x75   :  { %v104_v6 = vpop.permute.xlu0 %103 }
  0xde   :  { %v84_v7 = vpop.f32.mrb[0].mxu0 }
  0xdf   :  { %v106_v8 = vadd.f32 %v104_v6, %v84_v7  ;;  %v1286_v9 = vpop.f32.mrb[1].mxu0  ;;  %v90_v13 = vadd.f32 %v84_v7, %v28_v12  ;;  %v1195_v6 = vld [vmem:[%s1736_s0 + $0x10] sm:$0xff] }
  0xe0   :  { %v87_v10 = vpop.f32.mrb[2].mxu0 }
  0xe1   :  { %108 = vrot.lane.b32.xlu0 %v106_v8, %s1457_s24  ;;  %v1287_v11 = vpop.f32.mrb[3].mxu0  ;;  %v1187_v14 = vmul.f32 -1.442695, %v90_v13 }
  0xe3   :  { %1395 = vpow2.f32 %v1187_v14 }
  0xe5   :  { %125 = vrot.lane.b32.xlu0 %v27_v4, %s1458_s2 }
  0xe9   :  { %211 = vrot.lane.b32.xlu0 %v1507_v3, %s1457_s24 }
  0xed   :  { %v1396_v15 = vpop.eup %1395 }
  0xee   :  { %v94_v16 = vadd.f32 1.0, %v1396_v15 }
  0xf0   :  { %1397 = vrcp.f32 %v94_v16 }
  0xfa   :  { %v1398_v17 = vpop.eup %1397 }
  0xfb   :  { %v118_v26 = vsub.f32 1.0, %v1398_v17 }
 0x153   :  { %v109_v18 = vpop.permute.xlu0 %108 }
 0x154   :  { %v111_v19 = vmul.f32 %v1398_v17, %v109_v18  ;;  %v1380_v18 = vld [vmem:[%s1734_s1 + $0x8] sm:$0xff]  }
 0x156   :  { %113 = vrot.lane.b32.xlu1 %v111_v19, %s1457_s24 }
 0x157   :  { %v126_v25 = vpop.permute.xlu0 %125 }
 0x158   :  { %v128_v28 = vmul.f32 %v1398_v17, %v126_v25  ;;  %v1379_v17 = vld [vmem:[%s1734_s1] sm:$0xff]  }
 0x15b   :  { %v212_v34 = vpop.permute.xlu0 %211 }
 0x1c8   :  { %v114_v20 = vpop.permute.xlu1 %113 }
 0x1c9   :  { %v116_v21 = vadd.f32 %v114_v20, %v28_v12 }
 0x1cb   :  { %1399 = vtanh.f32 %v116_v21 }
 0x1d5   :  { %v1400_v22 = vpop.eup %1399 }
 0x1d6   :  { %120 = vrot.lane.b32.xlu1 %v1400_v22, %s1459_s27 }
 0x248   :  { %v121_v27 = vpop.permute.xlu1 %120 }
 0x249   :  { %v123_v29 = vmul.f32 %v121_v27, %v118_v26 }
 0x24b   :  { %v129_v30 = vadd.f32 %v128_v28, %v123_v29 }
 0x24d   :  { %131 = vrot.lane.b32.xlu1 %v129_v30, %s1459_s27 }
 0x2bf   :  { %v132_v31 = vpop.permute.xlu1 %131 }
 0x2c0   :  { %134 = vst.msk [vmem:[#allocation2] sm:$0xff] %vm25_vm0, %v132_v31 }
 0x2c7   :  { %v135_v32 = vld [vmem:[#allocation2] sm:$0xff] }
 0x2c8   :  { %v138_v33 = vpack.c.bf16 %v135_v32, %v135_v32 }
 0x2ca   :  { %1293 = vmatmul.mubr.msk.bf16.vlgmr.msra.gmra.mrb[0].mxu1 %vm25_vm0, %v138_v33 }
 0x2cb   :  { %1308 = vmatprep.mubr.msk.bf16.mxu1 %vm1456_vm1, %v1455_v0  ;;  %1305 = vmatpush3.bf16.msra.mxu1 %v1379_v17 }
 0x2cc   :  { %1306 = vmatprep.subr.bf16.mxu1 %v1455_v0 }
 0x2cf   :  { %1307 = vmatpush3.bf16.msra.mxu1 %v1380_v18 }
 0x2d0   :  { %1320 = vmatprep.subr.bf16.mxu1 %v1455_v0 }
 0x39d   :  { %v192_v35 = vpop.f32.mrb[0].mxu1 }
 0x39e   :  { %v214_v36 = vadd.f32 %v212_v34, %v192_v35  ;;  %v1294_v37 = vpop.f32.mrb[1].mxu1  ;;  %v198_v41 = vadd.f32 %v1189_v40, %v192_v35  ;;  %v1201_v34 = vld [vmem:[%s1736_s0 + $0x18] sm:$0xff] }
 0x39f   :  { %v195_v38 = vpop.f32.mrb[2].mxu1 }
 0x3a0   :  { %216 = vrot.lane.b32.xlu1 %v214_v36, %s1457_s24  ;;  %v1295_v39 = vpop.f32.mrb[3].mxu1  ;;  %v1193_v42 = vmul.f32 -1.442695, %v198_v41 }
 0x3a2   :  { %1401 = vpow2.f32 %v1193_v42 }
 0x3ac   :  { %v1402_v43 = vpop.eup %1401 }
 0x3ad   :  { %v202_v44 = vadd.f32 1.0, %v1402_v43 }
 0x3af   :  { %1403 = vrcp.f32 %v202_v44 }
 0x3b9   :  { %v1404_v45 = vpop.eup %1403 }
 0x3ba   :  { %v226_v54 = vsub.f32 1.0, %v1404_v45 }
 0x412   :  { %v217_v46 = vpop.permute.xlu1 %216 }
 0x413   :  { %v219_v47 = vmul.f32 %v1404_v45, %v217_v46  ;;  %v1382_v46 = vld [vmem:[%s1734_s1 + $0x8] sm:$0xff]  }
 0x415   :  { %221 = vrot.lane.b32.xlu0 %v219_v47, %s1457_s24 }
 0x419   :  { %233 = vrot.lane.b32.xlu0 %v135_v32, %s1458_s2 }
 0x41d   :  { %319 = vrot.lane.b32.xlu0 %v1507_v3, %s1457_s24 }
 0x487   :  { %v222_v48 = vpop.permute.xlu0 %221 }
 0x488   :  { %v224_v49 = vadd.f32 %v1189_v40, %v222_v48 }
 0x48a   :  { %1405 = vtanh.f32 %v224_v49 }
 0x48b   :  { %v234_v53 = vpop.permute.xlu0 %233 }
 0x48c   :  { %v236_v56 = vmul.f32 %v1404_v45, %v234_v53  ;;  %v1381_v45 = vld [vmem:[%s1734_s1] sm:$0xff]  }
 0x48f   :  { %v320_v62 = vpop.permute.xlu0 %319 }
 0x494   :  { %v1406_v50 = vpop.eup %1405 }
 0x495   :  { %228 = vrot.lane.b32.xlu1 %v1406_v50, %s1459_s27 }
 0x507   :  { %v229_v55 = vpop.permute.xlu1 %228 }
 0x508   :  { %v231_v57 = vmul.f32 %v229_v55, %v226_v54 }
 0x50a   :  { %v237_v58 = vadd.f32 %v236_v56, %v231_v57 }
 0x50c   :  { %239 = vrot.lane.b32.xlu1 %v237_v58, %s1459_s27 }
 0x57e   :  { %v240_v59 = vpop.permute.xlu1 %239 }
 0x57f   :  { %242 = vst.msk [vmem:[#allocation2] sm:$0xff] %vm25_vm0, %v240_v59 }
 0x586   :  { %v243_v60 = vld [vmem:[#allocation2] sm:$0xff] }
 0x587   :  { %v246_v61 = vpack.c.bf16 %v243_v60, %v243_v60 }
 0x589   :  { %1301 = vmatmul.mubr.msk.bf16.vlgmr.msra.gmra.mrb[4].mxu0 %vm25_vm0, %v246_v61 }
 0x58a   :  { %1316 = vmatprep.mubr.msk.bf16.mxu0 %vm1456_vm1, %v1455_v0  ;;  %1313 = vmatpush3.bf16.msra.mxu0 %v1381_v45 }
 0x58b   :  { %1314 = vmatprep.subr.bf16.mxu0 %v1455_v0 }
 0x58e   :  { %1315 = vmatpush3.bf16.msra.mxu0 %v1382_v46 }
 0x58f   :  { %1328 = vmatprep.subr.bf16.mxu0 %v1455_v0 }
 0x65c   :  { %v300_v63 = vpop.f32.mrb[4].mxu0 }
 0x65d   :  { %v322_v1 = vadd.f32 %v320_v62, %v300_v63  ;;  %v1302_v2 = vpop.f32.mrb[5].mxu0  ;;  %v306_v7 = vadd.f32 %v1195_v6, %v300_v63  ;;  %v1207_v62 = vld [vmem:[%s1736_s0 + $0x20] sm:$0xff] }
 0x65e   :  { %v303_v4 = vpop.f32.mrb[6].mxu0 }
 0x65f   :  { %v1303_v5 = vpop.f32.mrb[7].mxu0  ;;  %324 = vrot.lane.b32.xlu1 %v322_v1, %s1457_s24  ;;  %v1199_v8 = vmul.f32 -1.442695, %v306_v7 }
 0x661   :  { %1407 = vpow2.f32 %v1199_v8 }
 0x66b   :  { %v1408_v9 = vpop.eup %1407 }
 0x66c   :  { %v310_v10 = vadd.f32 1.0, %v1408_v9 }
 0x66e   :  { %1409 = vrcp.f32 %v310_v10 }
 0x678   :  { %v1410_v11 = vpop.eup %1409 }
 0x679   :  { %v334_v20 = vsub.f32 1.0, %v1410_v11 }
 0x6d1   :  { %v325_v12 = vpop.permute.xlu1 %324 }
 0x6d2   :  { %v327_v13 = vmul.f32 %v1410_v11, %v325_v12  ;;  %v1384_v12 = vld [vmem:[%s1734_s1 + $0x8] sm:$0xff]  }
 0x6d4   :  { %329 = vrot.lane.b32.xlu0 %v327_v13, %s1457_s24 }
 0x6d8   :  { %341 = vrot.lane.b32.xlu0 %v243_v60, %s1458_s2 }
 0x6dc   :  { %427 = vrot.lane.b32.xlu0 %v1507_v3, %s1457_s24 }
 0x746   :  { %v330_v14 = vpop.permute.xlu0 %329 }
 0x747   :  { %v332_v15 = vadd.f32 %v1195_v6, %v330_v14 }
 0x749   :  { %1411 = vtanh.f32 %v332_v15 }
 0x74a   :  { %v342_v19 = vpop.permute.xlu0 %341 }
 0x74b   :  { %v344_v22 = vmul.f32 %v1410_v11, %v342_v19  ;;  %v1383_v11 = vld [vmem:[%s1734_s1] sm:$0xff]  }
 0x74e   :  { %v428_v28 = vpop.permute.xlu0 %427 }
 0x753   :  { %v1412_v16 = vpop.eup %1411 }
 0x754   :  { %336 = vrot.lane.b32.xlu1 %v1412_v16, %s1459_s27 }
 0x7c6   :  { %v337_v21 = vpop.permute.xlu1 %336 }
 0x7c7   :  { %v339_v23 = vmul.f32 %v337_v21, %v334_v20 }
 0x7c9   :  { %v345_v24 = vadd.f32 %v344_v22, %v339_v23 }
 0x7cb   :  { %347 = vrot.lane.b32.xlu1 %v345_v24, %s1459_s27 }
 0x83d   :  { %v348_v25 = vpop.permute.xlu1 %347 }
 0x83e   :  { %350 = vst.msk [vmem:[#allocation2] sm:$0xff] %vm25_vm0, %v348_v25 }
 0x845   :  { %v351_v26 = vld [vmem:[#allocation2] sm:$0xff] }
 0x846   :  { %v354_v27 = vpack.c.bf16 %v351_v26, %v351_v26 }
 0x848   :  { %1309 = vmatmul.mubr.msk.bf16.vlgmr.msra.gmra.mrb[4].mxu1 %vm25_vm0, %v354_v27 }
 0x849   :  { %1324 = vmatprep.mubr.msk.bf16.mxu1 %vm1456_vm1, %v1455_v0  ;;  %1321 = vmatpush3.bf16.msra.mxu1 %v1383_v11 }
 0x84a   :  { %1322 = vmatprep.subr.bf16.mxu1 %v1455_v0 }
 0x84d   :  { %1323 = vmatpush3.bf16.msra.mxu1 %v1384_v12 }
 0x84e   :  { %1336 = vmatprep.subr.bf16.mxu1 %v1455_v0 }
 0x91b   :  { %v408_v29 = vpop.f32.mrb[4].mxu1 }
 0x91c   :  { %v430_v30 = vadd.f32 %v428_v28, %v408_v29  ;;  %v1310_v31 = vpop.f32.mrb[5].mxu1  ;;  %v414_v35 = vadd.f32 %v1201_v34, %v408_v29  ;;  %v1213_v28 = vld [vmem:[%s1736_s0 + $0x28] sm:$0xff] }
 0x91d   :  { %v411_v32 = vpop.f32.mrb[6].mxu1 }
 0x91e   :  { %432 = vrot.lane.b32.xlu1 %v430_v30, %s1457_s24  ;;  %v1311_v33 = vpop.f32.mrb[7].mxu1  ;;  %v1205_v36 = vmul.f32 -1.442695, %v414_v35 }
 0x920   :  { %1413 = vpow2.f32 %v1205_v36 }
 0x92a   :  { %v1414_v37 = vpop.eup %1413 }
 0x92b   :  { %v418_v38 = vadd.f32 1.0, %v1414_v37 }
 0x92d   :  { %1415 = vrcp.f32 %v418_v38 }
 0x937   :  { %v1416_v39 = vpop.eup %1415 }
 0x938   :  { %v442_v48 = vsub.f32 1.0, %v1416_v39 }
 0x990   :  { %v433_v40 = vpop.permute.xlu1 %432 }
 0x991   :  { %v435_v41 = vmul.f32 %v1416_v39, %v433_v40  ;;  %v1386_v40 = vld [vmem:[%s1734_s1 + $0x8] sm:$0xff]  }
 0x993   :  { %437 = vrot.lane.b32.xlu0 %v435_v41, %s1457_s24 }
 0x997   :  { %449 = vrot.lane.b32.xlu0 %v351_v26, %s1458_s2 }
 0x99b   :  { %535 = vrot.lane.b32.xlu0 %v1507_v3, %s1457_s24 }
 0xa05   :  { %v438_v42 = vpop.permute.xlu0 %437 }
 0xa06   :  { %v440_v43 = vadd.f32 %v1201_v34, %v438_v42 }
 0xa08   :  { %1417 = vtanh.f32 %v440_v43 }
 0xa09   :  { %v450_v47 = vpop.permute.xlu0 %449 }
 0xa0a   :  { %v452_v50 = vmul.f32 %v1416_v39, %v450_v47  ;;  %v1385_v39 = vld [vmem:[%s1734_s1] sm:$0xff]  }
 0xa0d   :  { %v536_v56 = vpop.permute.xlu0 %535 }
 0xa12   :  { %v1418_v44 = vpop.eup %1417 }
 0xa13   :  { %444 = vrot.lane.b32.xlu1 %v1418_v44, %s1459_s27 }
 0xa85   :  { %v445_v49 = vpop.permute.xlu1 %444 }
 0xa86   :  { %v447_v51 = vmul.f32 %v445_v49, %v442_v48 }
 0xa88   :  { %v453_v52 = vadd.f32 %v452_v50, %v447_v51 }
 0xa8a   :  { %455 = vrot.lane.b32.xlu1 %v453_v52, %s1459_s27 }
 0xafc   :  { %v456_v53 = vpop.permute.xlu1 %455 }
 0xafd   :  { %458 = vst.msk [vmem:[#allocation2] sm:$0xff] %vm25_vm0, %v456_v53 }
 0xb04   :  { %v459_v54 = vld [vmem:[#allocation2] sm:$0xff] }
 0xb05   :  { %v462_v55 = vpack.c.bf16 %v459_v54, %v459_v54 }
 0xb07   :  { %1317 = vmatmul.mubr.msk.bf16.vlgmr.msra.gmra.mrb[8].mxu0 %vm25_vm0, %v462_v55 }
 0xb08   :  { %1332 = vmatprep.mubr.msk.bf16.mxu0 %vm1456_vm1, %v1455_v0  ;;  %1329 = vmatpush3.bf16.msra.mxu0 %v1385_v39 }
 0xb09   :  { %1330 = vmatprep.subr.bf16.mxu0 %v1455_v0 }
 0xb0c   :  { %1331 = vmatpush3.bf16.msra.mxu0 %v1386_v40 }
 0xb0d   :  { %1344 = vmatprep.subr.bf16.mxu0 %v1455_v0 }
 0xbda   :  { %v516_v57 = vpop.f32.mrb[8].mxu0 }
 0xbdb   :  { %v538_v58 = vadd.f32 %v536_v56, %v516_v57  ;;  %v1318_v59 = vpop.f32.mrb[9].mxu0  ;;  %v522_v63 = vadd.f32 %v1207_v62, %v516_v57  ;;  %v1219_v56 = vld [vmem:[%s1736_s0 + $0x30] sm:$0xff] }
 0xbdc   :  { %v519_v60 = vpop.f32.mrb[10].mxu0 }
 0xbdd   :  { %v1319_v61 = vpop.f32.mrb[11].mxu0  ;;  %540 = vrot.lane.b32.xlu1 %v538_v58, %s1457_s24  ;;  %v1211_v1 = vmul.f32 -1.442695, %v522_v63 }
 0xbdf   :  { %1419 = vpow2.f32 %v1211_v1 }
 0xbe9   :  { %v1420_v2 = vpop.eup %1419 }
 0xbea   :  { %v526_v4 = vadd.f32 1.0, %v1420_v2 }
 0xbec   :  { %1421 = vrcp.f32 %v526_v4 }
 0xbf6   :  { %v1422_v5 = vpop.eup %1421 }
 0xbf7   :  { %v550_v14 = vsub.f32 1.0, %v1422_v5 }
 0xc4f   :  { %v541_v6 = vpop.permute.xlu1 %540 }
 0xc50   :  { %v543_v7 = vmul.f32 %v1422_v5, %v541_v6  ;;  %v1388_v6 = vld [vmem:[%s1734_s1 + $0x8] sm:$0xff]  }
 0xc52   :  { %545 = vrot.lane.b32.xlu0 %v543_v7, %s1457_s24 }
 0xc56   :  { %557 = vrot.lane.b32.xlu0 %v459_v54, %s1458_s2 }
 0xc5a   :  { %643 = vrot.lane.b32.xlu0 %v1507_v3, %s1457_s24 }
 0xcc4   :  { %v546_v8 = vpop.permute.xlu0 %545 }
 0xcc5   :  { %v548_v9 = vadd.f32 %v1207_v62, %v546_v8 }
 0xcc7   :  { %1423 = vtanh.f32 %v548_v9 }
 0xcc8   :  { %v558_v13 = vpop.permute.xlu0 %557 }
 0xcc9   :  { %v560_v16 = vmul.f32 %v1422_v5, %v558_v13  ;;  %v1387_v5 = vld [vmem:[%s1734_s1] sm:$0xff]  }
 0xccc   :  { %v644_v22 = vpop.permute.xlu0 %643 }
 0xcd1   :  { %v1424_v10 = vpop.eup %1423 }
 0xcd2   :  { %552 = vrot.lane.b32.xlu1 %v1424_v10, %s1459_s27 }
 0xd44   :  { %v553_v15 = vpop.permute.xlu1 %552 }
 0xd45   :  { %v555_v17 = vmul.f32 %v553_v15, %v550_v14 }
 0xd47   :  { %v561_v18 = vadd.f32 %v560_v16, %v555_v17 }
 0xd49   :  { %563 = vrot.lane.b32.xlu1 %v561_v18, %s1459_s27 }
 0xdbb   :  { %v564_v19 = vpop.permute.xlu1 %563 }
 0xdbc   :  { %566 = vst.msk [vmem:[#allocation2] sm:$0xff] %vm25_vm0, %v564_v19 }
 0xdc3   :  { %v567_v20 = vld [vmem:[#allocation2] sm:$0xff] }
 0xdc4   :  { %v570_v21 = vpack.c.bf16 %v567_v20, %v567_v20 }
 0xdc6   :  { %1325 = vmatmul.mubr.msk.bf16.vlgmr.msra.gmra.mrb[8].mxu1 %vm25_vm0, %v570_v21 }
 0xdc7   :  { %1340 = vmatprep.mubr.msk.bf16.mxu1 %vm1456_vm1, %v1455_v0  ;;  %1337 = vmatpush3.bf16.msra.mxu1 %v1387_v5 }
 0xdc8   :  { %1338 = vmatprep.subr.bf16.mxu1 %v1455_v0 }
 0xdcb   :  { %1339 = vmatpush3.bf16.msra.mxu1 %v1388_v6 }
 0xdcc   :  { %1352 = vmatprep.subr.bf16.mxu1 %v1455_v0 }
 0xe99   :  { %v624_v23 = vpop.f32.mrb[8].mxu1 }
 0xe9a   :  { %v646_v24 = vadd.f32 %v644_v22, %v624_v23  ;;  %v1326_v25 = vpop.f32.mrb[9].mxu1  ;;  %v630_v29 = vadd.f32 %v1213_v28, %v624_v23  ;;  %v1225_v22 = vld [vmem:[%s1736_s0 + $0x38] sm:$0xff] }
 0xe9b   :  { %v627_v26 = vpop.f32.mrb[10].mxu1 }
 0xe9c   :  { %648 = vrot.lane.b32.xlu1 %v646_v24, %s1457_s24  ;;  %v1327_v27 = vpop.f32.mrb[11].mxu1  ;;  %v1217_v30 = vmul.f32 -1.442695, %v630_v29 }
 0xe9e   :  { %1425 = vpow2.f32 %v1217_v30 }
 0xea8   :  { %v1426_v31 = vpop.eup %1425 }
 0xea9   :  { %v634_v32 = vadd.f32 1.0, %v1426_v31 }
 0xeab   :  { %1427 = vrcp.f32 %v634_v32 }
 0xeb5   :  { %v1428_v33 = vpop.eup %1427 }
 0xeb6   :  { %v658_v42 = vsub.f32 1.0, %v1428_v33 }
 0xf0e   :  { %v649_v34 = vpop.permute.xlu1 %648 }
 0xf0f   :  { %v651_v35 = vmul.f32 %v1428_v33, %v649_v34  ;;  %v1390_v34 = vld [vmem:[%s1734_s1 + $0x8] sm:$0xff]  }
 0xf11   :  { %653 = vrot.lane.b32.xlu0 %v651_v35, %s1457_s24 }
 0xf15   :  { %665 = vrot.lane.b32.xlu0 %v567_v20, %s1458_s2 }
 0xf19   :  { %751 = vrot.lane.b32.xlu0 %v1507_v3, %s1457_s24 }
 0xf83   :  { %v654_v36 = vpop.permute.xlu0 %653 }
 0xf84   :  { %v656_v37 = vadd.f32 %v1213_v28, %v654_v36 }
 0xf86   :  { %1429 = vtanh.f32 %v656_v37 }
 0xf87   :  { %v666_v41 = vpop.permute.xlu0 %665 }
 0xf88   :  { %v668_v44 = vmul.f32 %v1428_v33, %v666_v41  ;;  %v1389_v33 = vld [vmem:[%s1734_s1] sm:$0xff]  }
 0xf8b   :  { %v752_v50 = vpop.permute.xlu0 %751 }
 0xf90   :  { %v1430_v38 = vpop.eup %1429 }
 0xf91   :  { %660 = vrot.lane.b32.xlu1 %v1430_v38, %s1459_s27 }
0x1003   :  { %v661_v43 = vpop.permute.xlu1 %660 }
0x1004   :  { %v663_v45 = vmul.f32 %v661_v43, %v658_v42 }
0x1006   :  { %v669_v46 = vadd.f32 %v668_v44, %v663_v45 }
0x1008   :  { %671 = vrot.lane.b32.xlu1 %v669_v46, %s1459_s27 }
0x107a   :  { %v672_v47 = vpop.permute.xlu1 %671 }
0x107b   :  { %674 = vst.msk [vmem:[#allocation2] sm:$0xff] %vm25_vm0, %v672_v47 }
0x1082   :  { %v675_v48 = vld [vmem:[#allocation2] sm:$0xff] }
0x1083   :  { %v678_v49 = vpack.c.bf16 %v675_v48, %v675_v48 }
0x1085   :  { %1333 = vmatmul.mubr.msk.bf16.vlgmr.msra.gmra.mrb[12].mxu0 %vm25_vm0, %v678_v49 }
0x1086   :  { %1348 = vmatprep.mubr.msk.bf16.mxu0 %vm1456_vm1, %v1455_v0  ;;  %1345 = vmatpush3.bf16.msra.mxu0 %v1389_v33 }
0x1087   :  { %1346 = vmatprep.subr.bf16.mxu0 %v1455_v0 }
0x108a   :  { %1347 = vmatpush3.bf16.msra.mxu0 %v1390_v34 }
0x108b   :  { %1360 = vmatprep.subr.bf16.mxu0 %v1455_v0 }
0x1158   :  { %v732_v51 = vpop.f32.mrb[12].mxu0 }
0x1159   :  { %v754_v52 = vadd.f32 %v752_v50, %v732_v51  ;;  %v1334_v53 = vpop.f32.mrb[13].mxu0  ;;  %v738_v57 = vadd.f32 %v1219_v56, %v732_v51  ;;  %v1231_v50 = vld [vmem:[%s1736_s0 + $0x40] sm:$0xff] }
0x115a   :  { %v735_v54 = vpop.f32.mrb[14].mxu0 }
0x115b   :  { %v1335_v55 = vpop.f32.mrb[15].mxu0  ;;  %756 = vrot.lane.b32.xlu1 %v754_v52, %s1457_s24  ;;  %v1223_v58 = vmul.f32 -1.442695, %v738_v57 }
0x115d   :  { %1431 = vpow2.f32 %v1223_v58 }
0x1167   :  { %v1432_v59 = vpop.eup %1431 }
0x1168   :  { %v742_v60 = vadd.f32 1.0, %v1432_v59 }
0x116a   :  { %1433 = vrcp.f32 %v742_v60 }
0x1174   :  { %v1434_v61 = vpop.eup %1433 }
0x1175   :  { %v766_v8 = vsub.f32 1.0, %v1434_v61 }
0x11cd   :  { %v757_v62 = vpop.permute.xlu1 %756 }
0x11ce   :  { %v759_v63 = vmul.f32 %v1434_v61, %v757_v62  ;;  %v1392_v62 = vld [vmem:[%s1734_s1 + $0x8] sm:$0xff]  }
0x11d0   :  { %761 = vrot.lane.b32.xlu0 %v759_v63, %s1457_s24 }
0x11d4   :  { %773 = vrot.lane.b32.xlu0 %v675_v48, %s1458_s2 }
0x11d8   :  { %859 = vrot.lane.b32.xlu0 %v1507_v3, %s1457_s24 }
0x1242   :  { %v762_v1 = vpop.permute.xlu0 %761 }
0x1243   :  { %v764_v2 = vadd.f32 %v1219_v56, %v762_v1 }
0x1245   :  { %1435 = vtanh.f32 %v764_v2 }
0x1246   :  { %v774_v7 = vpop.permute.xlu0 %773 }
0x1247   :  { %v776_v10 = vmul.f32 %v1434_v61, %v774_v7  ;;  %v1391_v61 = vld [vmem:[%s1734_s1] sm:$0xff]  }
0x124a   :  { %v860_v16 = vpop.permute.xlu0 %859 }
0x124f   :  { %v1436_v4 = vpop.eup %1435 }
0x1250   :  { %768 = vrot.lane.b32.xlu1 %v1436_v4, %s1459_s27 }
0x12c2   :  { %v769_v9 = vpop.permute.xlu1 %768 }
0x12c3   :  { %v771_v11 = vmul.f32 %v769_v9, %v766_v8 }
0x12c5   :  { %v777_v12 = vadd.f32 %v776_v10, %v771_v11 }
0x12c7   :  { %779 = vrot.lane.b32.xlu1 %v777_v12, %s1459_s27 }
0x1339   :  { %v780_v13 = vpop.permute.xlu1 %779 }
0x133a   :  { %782 = vst.msk [vmem:[#allocation2] sm:$0xff] %vm25_vm0, %v780_v13 }
0x1341   :  { %v783_v14 = vld [vmem:[#allocation2] sm:$0xff] }
0x1342   :  { %v786_v15 = vpack.c.bf16 %v783_v14, %v783_v14 }
0x1344   :  { %1341 = vmatmul.mubr.msk.bf16.vlgmr.msra.gmra.mrb[12].mxu1 %vm25_vm0, %v786_v15  ;;  %v1237_v15 = vld [vmem:[%s1736_s0 + $0x48] sm:$0xff] }
0x1345   :  { %1356 = vmatprep.mubr.msk.bf16.mxu1 %vm1456_vm1, %v1455_v0  ;;  %1353 = vmatpush3.bf16.msra.mxu1 %v1391_v61 }
0x1346   :  { %1354 = vmatprep.subr.bf16.mxu1 %v1455_v0 }
0x1349   :  { %1355 = vmatpush3.bf16.msra.mxu1 %v1392_v62 }
0x1417   :  { %v840_v17 = vpop.f32.mrb[12].mxu1 }
0x1418   :  { %v862_v18 = vadd.f32 %v860_v16, %v840_v17  ;;  %v1342_v19 = vpop.f32.mrb[13].mxu1  ;;  %v846_v23 = vadd.f32 %v1225_v22, %v840_v17 }
0x1419   :  { %v843_v20 = vpop.f32.mrb[14].mxu1 }
0x141a   :  { %864 = vrot.lane.b32.xlu1 %v862_v18, %s1457_s24  ;;  %v1343_v21 = vpop.f32.mrb[15].mxu1  ;;  %v1229_v24 = vmul.f32 -1.442695, %v846_v23 }
0x141c   :  { %1437 = vpow2.f32 %v1229_v24 }
0x1426   :  { %v1438_v25 = vpop.eup %1437 }
0x1427   :  { %v850_v26 = vadd.f32 1.0, %v1438_v25 }
0x1429   :  { %1439 = vrcp.f32 %v850_v26  ;;  %v1393_v26 = vld [vmem:[%s1737_s3] sm:$0xff]  }
0x1433   :  { %v1440_v27 = vpop.eup %1439 }
0x1434   :  { %v874_v36 = vsub.f32 1.0, %v1440_v27 }
0x148c   :  { %v865_v28 = vpop.permute.xlu1 %864 }
0x148d   :  { %v867_v29 = vmul.f32 %v1440_v27, %v865_v28 }
0x148f   :  { %869 = vrot.lane.b32.xlu0 %v867_v29, %s1457_s24 }
0x1493   :  { %881 = vrot.lane.b32.xlu0 %v783_v14, %s1458_s2 }
0x1497   :  { %967 = vrot.lane.b32.xlu0 %v1507_v3, %s1457_s24 }
0x1501   :  { %v870_v30 = vpop.permute.xlu0 %869 }
0x1502   :  { %v872_v31 = vadd.f32 %v1225_v22, %v870_v30 }
0x1504   :  { %1441 = vtanh.f32 %v872_v31 }
0x1505   :  { %v882_v35 = vpop.permute.xlu0 %881 }
0x1506   :  { %v884_v38 = vmul.f32 %v1440_v27, %v882_v35  ;;  %v1394_v27 = vld [vmem:[%s1737_s3 + $0x8] sm:$0xff]  }
0x1509   :  { %v968_v44 = vpop.permute.xlu0 %967 }
0x150e   :  { %v1442_v32 = vpop.eup %1441 }
0x150f   :  { %876 = vrot.lane.b32.xlu1 %v1442_v32, %s1459_s27 }
0x1581   :  { %v877_v37 = vpop.permute.xlu1 %876 }
0x1582   :  { %v879_v39 = vmul.f32 %v877_v37, %v874_v36 }
0x1584   :  { %v885_v40 = vadd.f32 %v884_v38, %v879_v39 }
0x1586   :  { %887 = vrot.lane.b32.xlu1 %v885_v40, %s1459_s27 }
0x15f8   :  { %v888_v41 = vpop.permute.xlu1 %887 }
0x15f9   :  { %890 = vst.msk [vmem:[#allocation2] sm:$0xff] %vm25_vm0, %v888_v41 }
0x1600   :  { %v891_v42 = vld [vmem:[#allocation2] sm:$0xff] }
0x1601   :  { %v894_v43 = vpack.c.bf16 %v891_v42, %v891_v42 }
0x1603   :  { %1349 = vmatmul.mubr.msk.bf16.vlgmr.msra.gmra.mrb[16].mxu0 %vm25_vm0, %v894_v43 }
0x1604   :  { %1364 = vmatprep.mubr.msk.bf16.mxu0 %vm1456_vm1, %v1455_v0  ;;  %1361 = vmatpush3.bf16.msra.mxu0 %v1393_v26 }
0x1605   :  { %1362 = vmatprep.subr.bf16.mxu0 %v1455_v0  ;;  %v1243_v0 = vld [vmem:[%s1738_s4] ss:$0 sm:$0xff] }
0x1608   :  { %1363 = vmatpush3.bf16.msra.mxu0 %v1394_v27 }
0x16d6   :  { %v948_v45 = vpop.f32.mrb[16].mxu0 }
0x16d7   :  { %v970_v46 = vadd.f32 %v968_v44, %v948_v45  ;;  %v1350_v47 = vpop.f32.mrb[17].mxu0  ;;  %v954_v51 = vadd.f32 %v1231_v50, %v948_v45 }
0x16d8   :  { %v951_v48 = vpop.f32.mrb[18].mxu0 }
0x16d9   :  { %v1351_v49 = vpop.f32.mrb[19].mxu0  ;;  %972 = vrot.lane.b32.xlu1 %v970_v46, %s1457_s24  ;;  %v1235_v52 = vmul.f32 -1.442695, %v954_v51 }
0x16db   :  { %1443 = vpow2.f32 %v1235_v52 }
0x16e5   :  { %v1444_v53 = vpop.eup %1443 }
0x16e6   :  { %v958_v54 = vadd.f32 1.0, %v1444_v53 }
0x16e8   :  { %1445 = vrcp.f32 %v958_v54 }
0x16f2   :  { %v1446_v55 = vpop.eup %1445 }
0x174b   :  { %v973_v56 = vpop.permute.xlu1 %972 }
0x174c   :  { %v975_v57 = vmul.f32 %v1446_v55, %v973_v56 }
0x174e   :  { %977 = vrot.lane.b32.xlu0 %v975_v57, %s1457_s24 }
0x1752   :  { %989 = vrot.lane.b32.xlu0 %v891_v42, %s1458_s2 }
0x1756   :  { %1075 = vrot.lane.b32.xlu0 %v1507_v3, %s1457_s24  ;;  %v982_v3 = vsub.f32 1.0, %v1446_v55 }
0x17c0   :  { %v978_v58 = vpop.permute.xlu0 %977 }
0x17c1   :  { %v980_v59 = vadd.f32 %v1231_v50, %v978_v58 }
0x17c3   :  { %1447 = vtanh.f32 %v980_v59 }
0x17c4   :  { %v990_v63 = vpop.permute.xlu0 %989 }
0x17c5   :  { %v992_v2 = vmul.f32 %v1446_v55, %v990_v63 }
0x17c8   :  { %v1076_v9 = vpop.permute.xlu0 %1075 }
0x17cd   :  { %v1448_v60 = vpop.eup %1447 }
0x17ce   :  { %984 = vrot.lane.b32.xlu1 %v1448_v60, %s1459_s27 }
0x1840   :  { %v985_v1 = vpop.permute.xlu1 %984 }
0x1841   :  { %v987_v4 = vmul.f32 %v985_v1, %v982_v3 }
0x1843   :  { %v993_v5 = vadd.f32 %v992_v2, %v987_v4 }
0x1845   :  { %995 = vrot.lane.b32.xlu1 %v993_v5, %s1459_s27 }
0x18b7   :  { %v996_v6 = vpop.permute.xlu1 %995 }
0x18b8   :  { %998 = vst.msk [vmem:[#allocation2] sm:$0xff] %vm25_vm0, %v996_v6 }
0x18bf   :  { %v999_v7 = vld [vmem:[#allocation2] sm:$0xff] }
0x18c0   :  { %v1002_v8 = vpack.c.bf16 %v999_v7, %v999_v7 }
0x18c2   :  { %1357 = vmatmul.mubr.msk.bf16.vlgmr.msra.gmra.mrb[16].mxu1 %vm25_vm0, %v1002_v8 }
0x1995   :  { %v1056_v10 = vpop.f32.mrb[16].mxu1 }
0x1996   :  { %v1078_v11 = vadd.f32 %v1076_v9, %v1056_v10  ;;  %v1358_v12 = vpop.f32.mrb[17].mxu1  ;;  %v1062_v16 = vadd.f32 %v1237_v15, %v1056_v10 }
0x1997   :  { %v1059_v13 = vpop.f32.mrb[18].mxu1 }
0x1998   :  { %1080 = vrot.lane.b32.xlu1 %v1078_v11, %s1457_s24  ;;  %v1359_v14 = vpop.f32.mrb[19].mxu1  ;;  %v1241_v17 = vmul.f32 -1.442695, %v1062_v16 }
0x199a   :  { %1449 = vpow2.f32 %v1241_v17 }
0x19a4   :  { %v1450_v18 = vpop.eup %1449 }
0x19a5   :  { %v1066_v19 = vadd.f32 1.0, %v1450_v18 }
0x19a7   :  { %1451 = vrcp.f32 %v1066_v19 }
0x19b1   :  { %v1452_v20 = vpop.eup %1451 }
0x19b2   :  { %v1090_v29 = vsub.f32 1.0, %v1452_v20 }
0x1a0a   :  { %v1081_v21 = vpop.permute.xlu1 %1080 }
0x1a0b   :  { %v1083_v22 = vmul.f32 %v1452_v20, %v1081_v21 }
0x1a0d   :  { %1085 = vrot.lane.b32.xlu0 %v1083_v22, %s1457_s24 }
0x1a11   :  { %1097 = vrot.lane.b32.xlu0 %v999_v7, %s1458_s2 }
0x1a7f   :  { %v1086_v23 = vpop.permute.xlu0 %1085 }
0x1a80   :  { %v1088_v24 = vadd.f32 %v1237_v15, %v1086_v23 }
0x1a82   :  { %1453 = vtanh.f32 %v1088_v24 }
0x1a83   :  { %v1098_v28 = vpop.permute.xlu0 %1097 }
0x1a84   :  { %v1100_v31 = vmul.f32 %v1452_v20, %v1098_v28 }
0x1a8c   :  { %v1454_v25 = vpop.eup %1453 }
0x1a8d   :  { %1092 = vrot.lane.b32.xlu1 %v1454_v25, %s1459_s27 }
0x1aff   :  { %v1093_v30 = vpop.permute.xlu1 %1092 }
0x1b00   :  { %v1095_v32 = vmul.f32 %v1093_v30, %v1090_v29 }
0x1b02   :  { %v1101_v33 = vadd.f32 %v1100_v31, %v1095_v32 }
0x1b04   :  { %1103 = vrot.lane.b32.xlu1 %v1101_v33, %s1459_s27 }
0x1b76   :  { %v1104_v34 = vpop.permute.xlu1 %1103 }
0x1b77   :  { %1106 = vst.msk [vmem:[#allocation2] sm:$0xff] %vm25_vm0, %v1104_v34 }
0x1b7e   :  { %v1110_v35 = vld [vmem:[#allocation2] sm:$0xff] }
0x1b7f   :  { %v1111_v36 = vpack.c.bf16 %v1110_v35, %v1110_v35 }
0x1b81   :  { %1365 = vmatmul.mubr.msk.bf16.vlgmr.msra.gmra.mrb[20].mxu0 %vm25_vm0, %v1111_v36 }
0x1c54   :  { %v1172_v37 = vpop.f32.mrb[20].mxu0 }
0x1c55   :  { %v1173_v38 = vadd.f32 %v1243_v0, %v1172_v37  ;;  %v1366_v39 = vpop.f32.mrb[21].mxu0 }
0x1c56   :  { %v1175_v40 = vpop.f32.mrb[22].mxu0 }
0x1c57   :  { %1179 = vst.msk [vmem:[%s1739_s5] sm:$0xff] %vm1178_vm2, %v1173_v38  ;;  %v1367_v41 = vpop.f32.mrb[23].mxu0 }

</bundles_post_ra>
